<compile_context>
chip_gen: v5e
topology: v5e:2x2
jax: 0.10.0
libtpu: 0.0.40
codegen_flags: <defaults>
</compile_context>

<pallas_src>
import functools

import jax
import jax.numpy as jnp
from jax.experimental import pallas as pl
from jax.experimental.pallas import tpu as pltpu

BN_EPS = 1e-5
_VMEM_LIMIT_BYTES = 48 * 1024 * 1024


# ---------------------------------------------------------------------------
# Kernel 1: 7x7 / stride-2 conv (in-kernel patch assembly, no HBM im2col)
#           + per-image channel sum / sum-of-squares for train-mode BN stats.
#   xq : (N, 2, 2, Ho+3, Wo+3, Cin)  phase-decomposed padded NHWC input
#   w  : (7, 7*Cin, Cout)            per-dy weight slabs, K order = (dx, cin)
#   z  : (N, Ho*Wo, Cout)            conv output (pixel-major rows)
#   sum/ssq : (N, 1, Cout)           per-image partial BN statistics
# ---------------------------------------------------------------------------
def _conv_stats_kernel(xq_ref, w_ref, z_ref, sum_ref, ssq_ref, *, ho, wo, cin):
    cout = w_ref.shape[-1]
    acc = jnp.zeros((ho * wo, cout), dtype=jnp.float32)
    # 7 row-grouped dots of K = 7*cin; every slice is unit-stride thanks to the
    # 2x2 phase decomposition done in the wrapper.
    for dy in range(7):
        p, oy = dy % 2, dy // 2
        parts = []
        for dx in range(7):
            q, ox = dx % 2, dx // 2
            parts.append(xq_ref[0, p, q, oy:oy + ho, ox:ox + wo, :])  # (ho, wo, cin)
        pk = jnp.concatenate(parts, axis=-1)           # (ho, wo, 7*cin)
        pk = pk.reshape(ho * wo, 7 * cin)
        acc = acc + jnp.dot(pk, w_ref[dy], preferred_element_type=jnp.float32)
    z_ref[...] = acc[None]
    # BN batch statistics accumulated while z is still resident in VMEM.
    sum_ref[...] = jnp.sum(acc, axis=0, keepdims=True)[None]
    ssq_ref[...] = jnp.sum(acc * acc, axis=0, keepdims=True)[None]


def _conv_stats(xq, w_r, *, n, ho, wo, cin, cout):
    hh, wh = ho + 3, wo + 3
    flops = 2 * n * ho * wo * (7 * 7 * cin) * cout
    bytes_accessed = 4 * (xq.size + w_r.size + n * ho * wo * cout + 2 * n * cout)
    kern = functools.partial(_conv_stats_kernel, ho=ho, wo=wo, cin=cin)
    return pl.pallas_call(
        kern,
        out_shape=(
            jax.ShapeDtypeStruct((n, ho * wo, cout), jnp.float32),
            jax.ShapeDtypeStruct((n, 1, cout), jnp.float32),
            jax.ShapeDtypeStruct((n, 1, cout), jnp.float32),
        ),
        grid=(n,),
        in_specs=[
            pl.BlockSpec((1, 2, 2, hh, wh, cin), lambda i: (i, 0, 0, 0, 0, 0)),
            pl.BlockSpec((7, 7 * cin, cout), lambda i: (0, 0, 0)),
        ],
        out_specs=(
            pl.BlockSpec((1, ho * wo, cout), lambda i: (i, 0, 0)),
            pl.BlockSpec((1, 1, cout), lambda i: (i, 0, 0)),
            pl.BlockSpec((1, 1, cout), lambda i: (i, 0, 0)),
        ),
        compiler_params=pltpu.CompilerParams(
            dimension_semantics=("parallel",),
            vmem_limit_bytes=_VMEM_LIMIT_BYTES,
        ),
        cost_estimate=pl.CostEstimate(
            flops=flops, transcendentals=0, bytes_accessed=bytes_accessed),
    )(xq, w_r)


# ---------------------------------------------------------------------------
# Kernel 2: fused BN-apply (pre-folded scale/shift) + ReLU + MaxPool2d(3,2,1).
#   z     : (N, Ho*Wo, C)
#   scale, shift : (1, C)
#   out   : (N, Po, Qo, C)
#   scratch: (2*Po+2, 2*Qo+2, C) zero-padded VMEM copy (0-pad == -inf pad post-ReLU)
# ---------------------------------------------------------------------------
def _bn_relu_pool_kernel(z_ref, scale_ref, shift_ref, o_ref, pad_ref,
                         *, ho, wo, po, qo):
    c = z_ref.shape[-1]
    y = jnp.maximum(z_ref[0] * scale_ref[...] + shift_ref[...], 0.0)   # (ho*wo, c)
    pad_ref[...] = jnp.zeros(pad_ref.shape, pad_ref.dtype)
    pad_ref[1:ho + 1, 1:wo + 1, :] = y.reshape(ho, wo, c)
    s = pad_ref[...]                                    # (2*po+2, 2*qo+2, c)
    # Separable 3x3/stride-2 max: stride-1 maxes, then one subsample per axis.
    mh = jnp.maximum(jnp.maximum(s[0:2 * po, :, :], s[1:2 * po + 1, :, :]),
                     s[2:2 * po + 2, :, :])             # (2*po, 2*qo+2, c)
    mh = mh[0:2 * po:2, :, :]                           # (po, 2*qo+2, c)
    mw = jnp.maximum(jnp.maximum(mh[:, 0:2 * qo, :], mh[:, 1:2 * qo + 1, :]),
                     mh[:, 2:2 * qo + 2, :])            # (po, 2*qo, c)
    o_ref[...] = mw[:, 0:2 * qo:2, :][None]             # (1, po, qo, c)


def _bn_relu_pool(z, scale, shift, *, n, ho, wo, po, qo, cout):
    kern = functools.partial(_bn_relu_pool_kernel, ho=ho, wo=wo, po=po, qo=qo)
    flops = 2 * n * ho * wo * cout + 8 * n * po * qo * cout
    bytes_accessed = 4 * (z.size + n * po * qo * cout + 2 * cout)
    return pl.pallas_call(
        kern,
        out_shape=jax.ShapeDtypeStruct((n, po, qo, cout), jnp.float32),
        grid=(n,),
        in_specs=[
            pl.BlockSpec((1, ho * wo, cout), lambda i: (i, 0, 0)),
            pl.BlockSpec((1, cout), lambda i: (0, 0)),
            pl.BlockSpec((1, cout), lambda i: (0, 0)),
        ],
        out_specs=pl.BlockSpec((1, po, qo, cout), lambda i: (i, 0, 0, 0)),
        scratch_shapes=[pltpu.VMEM((2 * po + 2, 2 * qo + 2, cout), jnp.float32)],
        compiler_params=pltpu.CompilerParams(
            dimension_semantics=("parallel",),
            vmem_limit_bytes=_VMEM_LIMIT_BYTES,
        ),
        cost_estimate=pl.CostEstimate(
            flops=flops, transcendentals=0, bytes_accessed=bytes_accessed),
    )(z, scale, shift)


# ---------------------------------------------------------------------------
# ResStem forward: NCHW in, NCHW out (same semantics as the PyTorch module).
# ---------------------------------------------------------------------------
def res_stem_forward(x_nchw, params):
    w_oihw, gamma, beta = params["w"], params["gamma"], params["beta"]
    # params["b"] (conv bias) is intentionally unused: a per-channel constant
    # added before train-mode BatchNorm cancels exactly.
    n, cin, h, w = x_nchw.shape
    cout = w_oihw.shape[0]

    ho = (h + 2 * 3 - 7) // 2 + 1
    wo = (w + 2 * 3 - 7) // 2 + 1
    po = (ho + 2 * 1 - 3) // 2 + 1
    qo = (wo + 2 * 1 - 3) // 2 + 1
    hh, wh = ho + 3, wo + 3

    # Glue (input-sized, cheap): NCHW -> NHWC, pad for the conv and 2x2
    # phase-decompose rows/cols so every in-kernel patch slice is unit-stride.
    x = jnp.transpose(x_nchw, (0, 2, 3, 1)).astype(jnp.float32)        # (N,H,W,Cin)
    x_pad = jnp.pad(x, ((0, 0), (3, 2 * hh - h - 3), (3, 2 * wh - w - 3), (0, 0)))
    xq = x_pad.reshape(n, hh, 2, wh, 2, cin).transpose(0, 2, 4, 1, 3, 5)  # (N,2,2,hh,wh,Cin)

    # Weight OIHW -> (dy, (dx, cin), cout); K order matches the in-kernel concat.
    w_r = jnp.transpose(w_oihw, (2, 3, 1, 0)).reshape(7, 7 * cin, cout).astype(jnp.float32)

    # Pass 1 (Pallas): conv + per-image BN partial statistics.
    z, sums, ssqs = _conv_stats(xq, w_r, n=n, ho=ho, wo=wo, cin=cin, cout=cout)

    # Tiny glue: global batch stats folded with gamma/beta into scale/shift.
    m_total = n * ho * wo
    mean = jnp.sum(sums[:, 0, :], axis=0) / m_total
    var = jnp.maximum(jnp.sum(ssqs[:, 0, :], axis=0) / m_total - mean * mean, 0.0)
    inv = jax.lax.rsqrt(var + BN_EPS)
    scale = (gamma * inv).reshape(1, cout).astype(jnp.float32)
    shift = (beta - mean * gamma * inv).reshape(1, cout).astype(jnp.float32)

    # Pass 2 (Pallas): fused BN-apply + ReLU + 3x3/s2/p1 max-pool.
    pooled = _bn_relu_pool(z, scale, shift, n=n, ho=ho, wo=wo, po=po, qo=qo, cout=cout)

    return jnp.transpose(pooled, (0, 3, 1, 2))                          # NCHW


# ---------------------------------------------------------------------------
# Pure-JAX reference (includes the conv bias, which must cancel under train BN).
# ---------------------------------------------------------------------------
def res_stem_reference(x_nchw, params):
    w_oihw, bias, gamma, beta = params["w"], params["b"], params["gamma"], params["beta"]
    z = jax.lax.conv_general_dilated(
        x_nchw, w_oihw, window_strides=(2, 2), padding=((3, 3), (3, 3)),
        dimension_numbers=("NCHW", "OIHW", "NCHW"))
    z = z + bias[None, :, None, None]
    mu = jnp.mean(z, axis=(0, 2, 3), keepdims=True)
    var = jnp.mean((z - mu) ** 2, axis=(0, 2, 3), keepdims=True)
    y = gamma[None, :, None, None] * (z - mu) * jax.lax.rsqrt(var + BN_EPS) \
        + beta[None, :, None, None]
    y = jnp.maximum(y, 0.0)
    return jax.lax.reduce_window(
        y, -jnp.inf, jax.lax.max,
        window_dimensions=(1, 1, 3, 3), window_strides=(1, 1, 2, 2),
        padding=((0, 0), (0, 0), (1, 1), (1, 1)))


if __name__ == "__main__":
    c_out = 64            # BatchNorm2d(64) is hardcoded in the module
    n, cin, h, w = 2, 3, 16, 16

    key = jax.random.PRNGKey(0)
    kx, kw, kb, kg, kbeta = jax.random.split(key, 5)
    x = jax.random.normal(kx, (n, cin, h, w), dtype=jnp.float32)
    params = {
        "w": jax.random.normal(kw, (c_out, cin, 7, 7), dtype=jnp.float32) * 0.1,
        "b": jax.random.normal(kb, (c_out,), dtype=jnp.float32) * 0.1,
        "gamma": 1.0 + 0.1 * jax.random.normal(kg, (c_out,), dtype=jnp.float32),
        "beta": 0.1 * jax.random.normal(kbeta, (c_out,), dtype=jnp.float32),
    }

    out = jax.block_until_ready(res_stem_forward(x, params))
    ref = jax.block_until_ready(res_stem_reference(x, params))

    assert out.shape == (n, c_out, 4, 4), out.shape
    err = float(jnp.max(jnp.abs(out - ref)))
    assert jnp.allclose(out, ref, atol=2e-4, rtol=2e-4), err
    print("KERNEL_OK")
</pallas_src>

<mosaic_0001>
module attributes {stable_mosaic.version = 11 : i64} {
  func.func @_conv_stats_kernel(%arg0: i32, %arg1: memref<1x2x2x11x11x3xf32, #tpu.memory_space<vmem>>, %arg2: memref<7x21x64xf32, #tpu.memory_space<vmem>>, %arg3: memref<1x64x64xf32, #tpu.memory_space<vmem>>, %arg4: memref<1x1x64xf32, #tpu.memory_space<vmem>>, %arg5: memref<1x1x64xf32, #tpu.memory_space<vmem>>) attributes {dimension_semantics = [#tpu.dimension_semantics<parallel>], iteration_bounds = array<i64: 2>, scalar_prefetch = 0 : i64, scratch_operands = 0 : i64, tpu.core_type = #tpu.core_type<tc>, window_params = [{transform_indices = @transform_0, window_bounds = array<i64: 1, 2, 2, 11, 11, 3>}, {pipeline_mode = #tpu.pipeline_mode<synchronous>, transform_indices = @transform_1, window_bounds = array<i64: 7, 21, 64>}, {transform_indices = @transform_2, window_bounds = array<i64: 1, 64, 64>}, {transform_indices = @transform_3, window_bounds = array<i64: 1, 1, 64>}, {transform_indices = @transform_4, window_bounds = array<i64: 1, 1, 64>}]} {
    %cst = arith.constant 0.000000e+00 : f32
    %0 = vector.broadcast %cst : f32 to vector<64x64xf32>
    %c0 = arith.constant 0 : index
    %c0_0 = arith.constant 0 : index
    %c0_1 = arith.constant 0 : index
    %c0_2 = arith.constant 0 : index
    %c0_3 = arith.constant 0 : index
    %c0_4 = arith.constant 0 : index
    %1 = vector.load %arg1[%c0, %c0_0, %c0_1, %c0_2, %c0_3, %c0_4] : memref<1x2x2x11x11x3xf32, #tpu.memory_space<vmem>>, vector<1x1x1x8x8x3xf32>
    %2 = vector.shape_cast %1 : vector<1x1x1x8x8x3xf32> to vector<8x8x3xf32>
    %c0_5 = arith.constant 0 : index
    %c0_6 = arith.constant 0 : index
    %c1 = arith.constant 1 : index
    %c0_7 = arith.constant 0 : index
    %c0_8 = arith.constant 0 : index
    %c0_9 = arith.constant 0 : index
    %3 = vector.load %arg1[%c0_5, %c0_6, %c1, %c0_7, %c0_8, %c0_9] : memref<1x2x2x11x11x3xf32, #tpu.memory_space<vmem>>, vector<1x1x1x8x8x3xf32>
    %4 = vector.shape_cast %3 : vector<1x1x1x8x8x3xf32> to vector<8x8x3xf32>
    %c0_10 = arith.constant 0 : index
    %c0_11 = arith.constant 0 : index
    %c0_12 = arith.constant 0 : index
    %c0_13 = arith.constant 0 : index
    %c1_14 = arith.constant 1 : index
    %c0_15 = arith.constant 0 : index
    %5 = vector.load %arg1[%c0_10, %c0_11, %c0_12, %c0_13, %c1_14, %c0_15] : memref<1x2x2x11x11x3xf32, #tpu.memory_space<vmem>>, vector<1x1x1x8x8x3xf32>
    %6 = vector.shape_cast %5 : vector<1x1x1x8x8x3xf32> to vector<8x8x3xf32>
    %c0_16 = arith.constant 0 : index
    %c0_17 = arith.constant 0 : index
    %c1_18 = arith.constant 1 : index
    %c0_19 = arith.constant 0 : index
    %c1_20 = arith.constant 1 : index
    %c0_21 = arith.constant 0 : index
    %7 = vector.load %arg1[%c0_16, %c0_17, %c1_18, %c0_19, %c1_20, %c0_21] : memref<1x2x2x11x11x3xf32, #tpu.memory_space<vmem>>, vector<1x1x1x8x8x3xf32>
    %8 = vector.shape_cast %7 : vector<1x1x1x8x8x3xf32> to vector<8x8x3xf32>
    %c0_22 = arith.constant 0 : index
    %c0_23 = arith.constant 0 : index
    %c0_24 = arith.constant 0 : index
    %c0_25 = arith.constant 0 : index
    %c2 = arith.constant 2 : index
    %c0_26 = arith.constant 0 : index
    %9 = vector.load %arg1[%c0_22, %c0_23, %c0_24, %c0_25, %c2, %c0_26] : memref<1x2x2x11x11x3xf32, #tpu.memory_space<vmem>>, vector<1x1x1x8x8x3xf32>
    %10 = vector.shape_cast %9 : vector<1x1x1x8x8x3xf32> to vector<8x8x3xf32>
    %c0_27 = arith.constant 0 : index
    %c0_28 = arith.constant 0 : index
    %c1_29 = arith.constant 1 : index
    %c0_30 = arith.constant 0 : index
    %c2_31 = arith.constant 2 : index
    %c0_32 = arith.constant 0 : index
    %11 = vector.load %arg1[%c0_27, %c0_28, %c1_29, %c0_30, %c2_31, %c0_32] : memref<1x2x2x11x11x3xf32, #tpu.memory_space<vmem>>, vector<1x1x1x8x8x3xf32>
    %12 = vector.shape_cast %11 : vector<1x1x1x8x8x3xf32> to vector<8x8x3xf32>
    %c0_33 = arith.constant 0 : index
    %c0_34 = arith.constant 0 : index
    %c0_35 = arith.constant 0 : index
    %c0_36 = arith.constant 0 : index
    %c3 = arith.constant 3 : index
    %c0_37 = arith.constant 0 : index
    %13 = vector.load %arg1[%c0_33, %c0_34, %c0_35, %c0_36, %c3, %c0_37] : memref<1x2x2x11x11x3xf32, #tpu.memory_space<vmem>>, vector<1x1x1x8x8x3xf32>
    %14 = vector.shape_cast %13 : vector<1x1x1x8x8x3xf32> to vector<8x8x3xf32>
    %15 = tpu.concatenate %2, %4, %6, %8, %10, %12, %14 in 2 : vector<8x8x3xf32>, vector<8x8x3xf32>, vector<8x8x3xf32>, vector<8x8x3xf32>, vector<8x8x3xf32>, vector<8x8x3xf32>, vector<8x8x3xf32> -> vector<8x8x21xf32>
    %16 = vector.shape_cast %15 : vector<8x8x21xf32> to vector<64x21xf32>
    %c0_38 = arith.constant 0 : index
    %c0_39 = arith.constant 0 : index
    %c0_40 = arith.constant 0 : index
    %17 = vector.load %arg2[%c0_38, %c0_39, %c0_40] : memref<7x21x64xf32, #tpu.memory_space<vmem>>, vector<1x21x64xf32>
    %18 = vector.shape_cast %17 : vector<1x21x64xf32> to vector<21x64xf32>
    %cst_41 = arith.constant dense<0.000000e+00> : vector<64x64xf32>
    %19 = tpu.matmul %16, %18, %cst_41 {dimension_numbers = #tpu.dot_dimension_numbers<[1], [0], [0], [1], [0, 0, 1, 1], [], []>} : vector<64x21xf32>, vector<21x64xf32>, vector<64x64xf32> -> vector<64x64xf32>
    %20 = arith.addf %0, %19 : vector<64x64xf32>
    %c0_42 = arith.constant 0 : index
    %c1_43 = arith.constant 1 : index
    %c0_44 = arith.constant 0 : index
    %c0_45 = arith.constant 0 : index
    %c0_46 = arith.constant 0 : index
    %c0_47 = arith.constant 0 : index
    %21 = vector.load %arg1[%c0_42, %c1_43, %c0_44, %c0_45, %c0_46, %c0_47] : memref<1x2x2x11x11x3xf32, #tpu.memory_space<vmem>>, vector<1x1x1x8x8x3xf32>
    %22 = vector.shape_cast %21 : vector<1x1x1x8x8x3xf32> to vector<8x8x3xf32>
    %c0_48 = arith.constant 0 : index
    %c1_49 = arith.constant 1 : index
    %c1_50 = arith.constant 1 : index
    %c0_51 = arith.constant 0 : index
    %c0_52 = arith.constant 0 : index
    %c0_53 = arith.constant 0 : index
    %23 = vector.load %arg1[%c0_48, %c1_49, %c1_50, %c0_51, %c0_52, %c0_53] : memref<1x2x2x11x11x3xf32, #tpu.memory_space<vmem>>, vector<1x1x1x8x8x3xf32>
    %24 = vector.shape_cast %23 : vector<1x1x1x8x8x3xf32> to vector<8x8x3xf32>
    %c0_54 = arith.constant 0 : index
    %c1_55 = arith.constant 1 : index
    %c0_56 = arith.constant 0 : index
    %c0_57 = arith.constant 0 : index
    %c1_58 = arith.constant 1 : index
    %c0_59 = arith.constant 0 : index
    %25 = vector.load %arg1[%c0_54, %c1_55, %c0_56, %c0_57, %c1_58, %c0_59] : memref<1x2x2x11x11x3xf32, #tpu.memory_space<vmem>>, vector<1x1x1x8x8x3xf32>
    %26 = vector.shape_cast %25 : vector<1x1x1x8x8x3xf32> to vector<8x8x3xf32>
    %c0_60 = arith.constant 0 : index
    %c1_61 = arith.constant 1 : index
    %c1_62 = arith.constant 1 : index
    %c0_63 = arith.constant 0 : index
    %c1_64 = arith.constant 1 : index
    %c0_65 = arith.constant 0 : index
    %27 = vector.load %arg1[%c0_60, %c1_61, %c1_62, %c0_63, %c1_64, %c0_65] : memref<1x2x2x11x11x3xf32, #tpu.memory_space<vmem>>, vector<1x1x1x8x8x3xf32>
    %28 = vector.shape_cast %27 : vector<1x1x1x8x8x3xf32> to vector<8x8x3xf32>
    %c0_66 = arith.constant 0 : index
    %c1_67 = arith.constant 1 : index
    %c0_68 = arith.constant 0 : index
    %c0_69 = arith.constant 0 : index
    %c2_70 = arith.constant 2 : index
    %c0_71 = arith.constant 0 : index
    %29 = vector.load %arg1[%c0_66, %c1_67, %c0_68, %c0_69, %c2_70, %c0_71] : memref<1x2x2x11x11x3xf32, #tpu.memory_space<vmem>>, vector<1x1x1x8x8x3xf32>
    %30 = vector.shape_cast %29 : vector<1x1x1x8x8x3xf32> to vector<8x8x3xf32>
    %c0_72 = arith.constant 0 : index
    %c1_73 = arith.constant 1 : index
    %c1_74 = arith.constant 1 : index
    %c0_75 = arith.constant 0 : index
    %c2_76 = arith.constant 2 : index
    %c0_77 = arith.constant 0 : index
    %31 = vector.load %arg1[%c0_72, %c1_73, %c1_74, %c0_75, %c2_76, %c0_77] : memref<1x2x2x11x11x3xf32, #tpu.memory_space<vmem>>, vector<1x1x1x8x8x3xf32>
    %32 = vector.shape_cast %31 : vector<1x1x1x8x8x3xf32> to vector<8x8x3xf32>
    %c0_78 = arith.constant 0 : index
    %c1_79 = arith.constant 1 : index
    %c0_80 = arith.constant 0 : index
    %c0_81 = arith.constant 0 : index
    %c3_82 = arith.constant 3 : index
    %c0_83 = arith.constant 0 : index
    %33 = vector.load %arg1[%c0_78, %c1_79, %c0_80, %c0_81, %c3_82, %c0_83] : memref<1x2x2x11x11x3xf32, #tpu.memory_space<vmem>>, vector<1x1x1x8x8x3xf32>
    %34 = vector.shape_cast %33 : vector<1x1x1x8x8x3xf32> to vector<8x8x3xf32>
    %35 = tpu.concatenate %22, %24, %26, %28, %30, %32, %34 in 2 : vector<8x8x3xf32>, vector<8x8x3xf32>, vector<8x8x3xf32>, vector<8x8x3xf32>, vector<8x8x3xf32>, vector<8x8x3xf32>, vector<8x8x3xf32> -> vector<8x8x21xf32>
    %36 = vector.shape_cast %35 : vector<8x8x21xf32> to vector<64x21xf32>
    %c1_84 = arith.constant 1 : index
    %c0_85 = arith.constant 0 : index
    %c0_86 = arith.constant 0 : index
    %37 = vector.load %arg2[%c1_84, %c0_85, %c0_86] : memref<7x21x64xf32, #tpu.memory_space<vmem>>, vector<1x21x64xf32>
    %38 = vector.shape_cast %37 : vector<1x21x64xf32> to vector<21x64xf32>
    %cst_87 = arith.constant dense<0.000000e+00> : vector<64x64xf32>
    %39 = tpu.matmul %36, %38, %cst_87 {dimension_numbers = #tpu.dot_dimension_numbers<[1], [0], [0], [1], [0, 0, 1, 1], [], []>} : vector<64x21xf32>, vector<21x64xf32>, vector<64x64xf32> -> vector<64x64xf32>
    %40 = arith.addf %20, %39 : vector<64x64xf32>
    %c0_88 = arith.constant 0 : index
    %c0_89 = arith.constant 0 : index
    %c0_90 = arith.constant 0 : index
    %c1_91 = arith.constant 1 : index
    %c0_92 = arith.constant 0 : index
    %c0_93 = arith.constant 0 : index
    %41 = vector.load %arg1[%c0_88, %c0_89, %c0_90, %c1_91, %c0_92, %c0_93] : memref<1x2x2x11x11x3xf32, #tpu.memory_space<vmem>>, vector<1x1x1x8x8x3xf32>
    %42 = vector.shape_cast %41 : vector<1x1x1x8x8x3xf32> to vector<8x8x3xf32>
    %c0_94 = arith.constant 0 : index
    %c0_95 = arith.constant 0 : index
    %c1_96 = arith.constant 1 : index
    %c1_97 = arith.constant 1 : index
    %c0_98 = arith.constant 0 : index
    %c0_99 = arith.constant 0 : index
    %43 = vector.load %arg1[%c0_94, %c0_95, %c1_96, %c1_97, %c0_98, %c0_99] : memref<1x2x2x11x11x3xf32, #tpu.memory_space<vmem>>, vector<1x1x1x8x8x3xf32>
    %44 = vector.shape_cast %43 : vector<1x1x1x8x8x3xf32> to vector<8x8x3xf32>
    %c0_100 = arith.constant 0 : index
    %c0_101 = arith.constant 0 : index
    %c0_102 = arith.constant 0 : index
    %c1_103 = arith.constant 1 : index
    %c1_104 = arith.constant 1 : index
    %c0_105 = arith.constant 0 : index
    %45 = vector.load %arg1[%c0_100, %c0_101, %c0_102, %c1_103, %c1_104, %c0_105] : memref<1x2x2x11x11x3xf32, #tpu.memory_space<vmem>>, vector<1x1x1x8x8x3xf32>
    %46 = vector.shape_cast %45 : vector<1x1x1x8x8x3xf32> to vector<8x8x3xf32>
    %c0_106 = arith.constant 0 : index
    %c0_107 = arith.constant 0 : index
    %c1_108 = arith.constant 1 : index
    %c1_109 = arith.constant 1 : index
    %c1_110 = arith.constant 1 : index
    %c0_111 = arith.constant 0 : index
    %47 = vector.load %arg1[%c0_106, %c0_107, %c1_108, %c1_109, %c1_110, %c0_111] : memref<1x2x2x11x11x3xf32, #tpu.memory_space<vmem>>, vector<1x1x1x8x8x3xf32>
    %48 = vector.shape_cast %47 : vector<1x1x1x8x8x3xf32> to vector<8x8x3xf32>
    %c0_112 = arith.constant 0 : index
    %c0_113 = arith.constant 0 : index
    %c0_114 = arith.constant 0 : index
    %c1_115 = arith.constant 1 : index
    %c2_116 = arith.constant 2 : index
    %c0_117 = arith.constant 0 : index
    %49 = vector.load %arg1[%c0_112, %c0_113, %c0_114, %c1_115, %c2_116, %c0_117] : memref<1x2x2x11x11x3xf32, #tpu.memory_space<vmem>>, vector<1x1x1x8x8x3xf32>
    %50 = vector.shape_cast %49 : vector<1x1x1x8x8x3xf32> to vector<8x8x3xf32>
    %c0_118 = arith.constant 0 : index
    %c0_119 = arith.constant 0 : index
    %c1_120 = arith.constant 1 : index
    %c1_121 = arith.constant 1 : index
    %c2_122 = arith.constant 2 : index
    %c0_123 = arith.constant 0 : index
    %51 = vector.load %arg1[%c0_118, %c0_119, %c1_120, %c1_121, %c2_122, %c0_123] : memref<1x2x2x11x11x3xf32, #tpu.memory_space<vmem>>, vector<1x1x1x8x8x3xf32>
    %52 = vector.shape_cast %51 : vector<1x1x1x8x8x3xf32> to vector<8x8x3xf32>
    %c0_124 = arith.constant 0 : index
    %c0_125 = arith.constant 0 : index
    %c0_126 = arith.constant 0 : index
    %c1_127 = arith.constant 1 : index
    %c3_128 = arith.constant 3 : index
    %c0_129 = arith.constant 0 : index
    %53 = vector.load %arg1[%c0_124, %c0_125, %c0_126, %c1_127, %c3_128, %c0_129] : memref<1x2x2x11x11x3xf32, #tpu.memory_space<vmem>>, vector<1x1x1x8x8x3xf32>
    %54 = vector.shape_cast %53 : vector<1x1x1x8x8x3xf32> to vector<8x8x3xf32>
    %55 = tpu.concatenate %42, %44, %46, %48, %50, %52, %54 in 2 : vector<8x8x3xf32>, vector<8x8x3xf32>, vector<8x8x3xf32>, vector<8x8x3xf32>, vector<8x8x3xf32>, vector<8x8x3xf32>, vector<8x8x3xf32> -> vector<8x8x21xf32>
    %56 = vector.shape_cast %55 : vector<8x8x21xf32> to vector<64x21xf32>
    %c2_130 = arith.constant 2 : index
    %c0_131 = arith.constant 0 : index
    %c0_132 = arith.constant 0 : index
    %57 = vector.load %arg2[%c2_130, %c0_131, %c0_132] : memref<7x21x64xf32, #tpu.memory_space<vmem>>, vector<1x21x64xf32>
    %58 = vector.shape_cast %57 : vector<1x21x64xf32> to vector<21x64xf32>
    %cst_133 = arith.constant dense<0.000000e+00> : vector<64x64xf32>
    %59 = tpu.matmul %56, %58, %cst_133 {dimension_numbers = #tpu.dot_dimension_numbers<[1], [0], [0], [1], [0, 0, 1, 1], [], []>} : vector<64x21xf32>, vector<21x64xf32>, vector<64x64xf32> -> vector<64x64xf32>
    %60 = arith.addf %40, %59 : vector<64x64xf32>
    %c0_134 = arith.constant 0 : index
    %c1_135 = arith.constant 1 : index
    %c0_136 = arith.constant 0 : index
    %c1_137 = arith.constant 1 : index
    %c0_138 = arith.constant 0 : index
    %c0_139 = arith.constant 0 : index
    %61 = vector.load %arg1[%c0_134, %c1_135, %c0_136, %c1_137, %c0_138, %c0_139] : memref<1x2x2x11x11x3xf32, #tpu.memory_space<vmem>>, vector<1x1x1x8x8x3xf32>
    %62 = vector.shape_cast %61 : vector<1x1x1x8x8x3xf32> to vector<8x8x3xf32>
    %c0_140 = arith.constant 0 : index
    %c1_141 = arith.constant 1 : index
    %c1_142 = arith.constant 1 : index
    %c1_143 = arith.constant 1 : index
    %c0_144 = arith.constant 0 : index
    %c0_145 = arith.constant 0 : index
    %63 = vector.load %arg1[%c0_140, %c1_141, %c1_142, %c1_143, %c0_144, %c0_145] : memref<1x2x2x11x11x3xf32, #tpu.memory_space<vmem>>, vector<1x1x1x8x8x3xf32>
    %64 = vector.shape_cast %63 : vector<1x1x1x8x8x3xf32> to vector<8x8x3xf32>
    %c0_146 = arith.constant 0 : index
    %c1_147 = arith.constant 1 : index
    %c0_148 = arith.constant 0 : index
    %c1_149 = arith.constant 1 : index
    %c1_150 = arith.constant 1 : index
    %c0_151 = arith.constant 0 : index
    %65 = vector.load %arg1[%c0_146, %c1_147, %c0_148, %c1_149, %c1_150, %c0_151] : memref<1x2x2x11x11x3xf32, #tpu.memory_space<vmem>>, vector<1x1x1x8x8x3xf32>
    %66 = vector.shape_cast %65 : vector<1x1x1x8x8x3xf32> to vector<8x8x3xf32>
    %c0_152 = arith.constant 0 : index
    %c1_153 = arith.constant 1 : index
    %c1_154 = arith.constant 1 : index
    %c1_155 = arith.constant 1 : index
    %c1_156 = arith.constant 1 : index
    %c0_157 = arith.constant 0 : index
    %67 = vector.load %arg1[%c0_152, %c1_153, %c1_154, %c1_155, %c1_156, %c0_157] : memref<1x2x2x11x11x3xf32, #tpu.memory_space<vmem>>, vector<1x1x1x8x8x3xf32>
    %68 = vector.shape_cast %67 : vector<1x1x1x8x8x3xf32> to vector<8x8x3xf32>
    %c0_158 = arith.constant 0 : index
    %c1_159 = arith.constant 1 : index
    %c0_160 = arith.constant 0 : index
    %c1_161 = arith.constant 1 : index
    %c2_162 = arith.constant 2 : index
    %c0_163 = arith.constant 0 : index
    %69 = vector.load %arg1[%c0_158, %c1_159, %c0_160, %c1_161, %c2_162, %c0_163] : memref<1x2x2x11x11x3xf32, #tpu.memory_space<vmem>>, vector<1x1x1x8x8x3xf32>
    %70 = vector.shape_cast %69 : vector<1x1x1x8x8x3xf32> to vector<8x8x3xf32>
    %c0_164 = arith.constant 0 : index
    %c1_165 = arith.constant 1 : index
    %c1_166 = arith.constant 1 : index
    %c1_167 = arith.constant 1 : index
    %c2_168 = arith.constant 2 : index
    %c0_169 = arith.constant 0 : index
    %71 = vector.load %arg1[%c0_164, %c1_165, %c1_166, %c1_167, %c2_168, %c0_169] : memref<1x2x2x11x11x3xf32, #tpu.memory_space<vmem>>, vector<1x1x1x8x8x3xf32>
    %72 = vector.shape_cast %71 : vector<1x1x1x8x8x3xf32> to vector<8x8x3xf32>
    %c0_170 = arith.constant 0 : index
    %c1_171 = arith.constant 1 : index
    %c0_172 = arith.constant 0 : index
    %c1_173 = arith.constant 1 : index
    %c3_174 = arith.constant 3 : index
    %c0_175 = arith.constant 0 : index
    %73 = vector.load %arg1[%c0_170, %c1_171, %c0_172, %c1_173, %c3_174, %c0_175] : memref<1x2x2x11x11x3xf32, #tpu.memory_space<vmem>>, vector<1x1x1x8x8x3xf32>
    %74 = vector.shape_cast %73 : vector<1x1x1x8x8x3xf32> to vector<8x8x3xf32>
    %75 = tpu.concatenate %62, %64, %66, %68, %70, %72, %74 in 2 : vector<8x8x3xf32>, vector<8x8x3xf32>, vector<8x8x3xf32>, vector<8x8x3xf32>, vector<8x8x3xf32>, vector<8x8x3xf32>, vector<8x8x3xf32> -> vector<8x8x21xf32>
    %76 = vector.shape_cast %75 : vector<8x8x21xf32> to vector<64x21xf32>
    %c3_176 = arith.constant 3 : index
    %c0_177 = arith.constant 0 : index
    %c0_178 = arith.constant 0 : index
    %77 = vector.load %arg2[%c3_176, %c0_177, %c0_178] : memref<7x21x64xf32, #tpu.memory_space<vmem>>, vector<1x21x64xf32>
    %78 = vector.shape_cast %77 : vector<1x21x64xf32> to vector<21x64xf32>
    %cst_179 = arith.constant dense<0.000000e+00> : vector<64x64xf32>
    %79 = tpu.matmul %76, %78, %cst_179 {dimension_numbers = #tpu.dot_dimension_numbers<[1], [0], [0], [1], [0, 0, 1, 1], [], []>} : vector<64x21xf32>, vector<21x64xf32>, vector<64x64xf32> -> vector<64x64xf32>
    %80 = arith.addf %60, %79 : vector<64x64xf32>
    %c0_180 = arith.constant 0 : index
    %c0_181 = arith.constant 0 : index
    %c0_182 = arith.constant 0 : index
    %c2_183 = arith.constant 2 : index
    %c0_184 = arith.constant 0 : index
    %c0_185 = arith.constant 0 : index
    %81 = vector.load %arg1[%c0_180, %c0_181, %c0_182, %c2_183, %c0_184, %c0_185] : memref<1x2x2x11x11x3xf32, #tpu.memory_space<vmem>>, vector<1x1x1x8x8x3xf32>
    %82 = vector.shape_cast %81 : vector<1x1x1x8x8x3xf32> to vector<8x8x3xf32>
    %c0_186 = arith.constant 0 : index
    %c0_187 = arith.constant 0 : index
    %c1_188 = arith.constant 1 : index
    %c2_189 = arith.constant 2 : index
    %c0_190 = arith.constant 0 : index
    %c0_191 = arith.constant 0 : index
    %83 = vector.load %arg1[%c0_186, %c0_187, %c1_188, %c2_189, %c0_190, %c0_191] : memref<1x2x2x11x11x3xf32, #tpu.memory_space<vmem>>, vector<1x1x1x8x8x3xf32>
    %84 = vector.shape_cast %83 : vector<1x1x1x8x8x3xf32> to vector<8x8x3xf32>
    %c0_192 = arith.constant 0 : index
    %c0_193 = arith.constant 0 : index
    %c0_194 = arith.constant 0 : index
    %c2_195 = arith.constant 2 : index
    %c1_196 = arith.constant 1 : index
    %c0_197 = arith.constant 0 : index
    %85 = vector.load %arg1[%c0_192, %c0_193, %c0_194, %c2_195, %c1_196, %c0_197] : memref<1x2x2x11x11x3xf32, #tpu.memory_space<vmem>>, vector<1x1x1x8x8x3xf32>
    %86 = vector.shape_cast %85 : vector<1x1x1x8x8x3xf32> to vector<8x8x3xf32>
    %c0_198 = arith.constant 0 : index
    %c0_199 = arith.constant 0 : index
    %c1_200 = arith.constant 1 : index
    %c2_201 = arith.constant 2 : index
    %c1_202 = arith.constant 1 : index
    %c0_203 = arith.constant 0 : index
    %87 = vector.load %arg1[%c0_198, %c0_199, %c1_200, %c2_201, %c1_202, %c0_203] : memref<1x2x2x11x11x3xf32, #tpu.memory_space<vmem>>, vector<1x1x1x8x8x3xf32>
    %88 = vector.shape_cast %87 : vector<1x1x1x8x8x3xf32> to vector<8x8x3xf32>
    %c0_204 = arith.constant 0 : index
    %c0_205 = arith.constant 0 : index
    %c0_206 = arith.constant 0 : index
    %c2_207 = arith.constant 2 : index
    %c2_208 = arith.constant 2 : index
    %c0_209 = arith.constant 0 : index
    %89 = vector.load %arg1[%c0_204, %c0_205, %c0_206, %c2_207, %c2_208, %c0_209] : memref<1x2x2x11x11x3xf32, #tpu.memory_space<vmem>>, vector<1x1x1x8x8x3xf32>
    %90 = vector.shape_cast %89 : vector<1x1x1x8x8x3xf32> to vector<8x8x3xf32>
    %c0_210 = arith.constant 0 : index
    %c0_211 = arith.constant 0 : index
    %c1_212 = arith.constant 1 : index
    %c2_213 = arith.constant 2 : index
    %c2_214 = arith.constant 2 : index
    %c0_215 = arith.constant 0 : index
    %91 = vector.load %arg1[%c0_210, %c0_211, %c1_212, %c2_213, %c2_214, %c0_215] : memref<1x2x2x11x11x3xf32, #tpu.memory_space<vmem>>, vector<1x1x1x8x8x3xf32>
    %92 = vector.shape_cast %91 : vector<1x1x1x8x8x3xf32> to vector<8x8x3xf32>
    %c0_216 = arith.constant 0 : index
    %c0_217 = arith.constant 0 : index
    %c0_218 = arith.constant 0 : index
    %c2_219 = arith.constant 2 : index
    %c3_220 = arith.constant 3 : index
    %c0_221 = arith.constant 0 : index
    %93 = vector.load %arg1[%c0_216, %c0_217, %c0_218, %c2_219, %c3_220, %c0_221] : memref<1x2x2x11x11x3xf32, #tpu.memory_space<vmem>>, vector<1x1x1x8x8x3xf32>
    %94 = vector.shape_cast %93 : vector<1x1x1x8x8x3xf32> to vector<8x8x3xf32>
    %95 = tpu.concatenate %82, %84, %86, %88, %90, %92, %94 in 2 : vector<8x8x3xf32>, vector<8x8x3xf32>, vector<8x8x3xf32>, vector<8x8x3xf32>, vector<8x8x3xf32>, vector<8x8x3xf32>, vector<8x8x3xf32> -> vector<8x8x21xf32>
    %96 = vector.shape_cast %95 : vector<8x8x21xf32> to vector<64x21xf32>
    %c4 = arith.constant 4 : index
    %c0_222 = arith.constant 0 : index
    %c0_223 = arith.constant 0 : index
    %97 = vector.load %arg2[%c4, %c0_222, %c0_223] : memref<7x21x64xf32, #tpu.memory_space<vmem>>, vector<1x21x64xf32>
    %98 = vector.shape_cast %97 : vector<1x21x64xf32> to vector<21x64xf32>
    %cst_224 = arith.constant dense<0.000000e+00> : vector<64x64xf32>
    %99 = tpu.matmul %96, %98, %cst_224 {dimension_numbers = #tpu.dot_dimension_numbers<[1], [0], [0], [1], [0, 0, 1, 1], [], []>} : vector<64x21xf32>, vector<21x64xf32>, vector<64x64xf32> -> vector<64x64xf32>
    %100 = arith.addf %80, %99 : vector<64x64xf32>
    %c0_225 = arith.constant 0 : index
    %c1_226 = arith.constant 1 : index
    %c0_227 = arith.constant 0 : index
    %c2_228 = arith.constant 2 : index
    %c0_229 = arith.constant 0 : index
    %c0_230 = arith.constant 0 : index
    %101 = vector.load %arg1[%c0_225, %c1_226, %c0_227, %c2_228, %c0_229, %c0_230] : memref<1x2x2x11x11x3xf32, #tpu.memory_space<vmem>>, vector<1x1x1x8x8x3xf32>
    %102 = vector.shape_cast %101 : vector<1x1x1x8x8x3xf32> to vector<8x8x3xf32>
    %c0_231 = arith.constant 0 : index
    %c1_232 = arith.constant 1 : index
    %c1_233 = arith.constant 1 : index
    %c2_234 = arith.constant 2 : index
    %c0_235 = arith.constant 0 : index
    %c0_236 = arith.constant 0 : index
    %103 = vector.load %arg1[%c0_231, %c1_232, %c1_233, %c2_234, %c0_235, %c0_236] : memref<1x2x2x11x11x3xf32, #tpu.memory_space<vmem>>, vector<1x1x1x8x8x3xf32>
    %104 = vector.shape_cast %103 : vector<1x1x1x8x8x3xf32> to vector<8x8x3xf32>
    %c0_237 = arith.constant 0 : index
    %c1_238 = arith.constant 1 : index
    %c0_239 = arith.constant 0 : index
    %c2_240 = arith.constant 2 : index
    %c1_241 = arith.constant 1 : index
    %c0_242 = arith.constant 0 : index
    %105 = vector.load %arg1[%c0_237, %c1_238, %c0_239, %c2_240, %c1_241, %c0_242] : memref<1x2x2x11x11x3xf32, #tpu.memory_space<vmem>>, vector<1x1x1x8x8x3xf32>
    %106 = vector.shape_cast %105 : vector<1x1x1x8x8x3xf32> to vector<8x8x3xf32>
    %c0_243 = arith.constant 0 : index
    %c1_244 = arith.constant 1 : index
    %c1_245 = arith.constant 1 : index
    %c2_246 = arith.constant 2 : index
    %c1_247 = arith.constant 1 : index
    %c0_248 = arith.constant 0 : index
    %107 = vector.load %arg1[%c0_243, %c1_244, %c1_245, %c2_246, %c1_247, %c0_248] : memref<1x2x2x11x11x3xf32, #tpu.memory_space<vmem>>, vector<1x1x1x8x8x3xf32>
    %108 = vector.shape_cast %107 : vector<1x1x1x8x8x3xf32> to vector<8x8x3xf32>
    %c0_249 = arith.constant 0 : index
    %c1_250 = arith.constant 1 : index
    %c0_251 = arith.constant 0 : index
    %c2_252 = arith.constant 2 : index
    %c2_253 = arith.constant 2 : index
    %c0_254 = arith.constant 0 : index
    %109 = vector.load %arg1[%c0_249, %c1_250, %c0_251, %c2_252, %c2_253, %c0_254] : memref<1x2x2x11x11x3xf32, #tpu.memory_space<vmem>>, vector<1x1x1x8x8x3xf32>
    %110 = vector.shape_cast %109 : vector<1x1x1x8x8x3xf32> to vector<8x8x3xf32>
    %c0_255 = arith.constant 0 : index
    %c1_256 = arith.constant 1 : index
    %c1_257 = arith.constant 1 : index
    %c2_258 = arith.constant 2 : index
    %c2_259 = arith.constant 2 : index
    %c0_260 = arith.constant 0 : index
    %111 = vector.load %arg1[%c0_255, %c1_256, %c1_257, %c2_258, %c2_259, %c0_260] : memref<1x2x2x11x11x3xf32, #tpu.memory_space<vmem>>, vector<1x1x1x8x8x3xf32>
    %112 = vector.shape_cast %111 : vector<1x1x1x8x8x3xf32> to vector<8x8x3xf32>
    %c0_261 = arith.constant 0 : index
    %c1_262 = arith.constant 1 : index
    %c0_263 = arith.constant 0 : index
    %c2_264 = arith.constant 2 : index
    %c3_265 = arith.constant 3 : index
    %c0_266 = arith.constant 0 : index
    %113 = vector.load %arg1[%c0_261, %c1_262, %c0_263, %c2_264, %c3_265, %c0_266] : memref<1x2x2x11x11x3xf32, #tpu.memory_space<vmem>>, vector<1x1x1x8x8x3xf32>
    %114 = vector.shape_cast %113 : vector<1x1x1x8x8x3xf32> to vector<8x8x3xf32>
    %115 = tpu.concatenate %102, %104, %106, %108, %110, %112, %114 in 2 : vector<8x8x3xf32>, vector<8x8x3xf32>, vector<8x8x3xf32>, vector<8x8x3xf32>, vector<8x8x3xf32>, vector<8x8x3xf32>, vector<8x8x3xf32> -> vector<8x8x21xf32>
    %116 = vector.shape_cast %115 : vector<8x8x21xf32> to vector<64x21xf32>
    %c5 = arith.constant 5 : index
    %c0_267 = arith.constant 0 : index
    %c0_268 = arith.constant 0 : index
    %117 = vector.load %arg2[%c5, %c0_267, %c0_268] : memref<7x21x64xf32, #tpu.memory_space<vmem>>, vector<1x21x64xf32>
    %118 = vector.shape_cast %117 : vector<1x21x64xf32> to vector<21x64xf32>
    %cst_269 = arith.constant dense<0.000000e+00> : vector<64x64xf32>
    %119 = tpu.matmul %116, %118, %cst_269 {dimension_numbers = #tpu.dot_dimension_numbers<[1], [0], [0], [1], [0, 0, 1, 1], [], []>} : vector<64x21xf32>, vector<21x64xf32>, vector<64x64xf32> -> vector<64x64xf32>
    %120 = arith.addf %100, %119 : vector<64x64xf32>
    %c0_270 = arith.constant 0 : index
    %c0_271 = arith.constant 0 : index
    %c0_272 = arith.constant 0 : index
    %c3_273 = arith.constant 3 : index
    %c0_274 = arith.constant 0 : index
    %c0_275 = arith.constant 0 : index
    %121 = vector.load %arg1[%c0_270, %c0_271, %c0_272, %c3_273, %c0_274, %c0_275] : memref<1x2x2x11x11x3xf32, #tpu.memory_space<vmem>>, vector<1x1x1x8x8x3xf32>
    %122 = vector.shape_cast %121 : vector<1x1x1x8x8x3xf32> to vector<8x8x3xf32>
    %c0_276 = arith.constant 0 : index
    %c0_277 = arith.constant 0 : index
    %c1_278 = arith.constant 1 : index
    %c3_279 = arith.constant 3 : index
    %c0_280 = arith.constant 0 : index
    %c0_281 = arith.constant 0 : index
    %123 = vector.load %arg1[%c0_276, %c0_277, %c1_278, %c3_279, %c0_280, %c0_281] : memref<1x2x2x11x11x3xf32, #tpu.memory_space<vmem>>, vector<1x1x1x8x8x3xf32>
    %124 = vector.shape_cast %123 : vector<1x1x1x8x8x3xf32> to vector<8x8x3xf32>
    %c0_282 = arith.constant 0 : index
    %c0_283 = arith.constant 0 : index
    %c0_284 = arith.constant 0 : index
    %c3_285 = arith.constant 3 : index
    %c1_286 = arith.constant 1 : index
    %c0_287 = arith.constant 0 : index
    %125 = vector.load %arg1[%c0_282, %c0_283, %c0_284, %c3_285, %c1_286, %c0_287] : memref<1x2x2x11x11x3xf32, #tpu.memory_space<vmem>>, vector<1x1x1x8x8x3xf32>
    %126 = vector.shape_cast %125 : vector<1x1x1x8x8x3xf32> to vector<8x8x3xf32>
    %c0_288 = arith.constant 0 : index
    %c0_289 = arith.constant 0 : index
    %c1_290 = arith.constant 1 : index
    %c3_291 = arith.constant 3 : index
    %c1_292 = arith.constant 1 : index
    %c0_293 = arith.constant 0 : index
    %127 = vector.load %arg1[%c0_288, %c0_289, %c1_290, %c3_291, %c1_292, %c0_293] : memref<1x2x2x11x11x3xf32, #tpu.memory_space<vmem>>, vector<1x1x1x8x8x3xf32>
    %128 = vector.shape_cast %127 : vector<1x1x1x8x8x3xf32> to vector<8x8x3xf32>
    %c0_294 = arith.constant 0 : index
    %c0_295 = arith.constant 0 : index
    %c0_296 = arith.constant 0 : index
    %c3_297 = arith.constant 3 : index
    %c2_298 = arith.constant 2 : index
    %c0_299 = arith.constant 0 : index
    %129 = vector.load %arg1[%c0_294, %c0_295, %c0_296, %c3_297, %c2_298, %c0_299] : memref<1x2x2x11x11x3xf32, #tpu.memory_space<vmem>>, vector<1x1x1x8x8x3xf32>
    %130 = vector.shape_cast %129 : vector<1x1x1x8x8x3xf32> to vector<8x8x3xf32>
    %c0_300 = arith.constant 0 : index
    %c0_301 = arith.constant 0 : index
    %c1_302 = arith.constant 1 : index
    %c3_303 = arith.constant 3 : index
    %c2_304 = arith.constant 2 : index
    %c0_305 = arith.constant 0 : index
    %131 = vector.load %arg1[%c0_300, %c0_301, %c1_302, %c3_303, %c2_304, %c0_305] : memref<1x2x2x11x11x3xf32, #tpu.memory_space<vmem>>, vector<1x1x1x8x8x3xf32>
    %132 = vector.shape_cast %131 : vector<1x1x1x8x8x3xf32> to vector<8x8x3xf32>
    %c0_306 = arith.constant 0 : index
    %c0_307 = arith.constant 0 : index
    %c0_308 = arith.constant 0 : index
    %c3_309 = arith.constant 3 : index
    %c3_310 = arith.constant 3 : index
    %c0_311 = arith.constant 0 : index
    %133 = vector.load %arg1[%c0_306, %c0_307, %c0_308, %c3_309, %c3_310, %c0_311] : memref<1x2x2x11x11x3xf32, #tpu.memory_space<vmem>>, vector<1x1x1x8x8x3xf32>
    %134 = vector.shape_cast %133 : vector<1x1x1x8x8x3xf32> to vector<8x8x3xf32>
    %135 = tpu.concatenate %122, %124, %126, %128, %130, %132, %134 in 2 : vector<8x8x3xf32>, vector<8x8x3xf32>, vector<8x8x3xf32>, vector<8x8x3xf32>, vector<8x8x3xf32>, vector<8x8x3xf32>, vector<8x8x3xf32> -> vector<8x8x21xf32>
    %136 = vector.shape_cast %135 : vector<8x8x21xf32> to vector<64x21xf32>
    %c6 = arith.constant 6 : index
    %c0_312 = arith.constant 0 : index
    %c0_313 = arith.constant 0 : index
    %137 = vector.load %arg2[%c6, %c0_312, %c0_313] : memref<7x21x64xf32, #tpu.memory_space<vmem>>, vector<1x21x64xf32>
    %138 = vector.shape_cast %137 : vector<1x21x64xf32> to vector<21x64xf32>
    %cst_314 = arith.constant dense<0.000000e+00> : vector<64x64xf32>
    %139 = tpu.matmul %136, %138, %cst_314 {dimension_numbers = #tpu.dot_dimension_numbers<[1], [0], [0], [1], [0, 0, 1, 1], [], []>} : vector<64x21xf32>, vector<21x64xf32>, vector<64x64xf32> -> vector<64x64xf32>
    %140 = arith.addf %120, %139 : vector<64x64xf32>
    %141 = vector.shape_cast %140 : vector<64x64xf32> to vector<1x64x64xf32>
    %c0_315 = arith.constant 0 : index
    %c0_316 = arith.constant 0 : index
    %c0_317 = arith.constant 0 : index
    %142 = vector.load %arg3[%c0_315, %c0_316, %c0_317] : memref<1x64x64xf32, #tpu.memory_space<vmem>>, vector<1x64x64xf32>
    tpu.vector_store %arg3[%c0_315, %c0_316, %c0_317], %141 {strides = array<i32>} : memref<1x64x64xf32, #tpu.memory_space<vmem>>, vector<1x64x64xf32>,
    %cst_318 = arith.constant dense<0.000000e+00> : vector<64xf32>
    %143 = vector.multi_reduction <add>, %140, %cst_318 [0] : vector<64x64xf32> to vector<64xf32>
    %144 = vector.shape_cast %143 : vector<64xf32> to vector<1x64xf32>
    %145 = vector.shape_cast %144 : vector<1x64xf32> to vector<1x1x64xf32>
    %c0_319 = arith.constant 0 : index
    %c0_320 = arith.constant 0 : index
    %c0_321 = arith.constant 0 : index
    %146 = vector.load %arg4[%c0_319, %c0_320, %c0_321] : memref<1x1x64xf32, #tpu.memory_space<vmem>>, vector<1x1x64xf32>
    tpu.vector_store %arg4[%c0_319, %c0_320, %c0_321], %145 {strides = array<i32>} : memref<1x1x64xf32, #tpu.memory_space<vmem>>, vector<1x1x64xf32>,
    %147 = arith.mulf %140, %140 : vector<64x64xf32>
    %cst_322 = arith.constant dense<0.000000e+00> : vector<64xf32>
    %148 = vector.multi_reduction <add>, %147, %cst_322 [0] : vector<64x64xf32> to vector<64xf32>
    %149 = vector.shape_cast %148 : vector<64xf32> to vector<1x64xf32>
    %150 = vector.shape_cast %149 : vector<1x64xf32> to vector<1x1x64xf32>
    %c0_323 = arith.constant 0 : index
    %c0_324 = arith.constant 0 : index
    %c0_325 = arith.constant 0 : index
    %151 = vector.load %arg5[%c0_323, %c0_324, %c0_325] : memref<1x1x64xf32, #tpu.memory_space<vmem>>, vector<1x1x64xf32>
    tpu.vector_store %arg5[%c0_323, %c0_324, %c0_325], %150 {strides = array<i32>} : memref<1x1x64xf32, #tpu.memory_space<vmem>>, vector<1x1x64xf32>,
    return
  }
  func.func @transform_0(%arg0: i32) -> (i32, i32, i32, i32, i32, i32) {
    %c0_i32 = arith.constant 0 : i32
    %c0_i32_0 = arith.constant 0 : i32
    %c0_i32_1 = arith.constant 0 : i32
    %c0_i32_2 = arith.constant 0 : i32
    %c0_i32_3 = arith.constant 0 : i32
    %c0_i32_4 = arith.constant 0 : i32
    return %arg0, %c0_i32, %c0_i32_0, %c0_i32_1, %c0_i32_2, %c0_i32_3 : i32, i32, i32, i32, i32, i32
  }
  func.func @transform_1(%arg0: i32) -> (i32, i32, i32) {
    %c0_i32 = arith.constant 0 : i32
    %c0_i32_0 = arith.constant 0 : i32
    %c0_i32_1 = arith.constant 0 : i32
    %c0_i32_2 = arith.constant 0 : i32
    return %c0_i32, %c0_i32_0, %c0_i32_1 : i32, i32, i32
  }
  func.func @transform_2(%arg0: i32) -> (i32, i32, i32) {
    %c0_i32 = arith.constant 0 : i32
    %c0_i32_0 = arith.constant 0 : i32
    %c0_i32_1 = arith.constant 0 : i32
    return %arg0, %c0_i32, %c0_i32_0 : i32, i32, i32
  }
  func.func @transform_3(%arg0: i32) -> (i32, i32, i32) {
    %c0_i32 = arith.constant 0 : i32
    %c0_i32_0 = arith.constant 0 : i32
    %c0_i32_1 = arith.constant 0 : i32
    return %arg0, %c0_i32, %c0_i32_0 : i32, i32, i32
  }
  func.func @transform_4(%arg0: i32) -> (i32, i32, i32) {
    %c0_i32 = arith.constant 0 : i32
    %c0_i32_0 = arith.constant 0 : i32
    %c0_i32_1 = arith.constant 0 : i32
    return %arg0, %c0_i32, %c0_i32_0 : i32, i32, i32
  }
}

</mosaic_0001>

<bundles_post_ra>
// kernel: tpu_custom_call.1
= control target key start
LH: loop header
LB: loop body
LE: loop exit
PB: predicated region body
PF: predicated region fallthrough
CT: control target
= control target key end

     0   :  { %10 = vsyncpa [#allocation3], 0  ;;  %s6185_s0 = inlined_call_operand.vmem [shape: f32[2,2,2,11,11,3], index: 0, kind: input, shape index: {}]   ;;  %s6186_s1 = inlined_call_operand.vmem [shape: f32[7,21,64], index: 1, kind: input, shape index: {}]   ;;  %s6187_s2 = inlined_call_operand.hbm [shape: f32[2,64,64], index: 2, kind: output, shape index: {0}]   ;;  %s6188_s3 = inlined_call_operand.hbm [shape: f32[2,1,64], index: 3, kind: output, shape index: {1}]   ;;  %s6189_s4 = inlined_call_operand.hbm [shape: f32[2,1,64], index: 4, kind: output, shape index: {2}]  }
   0x1   :  { %12 = vsyncpa [#allocation3 + $0x1], 0 }
   0x2   :  { %13 = vsyncpa [#allocation5], 0 }
   0x3   :  { %15 = vsyncpa [#allocation5 + $0x1], 0  ;;  %s3752_s15 = smov 0   ;;  %s3754_s16 = smov 0  }
   0x4   :  { %s3756_s17 = smov 0   ;;  %s3758_s18 = smov 0  }
   0x5 LB: > { %s3773_s19 = sadd.s32 4294967295, %s3717_s18   ;;  %s3075_s20 = sadd.s32 4294967294, %s3717_s18   ;;  %s3717_s18 = sphi %s3758_s18, %s6473_s18   ;;  %s3713_s17 = sphi %s3756_s17, %s6472_s17   ;;  %s3709_s16 = sphi %s3754_s16, %s6471_s16   ;;  %s3705_s15 = sphi %s3752_s15, %s6470_s15  }
   0x6   : > { %s3777_s21 = sadd.s32 1, %s3717_s18   ;;  %s75_s22 = sadd.s32 1, %s3713_s17 }
   0x7   : > { %s72_s23 = ssub.s32 %s3717_s18, %s3777_s21  ;;  %p85_p0 = scmp.ne.s32.totalorder %s3713_s17, %s3709_s16 }
   0x8   : > { %p73_p1 = scmp.eq.s32.totalorder %s72_s23, 0  ;;  %p86_p2 = scmp.eq.s32.totalorder %s3773_s19, 1 }
   0x9   : > { %p91_p3 = scmp.ne.s32.totalorder %s3709_s16, %s3705_s15  ;;  %p92_p4 = scmp.eq.s32.totalorder %s3075_s20, 1 }
   0xa   : > { %s3790_s24 = scalar_select %p73_p1, %s3713_s17, %s75_s22  }
   0xb   : > { %p3792_p5 = por %p86_p2, %p85_p0  ;;  %p3796_p6 = por %p92_p4, %p91_p3 }
   0xc   : > { %p3078_p7 = scmp.ge.s32.totalorder %s3717_s18, 1  ;;  %p173_p8 = scmp.lt.s32.totalorder %s3717_s18, 3 }
   0xe   : > { %p174_p9 = pnand %p3078_p7, %p173_p8 }
  0x10   : > { %177 = sbr.rel (%p174_p9) target bundleno = 1201 (0x4b1), region = 28 }
  0x15   : > { %p207_p10 = scmp.lt.s32.totalorder %s3773_s19, 1  ;;  %s3719_s6 = smov 3   ;;  %vm845_vm0 = vcmask 1044480   ;;  %vm461_vm1 = vcmask 23552   ;;  %vm470_vm2 = vcmask 48128   ;;  %vm479_vm3 = vcmask 72704  }
  0x16   : > { %s3720_s7 = smov 6   ;;  %s3721_s8 = smov 9   ;;  %vm488_vm4 = vcmask 97280   ;;  %vm497_vm5 = vcmask 121856   ;;  %vm820_vm6 = vcmask 171008   ;;  %vm506_vm7 = vcmask 146432  }
  0x17   : > { %s208_s27 = scalar_select %p207_p10, %s3773_s19, 1  ;;  %vm2848_vm8 = vcmask 523264  }
  0x18   : > { %s3722_s9 = smov 12   ;;  %s3723_s10 = smov 15  }
  0x19   : > { %s3537_s28 = smul.u32 704, %s208_s27  ;;  %s3724_s11 = smov 18  }
  0x1a   : > { %s3615_s23 = scalar_lea.hbm %s6187_s2, 128 }
  0x1b   : > { %s3807_s5 = scalar_lea.vmem %s6185_s0, %s3537_s28 }
  0x1c   : > { %v3810_v0 = vld [vmem:[%s3807_s5 + $0xf0] sm:$0xff]  ;;  %v3822_v3 = vld [vmem:[%s3807_s5 + $0x100] sm:$0xff] }
  0x1d   : > { %v3813_v1 = vld [vmem:[%s3807_s5 + $0xd0] sm:$0xff]  ;;  %285 = vrot.lane.b32.xlu2 %v3810_v0, %s3719_s6  ;;  %v3825_v4 = vld [vmem:[%s3807_s5 + $0xe0] sm:$0xff] }
  0x1e   : > { %v3081_v2 = vld [vmem:[%s3807_s5 + $0xb0] sm:$0xff]  ;;  %281 = vrot.lane.b32.xlu1 %v3813_v1, %s3719_s6  ;;  %v3828_v5 = vld [vmem:[%s3807_s5 + $0xc0] sm:$0xff] }
  0x1f   : > { %277 = vrot.lane.b32.xlu0 %v3081_v2, %s3719_s6  ;;  %v229_v6 = vld [vmem:[%s3807_s5 + $0x1] sm:$0xff]  ;;  %v3841_v8 = vld [vmem:[%s3807_s5 + $0x110] sm:$0xff] }
  0x20   : > { %v3838_v7 = vld [vmem:[%s3807_s5 + $0x120] sm:$0xff]  ;;  %v3849_v9 = vld [vmem:[%s3807_s5 + $0x31] sm:$0xff] }
  0x21   : > { %v3852_v10 = vld [vmem:[%s3807_s5 + $0x21] sm:$0xff]  ;;  %v3855_v11 = vld [vmem:[%s3807_s5 + $0x11] sm:$0xff] }
  0x22   : > { %v3864_v12 = vld [vmem:[%s3807_s5 + $0x61] sm:$0xff]  ;;  %v3867_v13 = vld [vmem:[%s3807_s5 + $0x51] sm:$0xff] }
  0x23   : > { %v3870_v14 = vld [vmem:[%s3807_s5 + $0x41] sm:$0xff]  ;;  %v3089_v16 = vld [vmem:[%s3807_s5 + $0xb1] sm:$0xff] }
  0x24   : > { %v3879_v15 = vld [vmem:[%s3807_s5 + $0xc1] sm:$0xff]  ;;  %v3883_v17 = vld [vmem:[%s3807_s5 + $0x71] sm:$0xff] }
  0x25   : > { %287 = vrot.lane.b32.xlu2 %v3822_v3, %s3719_s6  ;;  %v3891_v18 = vld [vmem:[%s3807_s5 + $0xf1] sm:$0xff]  ;;  %v3894_v19 = vld [vmem:[%s3807_s5 + $0xe1] sm:$0xff] }
  0x26   : > { %283 = vrot.lane.b32.xlu1 %v3825_v4, %s3719_s6  ;;  %v3897_v20 = vld [vmem:[%s3807_s5 + $0xd1] sm:$0xff]  ;;  %v3906_v21 = vld [vmem:[%s3807_s5 + $0x121] sm:$0xff] }
  0x27   : > { %279 = vrot.lane.b32.xlu0 %v3828_v5, %s3719_s6  ;;  %v3909_v22 = vld [vmem:[%s3807_s5 + $0x111] sm:$0xff]  ;;  %v3912_v23 = vld [vmem:[%s3807_s5 + $0x101] sm:$0xff] }
  0x28   : > { %v3921_v24 = vld [vmem:[%s3807_s5 + $0x22] sm:$0xff]  ;;  %v3924_v25 = vld [vmem:[%s3807_s5 + $0x12] sm:$0xff] }
  0x29   : > { %6272 = vst [vmem:[#allocation9_spill] sm:$0xff] %v3924_v25  ;;  %v245_v26 = vld [vmem:[%s3807_s5 + $0x2] sm:$0xff]  ;;  %v3933_v27 = vld [vmem:[%s3807_s5 + $0x52] sm:$0xff] }
  0x2a   : > { %6273 = vst [vmem:[#allocation10_spill] sm:$0xff] %v3933_v27  ;;  %v3936_v28 = vld [vmem:[%s3807_s5 + $0x42] sm:$0xff]  ;;  %v3939_v29 = vld [vmem:[%s3807_s5 + $0x32] sm:$0xff] }
  0x2b   : > { %6274 = vst [vmem:[#allocation11_spill] sm:$0xff] %v3936_v28  ;;  %v3097_v30 = vld [vmem:[%s3807_s5 + $0xb2] sm:$0xff]  ;;  %v3952_v32 = vld [vmem:[%s3807_s5 + $0x62] sm:$0xff] }
  0x2c   : > { %v3949_v31 = vld [vmem:[%s3807_s5 + $0x72] sm:$0xff]  ;;  %6276 = vst [vmem:[#allocation13_spill] sm:$0xff] %v3952_v32  ;;  %v3960_v33 = vld [vmem:[%s3807_s5 + $0xe2] sm:$0xff] }
  0x2d   : > { %309 = vrot.lane.b32.xlu2 %v229_v6, %s3720_s7  ;;  %6275 = vst [vmem:[#allocation12_spill] sm:$0xff] %v3949_v31  ;;  %v3963_v34 = vld [vmem:[%s3807_s5 + $0xd2] sm:$0xff]  ;;  %v3966_v35 = vld [vmem:[%s3807_s5 + $0xc2] sm:$0xff] }
  0x2e   : > { %291 = vrot.lane.b32.xlu1 %v3838_v7, %s3719_s6  ;;  %6277 = vst [vmem:[#allocation14_spill] sm:$0xff] %v3960_v33  ;;  %v3977_v37 = vld [vmem:[%s3807_s5 + $0x112] sm:$0xff]  ;;  %v3980_v38 = vld [vmem:[%s3807_s5 + $0x102] sm:$0xff] }
  0x2f   : > { %289 = vrot.lane.b32.xlu0 %v3841_v8, %s3719_s6  ;;  %6278 = vst [vmem:[#allocation15_spill] sm:$0xff] %v3963_v34  ;;  %v3983_v39 = vld [vmem:[%s3807_s5 + $0xf2] sm:$0xff]  ;;  %v261_v42 = vld [vmem:[%s3807_s5 + $0x3] sm:$0xff] }
  0x30   : > { %6279 = vst [vmem:[#allocation16_spill] sm:$0xff] %v3966_v35  ;;  %v3994_v41 = vld [vmem:[%s3807_s5 + $0x13] sm:$0xff]  ;;  %v3998_v43 = vld [vmem:[%s3807_s5 + $0x122] sm:$0xff] }
  0x31   : > { %6280 = vst [vmem:[#allocation17_spill] sm:$0xff] %v3977_v37  ;;  %v4008_v45 = vld [vmem:[%s3807_s5 + $0x43] sm:$0xff]  ;;  %v4011_v46 = vld [vmem:[%s3807_s5 + $0x33] sm:$0xff] }
  0x32   : > { %6281 = vst [vmem:[#allocation18_spill] sm:$0xff] %v3980_v38  ;;  %v4014_v47 = vld [vmem:[%s3807_s5 + $0x23] sm:$0xff]  ;;  %v4029_v51 = vld [vmem:[%s3807_s5 + $0x73] sm:$0xff] }
  0x33   : > { %6282 = vst [vmem:[#allocation19_spill] sm:$0xff] %v3983_v39  ;;  %v4032_v52 = vld [vmem:[%s3807_s5 + $0x63] sm:$0xff]  ;;  %v4035_v53 = vld [vmem:[%s3807_s5 + $0x53] sm:$0xff] }
  0x34   : > { %6283 = vst [vmem:[#allocation20_spill] sm:$0xff] %v3994_v41  ;;  %v4050_v57 = vld [vmem:[%s3807_s5 + $0x230] sm:$0xff]  ;;  %v4053_v58 = vld [vmem:[%s3807_s5 + $0x220] sm:$0xff] }
  0x35   : > { %315 = vrot.lane.b32.xlu2 %v3849_v9, %s3720_s7  ;;  %6284 = vst [vmem:[#allocation21_spill] sm:$0xff] %v3998_v43  ;;  %v3113_v59 = vld [vmem:[%s3807_s5 + $0x210] sm:$0xff]  ;;  %v4068_v63 = vld [vmem:[%s3807_s5 + $0x260] sm:$0xff] }
  0x36   : > { %313 = vrot.lane.b32.xlu1 %v3852_v10, %s3720_s7  ;;  %6285 = vst [vmem:[#allocation22_spill] sm:$0xff] %v4008_v45  ;;  %v4071_v2 = vld [vmem:[%s3807_s5 + $0x250] sm:$0xff]  ;;  %v4074_v6 = vld [vmem:[%s3807_s5 + $0x240] sm:$0xff] }
  0x37   : > { %311 = vrot.lane.b32.xlu0 %v3855_v11, %s3720_s7  ;;  %6286 = vst [vmem:[#allocation23_spill] sm:$0xff] %v4011_v46 }
  0x38   : > { %6287 = vst [vmem:[#allocation24_spill] sm:$0xff] %v4014_v47 }
  0x39   : > { %6288 = vst [vmem:[#allocation25_spill] sm:$0xff] %v4029_v51 }
  0x3a   : > { %6289 = vst [vmem:[#allocation26_spill] sm:$0xff] %v4032_v52 }
  0x3b   : > { %6290 = vst [vmem:[#allocation27_spill] sm:$0xff] %v4035_v53 }
  0x3c   : > { %6292 = vst [vmem:[#allocation29_spill] sm:$0xff] %v4050_v57 }
  0x3d   : > { %321 = vrot.lane.b32.xlu2 %v3864_v12, %s3720_s7  ;;  %6293 = vst [vmem:[#allocation30_spill] sm:$0xff] %v4053_v58 }
  0x3e   : > { %319 = vrot.lane.b32.xlu1 %v3867_v13, %s3720_s7  ;;  %6296 = vst [vmem:[#allocation33_spill] sm:$0xff] %v4068_v63 }
  0x3f   : > { %317 = vrot.lane.b32.xlu0 %v3870_v14, %s3720_s7  ;;  %6297 = vst [vmem:[#allocation34_spill] sm:$0xff] %v4071_v2 }
  0x40   : > { %6298 = vst [vmem:[#allocation35_spill] sm:$0xff] %v4074_v6 }
  0x45   : > { %343 = vrot.lane.b32.xlu2 %v3879_v15, %s3721_s8 }
  0x46   : > { %341 = vrot.lane.b32.xlu1 %v3089_v16, %s3721_s8 }
  0x47   : > { %323 = vrot.lane.b32.xlu0 %v3883_v17, %s3720_s7 }
  0x4d   : > { %349 = vrot.lane.b32.xlu2 %v3891_v18, %s3721_s8 }
  0x4e   : > { %347 = vrot.lane.b32.xlu1 %v3894_v19, %s3721_s8 }
  0x4f   : > { %345 = vrot.lane.b32.xlu0 %v3897_v20, %s3721_s8 }
  0x55   : > { %355 = vrot.lane.b32.xlu2 %v3906_v21, %s3721_s8 }
  0x56   : > { %353 = vrot.lane.b32.xlu1 %v3909_v22, %s3721_s8 }
  0x57   : > { %351 = vrot.lane.b32.xlu0 %v3912_v23, %s3721_s8 }
  0x5d   : > { %377 = vrot.lane.b32.xlu2 %v3921_v24, %s3722_s9 }
  0x5e   : > { %375 = vrot.lane.b32.xlu1 %v3924_v25, %s3722_s9  ;;  %v4284_v25 = vld [vmem:[%s3807_s5 + $0x242] sm:$0xff] }
  0x5f   : > { %373 = vrot.lane.b32.xlu0 %v245_v26, %s3722_s9  ;;  %6330 = vst [vmem:[#allocation67_spill] sm:$0xff] %v4284_v25 }
  0x65   : > { %383 = vrot.lane.b32.xlu2 %v3933_v27, %s3722_s9  ;;  %v4265_v27 = vld [vmem:[%s3807_s5 + $0x1c2] sm:$0xff] }
  0x66   : > { %381 = vrot.lane.b32.xlu1 %v3936_v28, %s3722_s9  ;;  %v4248_v28 = vld [vmem:[%s3807_s5 + $0x192] sm:$0xff]  ;;  %6328 = vst [vmem:[#allocation65_spill] sm:$0xff] %v4265_v27 }
  0x67   : > { %379 = vrot.lane.b32.xlu0 %v3939_v29, %s3722_s9  ;;  %6326 = vst [vmem:[#allocation63_spill] sm:$0xff] %v4248_v28 }
  0x6d   : > { %405 = vrot.lane.b32.xlu2 %v3097_v30, %s3723_s10 }
  0x6e   : > { %387 = vrot.lane.b32.xlu1 %v3949_v31, %s3722_s9  ;;  %v4242_v31 = vld [vmem:[%s3807_s5 + $0x1b2] sm:$0xff] }
  0x6f   : > { %385 = vrot.lane.b32.xlu0 %v3952_v32, %s3722_s9  ;;  %6324 = vst [vmem:[#allocation61_spill] sm:$0xff] %v4242_v31 }
  0x75   : > { %411 = vrot.lane.b32.xlu2 %v3960_v33, %s3723_s10 }
  0x76   : > { %409 = vrot.lane.b32.xlu1 %v3963_v34, %s3723_s10 }
  0x77   : > { %407 = vrot.lane.b32.xlu0 %v3966_v35, %s3723_s10  ;;  %v3974_v36 = vpop.permute.xlu2 %285  ;;  %v4245_v35 = vld [vmem:[%s3807_s5 + $0x1a2] sm:$0xff] }
  0x78   : > { %6325 = vst [vmem:[#allocation62_spill] sm:$0xff] %v4245_v35 }
  0x7d   : > { %417 = vrot.lane.b32.xlu2 %v3977_v37, %s3723_s10 }
  0x7e   : > { %415 = vrot.lane.b32.xlu1 %v3980_v38, %s3723_s10 }
  0x7f   : > { %413 = vrot.lane.b32.xlu0 %v3983_v39, %s3723_s10  ;;  %v3991_v40 = vpop.permute.xlu2 %287 }
  0x85   : > { %439 = vrot.lane.b32.xlu2 %v3994_v41, %s3724_s11  ;;  %v4173_v41 = vld [vmem:[%s3807_s5 + $0x231] sm:$0xff] }
  0x86   : > { %437 = vrot.lane.b32.xlu1 %v261_v42, %s3724_s11  ;;  %v3121_v42 = vld [vmem:[%s3807_s5 + $0x161] sm:$0xff]  ;;  %6314 = vst [vmem:[#allocation51_spill] sm:$0xff] %v4173_v41 }
  0x87   : > { %419 = vrot.lane.b32.xlu0 %v3998_v43, %s3723_s10  ;;  %v4005_v44 = vpop.permute.xlu2 %309  ;;  %v4229_v43 = vld [vmem:[%s3807_s5 + $0x172] sm:$0xff] }
  0x88   : > { %6321 = vst [vmem:[#allocation58_spill] sm:$0xff] %v4229_v43 }
  0x8d   : > { %445 = vrot.lane.b32.xlu2 %v4008_v45, %s3724_s11  ;;  %v4167_v45 = vld [vmem:[%s3807_s5 + $0x251] sm:$0xff] }
  0x8e   : > { %443 = vrot.lane.b32.xlu1 %v4011_v46, %s3724_s11  ;;  %v4153_v46 = vld [vmem:[%s3807_s5 + $0x1d1] sm:$0xff]  ;;  %6312 = vst [vmem:[#allocation49_spill] sm:$0xff] %v4167_v45 }
  0x8f   : > { %441 = vrot.lane.b32.xlu0 %v4014_v47, %s3724_s11  ;;  %v4022_v48 = vpop.permute.xlu2 %315  ;;  %6310 = vst [vmem:[#allocation47_spill] sm:$0xff] %v4153_v46  ;;  %v4210_v47 = vld [vmem:[%s6186_s1 + $0x8] sm:$0xff] }
  0x90   : > { %v4024_v49 = vpop.permute.xlu1 %281 }
  0x91   : > { %v4026_v50 = vpop.permute.xlu0 %277 }
  0x95   : > { %451 = vrot.lane.b32.xlu2 %v4029_v51, %s3724_s11  ;;  %v4131_v51 = vld [vmem:[%s3807_s5 + $0x1b1] sm:$0xff] }
  0x96   : > { %449 = vrot.lane.b32.xlu1 %v4032_v52, %s3724_s11  ;;  %v4113_v52 = vld [vmem:[%s3807_s5 + $0x171] sm:$0xff]  ;;  %6307 = vst [vmem:[#allocation44_spill] sm:$0xff] %v4131_v51 }
  0x97   : > { %447 = vrot.lane.b32.xlu0 %v4035_v53, %s3724_s11  ;;  %v4043_v54 = vpop.permute.xlu2 %321  ;;  %6304 = vst [vmem:[#allocation41_spill] sm:$0xff] %v4113_v52  ;;  %v4170_v53 = vld [vmem:[%s3807_s5 + $0x241] sm:$0xff] }
  0x98   : > { %6291 = vst [vmem:[#allocation28_spill] sm:$0xff] %v4043_v54  ;;  %v4045_v55 = vpop.permute.xlu1 %283  ;;  %v4134_v54 = vld [vmem:[%s3807_s5 + $0x1a1] sm:$0xff] }
  0x99   : > { %v4047_v56 = vpop.permute.xlu0 %279  ;;  %6308 = vst [vmem:[#allocation45_spill] sm:$0xff] %v4134_v54 }
  0x9a   : > { %6313 = vst [vmem:[#allocation50_spill] sm:$0xff] %v4170_v53 }
  0x9d   : > { %588 = vrot.lane.b32.xlu2 %v4050_v57, %s3719_s6 }
  0x9e   : > { %586 = vrot.lane.b32.xlu1 %v4053_v58, %s3719_s6  ;;  %v4093_v58 = vld [vmem:[%s3807_s5 + $0x270] sm:$0xff] }
  0x9f   : > { %584 = vrot.lane.b32.xlu0 %v3113_v59, %s3719_s6  ;;  %v4061_v60 = vpop.permute.xlu2 %343  ;;  %v4090_v59 = vld [vmem:[%s3807_s5 + $0x280] sm:$0xff]  ;;  %6300 = vst [vmem:[#allocation37_spill] sm:$0xff] %v4093_v58 }
  0xa0   : > { %v4063_v61 = vpop.permute.xlu1 %291  ;;  %6299 = vst [vmem:[#allocation36_spill] sm:$0xff] %v4090_v59 }
  0xa1   : > { %6294 = vst [vmem:[#allocation31_spill] sm:$0xff] %v4063_v61  ;;  %v4065_v62 = vpop.permute.xlu0 %289  ;;  %v4110_v61 = vld [vmem:[%s3807_s5 + $0x181] sm:$0xff] }
  0xa2   : > { %6295 = vst [vmem:[#allocation32_spill] sm:$0xff] %v4065_v62  ;;  %v3129_v62 = vld [vmem:[%s3807_s5 + $0x211] sm:$0xff] }
  0xa3   : > { %6303 = vst [vmem:[#allocation40_spill] sm:$0xff] %v4110_v61 }
  0xa5   : > { %594 = vrot.lane.b32.xlu2 %v4068_v63, %s3719_s6 }
  0xa6   : > { %592 = vrot.lane.b32.xlu1 %v4071_v2, %s3719_s6 }
  0xa7   : > { %590 = vrot.lane.b32.xlu0 %v4074_v6, %s3719_s6  ;;  %v4082_v16 = vpop.permute.xlu2 %349  ;;  %v4107_v6 = vld [vmem:[%s3807_s5 + $0x191] sm:$0xff] }
  0xa8   : > { %v4084_v26 = vpop.permute.xlu1 %313  ;;  %6302 = vst [vmem:[#allocation39_spill] sm:$0xff] %v4107_v6 }
  0xa9   : > { %v4086_v30 = vpop.permute.xlu0 %311 }
  0xad   : > { %616 = vrot.lane.b32.xlu2 %v3121_v42, %s3720_s7 }
  0xae   : > { %598 = vrot.lane.b32.xlu1 %v4090_v59, %s3719_s6 }
  0xaf   : > { %596 = vrot.lane.b32.xlu0 %v4093_v58, %s3719_s6  ;;  %v4100_v2 = vpop.permute.xlu2 %355 }
  0xb0   : > { %6301 = vst [vmem:[#allocation38_spill] sm:$0xff] %v4100_v2  ;;  %v4102_v63 = vpop.permute.xlu1 %319  ;;  %v4128_v2 = vld [vmem:[%s3807_s5 + $0x1c1] sm:$0xff] }
  0xb1   : > { %v4104_v57 = vpop.permute.xlu0 %317  ;;  %6306 = vst [vmem:[#allocation43_spill] sm:$0xff] %v4128_v2 }
  0xb5   : > { %622 = vrot.lane.b32.xlu2 %v4107_v6, %s3720_s7 }
  0xb6   : > { %620 = vrot.lane.b32.xlu1 %v4110_v61, %s3720_s7 }
  0xb7   : > { %618 = vrot.lane.b32.xlu0 %v4113_v52, %s3720_s7  ;;  %v4121_v42 = vpop.permute.xlu2 %377 }
  0xb8   : > { %v4123_v59 = vpop.permute.xlu1 %341 }
  0xb9   : > { %v4125_v58 = vpop.permute.xlu0 %323 }
  0xba   : > { %6305 = vst [vmem:[#allocation42_spill] sm:$0xff] %v4125_v58  ;;  %v4149_v58 = vld [vmem:[%s3807_s5 + $0x221] sm:$0xff] }
  0xbb   : > { %6309 = vst [vmem:[#allocation46_spill] sm:$0xff] %v4149_v58 }
  0xbd   : > { %628 = vrot.lane.b32.xlu2 %v4128_v2, %s3720_s7 }
  0xbe   : > { %626 = vrot.lane.b32.xlu1 %v4131_v51, %s3720_s7 }
  0xbf   : > { %624 = vrot.lane.b32.xlu0 %v4134_v54, %s3720_s7  ;;  %v4142_v61 = vpop.permute.xlu2 %383 }
  0xc0   : > { %v4144_v6 = vpop.permute.xlu1 %347 }
  0xc1   : > { %v4146_v52 = vpop.permute.xlu0 %345 }
  0xc5   : > { %650 = vrot.lane.b32.xlu2 %v4149_v58, %s3721_s8 }
  0xc6   : > { %648 = vrot.lane.b32.xlu1 %v3129_v62, %s3721_s8 }
  0xc7   : > { %630 = vrot.lane.b32.xlu0 %v4153_v46, %s3720_s7  ;;  %v4160_v51 = vpop.permute.xlu2 %405 }
  0xc8   : > { %v4162_v2 = vpop.permute.xlu1 %353 }
  0xc9   : > { %6311 = vst [vmem:[#allocation48_spill] sm:$0xff] %v4162_v2  ;;  %v4164_v54 = vpop.permute.xlu0 %351  ;;  %v4188_v2 = vld [vmem:[%s6186_s1 + $0x10] sm:$0x1f] }
  0xca   : > { %3173 = vmatpush.msk.msra.mxu1 %vm845_vm0, %v4188_v2 }
  0xcc   : > { %931 = vmatpush.msra.mxu1 %v4210_v47 }
  0xcd   : > { %656 = vrot.lane.b32.xlu2 %v4167_v45, %s3721_s8  ;;  %v4191_v45 = vld [vmem:[%s3807_s5 + $0x281] sm:$0xff] }
  0xce   : > { %654 = vrot.lane.b32.xlu1 %v4170_v53, %s3721_s8  ;;  %6315 = vst [vmem:[#allocation52_spill] sm:$0xff] %v4191_v45  ;;  %v4194_v53 = vld [vmem:[%s3807_s5 + $0x271] sm:$0xff] }
  0xcf   : > { %652 = vrot.lane.b32.xlu0 %v4173_v41, %s3721_s8  ;;  %v4181_v62 = vpop.permute.xlu2 %411  ;;  %6316 = vst [vmem:[#allocation53_spill] sm:$0xff] %v4194_v53  ;;  %v4199_v41 = vld [vmem:[%s3807_s5 + $0x261] sm:$0xff] }
  0xd0   : > { %v4183_v58 = vpop.permute.xlu1 %375  ;;  %6317 = vst [vmem:[#allocation54_spill] sm:$0xff] %v4199_v41 }
  0xd1   : > { %v374_v46 = vpop.permute.xlu0 %373 }
  0xd5   : > { %662 = vrot.lane.b32.xlu2 %v4191_v45, %s3721_s8 }
  0xd6   : > { %660 = vrot.lane.b32.xlu1 %v4194_v53, %s3721_s8  ;;  %v4222_v53 = vld [vmem:[%s6186_s1] sm:$0xff] }
  0xd7   : > { %658 = vrot.lane.b32.xlu0 %v4199_v41, %s3721_s8  ;;  %v4212_v38 = vpop.permute.xlu2 %417  ;;  %6319 = vst [vmem:[#allocation56_spill] sm:$0xff] %v4222_v53  ;;  %932 = vmatpush.msra.mxu1 %v4222_v53  ;;  %v4226_v41 = vld [vmem:[%s3807_s5 + $0x182] sm:$0xff] }
  0xd8   : > { %6318 = vst [vmem:[#allocation55_spill] sm:$0xff] %v4212_v38  ;;  %v4214_v37 = vpop.permute.xlu1 %381  ;;  %v3137_v38 = vld [vmem:[%s3807_s5 + $0x162] sm:$0xff] }
  0xd9   : > { %v4217_v45 = vpop.permute.xlu0 %379  ;;  %6320 = vst [vmem:[#allocation57_spill] sm:$0xff] %v4226_v41 }
  0xdd   : > { %684 = vrot.lane.b32.xlu2 %v4226_v41, %s3722_s9 }
  0xde   : > { %682 = vrot.lane.b32.xlu1 %v4229_v43, %s3722_s9 }
  0xdf   : > { %680 = vrot.lane.b32.xlu0 %v3137_v38, %s3722_s9  ;;  %v440_v34 = vpop.permute.xlu2 %439 }
  0xe0   : > { %v4237_v33 = vpop.permute.xlu1 %387 }
  0xe1   : > { %6322 = vst [vmem:[#allocation59_spill] sm:$0xff] %v4237_v33  ;;  %v4239_v39 = vpop.permute.xlu0 %385  ;;  %v3145_v33 = vld [vmem:[%s3807_s5 + $0x212] sm:$0xff] }
  0xe2   : > { %6323 = vst [vmem:[#allocation60_spill] sm:$0xff] %v4239_v39  ;;  %v4262_v39 = vld [vmem:[%s3807_s5 + $0x1d2] sm:$0xff] }
  0xe3   : > { %6327 = vst [vmem:[#allocation64_spill] sm:$0xff] %v4262_v39 }
  0xe5   : > { %690 = vrot.lane.b32.xlu2 %v4242_v31, %s3722_s9  ;;  %v212_v31 = vld [vmem:[%s3807_s5] sm:$0xff] }
  0xe6   : > { %688 = vrot.lane.b32.xlu1 %v4245_v35, %s3722_s9  ;;  %v462_v35 = vsel %vm461_vm1, %v212_v31, %v4026_v50  ;;  %v4292_v31 = vld [vmem:[%s3807_s5 + $0x222] sm:$0xff]  ;;  %v4295_v50 = vld [vmem:[%s3807_s5 + $0x10] sm:$0xff] }
  0xe7   : > { %686 = vrot.lane.b32.xlu0 %v4248_v28, %s3722_s9  ;;  %v4256_v38 = vpop.permute.xlu2 %445  ;;  %6332 = vst [vmem:[#allocation69_spill] sm:$0xff] %v4295_v50 }
  0xe8   : > { %v4258_v43 = vpop.permute.xlu1 %409 }
  0xe9   : > { %v408_v41 = vpop.permute.xlu0 %407 }
  0xed   : > { %712 = vrot.lane.b32.xlu2 %v3145_v33, %s3723_s10  ;;  %v471_v33 = vsel %vm470_vm2, %v462_v35, %v4005_v44  ;;  %v463_v35 = vsel %vm461_vm1, %v4295_v50, %v4047_v56  ;;  %v4321_v56 = vld [vmem:[%s3807_s5 + $0x262] sm:$0xff] }
  0xee   : > { %694 = vrot.lane.b32.xlu1 %v4262_v39, %s3722_s9  ;;  %v4287_v39 = vld [vmem:[%s3807_s5 + $0x232] sm:$0xff]  ;;  %6333 = vst [vmem:[#allocation70_spill] sm:$0xff] %v4321_v56 }
  0xef   : > { %692 = vrot.lane.b32.xlu0 %v4265_v27, %s3722_s9  ;;  %v4275_v28 = vpop.permute.xlu2 %451  ;;  %6331 = vst [vmem:[#allocation68_spill] sm:$0xff] %v4287_v39  ;;  %v480_v27 = vsel %vm479_vm3, %v471_v33, %v4123_v59  ;;  %v472_v59 = vsel %vm470_vm2, %v463_v35, %v4086_v30 }
  0xf0   : > { %6329 = vst [vmem:[#allocation66_spill] sm:$0xff] %v4275_v28  ;;  %v4277_v32 = vpop.permute.xlu1 %415  ;;  %v489_v28 = vsel %vm488_vm4, %v480_v27, %v374_v46  ;;  %v481_v50 = vsel %vm479_vm3, %v472_v59, %v4061_v60  ;;  %v3153_v59 = vld [vmem:[%s3807_s5 + $0x163] sm:$0xff] }
  0xf1   : > { %v4279_v53 = vpop.permute.xlu0 %413  ;;  %v498_v46 = vsel %vm497_vm5, %v489_v28, %v4160_v51  ;;  %v4326_v28 = vld [vmem:[%s3807_s5 + $0x252] sm:$0xff]  ;;  %v490_v51 = vsel %vm488_vm4, %v481_v50, %v4183_v58 }
  0xf2   : > { %v499_v30 = vsel %vm497_vm5, %v490_v51, %v408_v41 }
  0xf3   : > { %v508_v58 = vsel %vm506_vm7, %v499_v30, %v440_v34  ;;  %v4359_v34 = vld [vmem:[%s3807_s5 + $0x30] sm:$0xff] }
  0xf5   : > { %718 = vrot.lane.b32.xlu2 %v4284_v25, %s3723_s10  ;;  %v4318_v25 = vld [vmem:[%s3807_s5 + $0x272] sm:$0xff] }
  0xf6   : > { %716 = vrot.lane.b32.xlu1 %v4287_v39, %s3723_s10 }
  0xf7   : > { %714 = vrot.lane.b32.xlu0 %v4292_v31, %s3723_s10  ;;  %v4307_v44 = vpop.permute.xlu2 %588 }
  0xf8   : > { %v438_v27 = vpop.permute.xlu1 %437 }
  0xf9   : > { %v4313_v33 = vpop.permute.xlu0 %419  ;;  %v507_v39 = vsel %vm506_vm7, %v498_v46, %v438_v27  ;;  %v4350_v46 = vld [vmem:[%s3807_s5 + $0x173] sm:$0xff] }
  0xfa   : > { %3174 = vmatmul.msk.f32.vlgmr.msra.gmra.mxu1 %vm820_vm6, %v507_v39  ;;  %v4336_v39 = vld [vmem:[%s3807_s5 + $0x20] sm:$0xff] }
  0xfb   : > { %v464_v41 = vsel %vm461_vm1, %v4336_v39, %v4024_v49 }
  0xfc   : > { %v473_v50 = vsel %vm470_vm2, %v464_v41, %v4084_v26 }
  0xfd   : > { %724 = vrot.lane.b32.xlu2 %v4318_v25, %s3723_s10  ;;  %v482_v51 = vsel %vm479_vm3, %v473_v50, %v4146_v52  ;;  %v465_v52 = vsel %vm461_vm1, %v4359_v34, %v4045_v55  ;;  %v4390_v55 = vld [vmem:[%s3807_s5 + $0x183] sm:$0xff] }
  0xfe   : > { %722 = vrot.lane.b32.xlu1 %v4321_v56, %s3723_s10  ;;  %v4356_v56 = vld [vmem:[%s3807_s5 + $0x282] sm:$0xff]  ;;  %v491_v49 = vsel %vm488_vm4, %v482_v51, %v4121_v42  ;;  %v474_v42 = vsel %vm470_vm2, %v465_v52, %v4022_v48  ;;  %v4385_v51 = vld [vmem:[%s3807_s5 + $0x193] sm:$0xff] }
  0xff   : > { %720 = vrot.lane.b32.xlu0 %v4326_v28, %s3723_s10  ;;  %v4340_v60 = vpop.permute.xlu2 %594  ;;  %v500_v26 = vsel %vm497_vm5, %v491_v49, %v4258_v43  ;;  %6335 = vst [vmem:[#allocation72_spill] sm:$0xff] %v4385_v51  ;;  %v483_v43 = vsel %vm479_vm3, %v474_v42, %v4144_v6  ;;  %v4393_v49 = vld [vmem:[%s3807_s5 + $0x40] sm:$0xff] }
 0x100   : > { %v444_v35 = vpop.permute.xlu1 %443  ;;  %v466_v48 = vsel %vm461_vm1, %v4393_v49, %v3974_v36  ;;  %v4422_v36 = vld [vmem:[%s3807_s5 + $0x1c3] sm:$0xff] }
 0x101   : > { %v442_v27 = vpop.permute.xlu0 %441  ;;  %6336 = vst [vmem:[#allocation73_spill] sm:$0xff] %v4422_v36 }
 0x102   : > { %3175 = vmatmul.msk.f32.gmra.mxu1 %vm820_vm6, %v508_v58  ;;  %v509_v50 = vsel %vm506_vm7, %v500_v26, %v442_v27  ;;  %v492_v27 = vsel %vm488_vm4, %v483_v43, %v4217_v45  ;;  %v475_v26 = vsel %vm470_vm2, %v466_v48, %v4104_v57  ;;  %v4419_v43 = vld [vmem:[%s3807_s5 + $0x1d3] sm:$0xff] }
 0x103   : > { %v501_v45 = vsel %vm497_vm5, %v492_v27, %v4181_v62 }
 0x104   : > { %v510_v42 = vsel %vm506_vm7, %v501_v45, %v444_v35  ;;  %v4438_v35 = vld [vmem:[%s3807_s5 + $0x50] sm:$0xff] }
 0x105   : > { %746 = vrot.lane.b32.xlu2 %v4350_v46, %s3724_s11 }
 0x106   : > { %744 = vrot.lane.b32.xlu1 %v3153_v59, %s3724_s11  ;;  %v4382_v59 = vld [vmem:[%s3807_s5 + $0x1a3] sm:$0xff] }
 0x107   : > { %726 = vrot.lane.b32.xlu0 %v4356_v56, %s3723_s10  ;;  %v4373_v30 = vpop.permute.xlu2 %616  ;;  %6334 = vst [vmem:[#allocation71_spill] sm:$0xff] %v4382_v59 }
 0x108   : > { %v4375_v58 = vpop.permute.xlu1 %449 }
 0x109   : > { %v448_v41 = vpop.permute.xlu0 %447 }
 0x10a   : > { %3176 = vmatmul.msk.f32.gmra.mxu1 %vm820_vm6, %v509_v50 }
 0x10d   : > { %752 = vrot.lane.b32.xlu2 %v4382_v59, %s3724_s11  ;;  %v4427_v59 = vld [vmem:[%s3807_s5 + $0x1b3] sm:$0xff] }
 0x10e   : > { %750 = vrot.lane.b32.xlu1 %v4385_v51, %s3724_s11  ;;  %v484_v51 = vsel %vm479_vm3, %v475_v26, %v4082_v16 }
 0x10f   : > { %748 = vrot.lane.b32.xlu0 %v4390_v55, %s3724_s11  ;;  %v4406_v6 = vpop.permute.xlu2 %622  ;;  %v493_v62 = vsel %vm488_vm4, %v484_v51, %v4214_v37 }
 0x110   : > { %v4408_v52 = vpop.permute.xlu1 %586  ;;  %v502_v57 = vsel %vm497_vm5, %v493_v62, %v4279_v53  ;;  %v467_v53 = vsel %vm461_vm1, %v4438_v35, %v3991_v40 }
 0x111   : > { %v4414_v50 = vpop.permute.xlu0 %584  ;;  %v511_v37 = vsel %vm506_vm7, %v502_v57, %v4256_v38  ;;  %v476_v51 = vsel %vm470_vm2, %v467_v53, %v4102_v63  ;;  %v3163_v57 = vld [vmem:[%s6186_s1 + $0x28] sm:$0x1f] }
 0x112   : > { %3177 = vmatmul.msk.f32.gmra.mxu1 %vm820_vm6, %v510_v42  ;;  %v485_v45 = vsel %vm479_vm3, %v476_v51, %v4164_v54  ;;  %v4528_v42 = vld [vmem:[%s3807_s5 + $0x81] sm:$0xff]  ;;  %3164 = vmatpush.msk.msra.mxu0 %vm845_vm0, %v3163_v57  ;;  %v3161_v51 = vld [vmem:[%s6186_s1 + $0x18] sm:$0xff] }
 0x113   : > { %v494_v38 = vsel %vm488_vm4, %v485_v45, %v4142_v61  ;;  %v4489_v61 = vld [vmem:[%s3807_s5 + $0x130] sm:$0xff]  ;;  %6338 = vst [vmem:[#allocation75_spill] sm:$0xff] %v4528_v42  ;;  %3528 = vmatpush.msk.msra.mxu3 %vm845_vm0, %v3163_v57 }
 0x114   : > { %v503_v40 = vsel %vm497_vm5, %v494_v38, %v4277_v32  ;;  %6337 = vst [vmem:[#allocation74_spill] sm:$0xff] %v4489_v61 }
 0x115   : > { %758 = vrot.lane.b32.xlu2 %v4419_v43, %s3724_s11 }
 0x116   : > { %756 = vrot.lane.b32.xlu1 %v4422_v36, %s3724_s11  ;;  %v6353_v36 = vld [vmem:[#allocation21_spill] sm:$0xff] }
 0x117   : > { %754 = vrot.lane.b32.xlu0 %v4427_v59, %s3724_s11  ;;  %v4442_v16 = vpop.permute.xlu2 %628 }
 0x118   : > { %v4444_v27 = vpop.permute.xlu1 %592 }
 0x119   : > { %v4446_v48 = vpop.permute.xlu0 %590 }
 0x11a   : > { %3178 = vmatmul.msk.f32.gmra.mxu1 %vm820_vm6, %v511_v37  ;;  %v4552_v37 = vld [vmem:[%s3807_s5 + $0x131] sm:$0xff] }
 0x11b   : > { %6339 = vst [vmem:[#allocation76_spill] sm:$0xff] %v4552_v37 }
 0x11d   : > { %1028 = vrot.lane.b32.xlu2 %v3825_v4, %s3719_s6  ;;  %v512_v4 = vsel %vm506_vm7, %v503_v40, %v448_v41 }
 0x11e   : > { %1026 = vrot.lane.b32.xlu1 %v3813_v1, %s3719_s6 }
 0x11f   : > { %1024 = vrot.lane.b32.xlu0 %v3828_v5, %s3719_s6  ;;  %v4468_v63 = vpop.permute.xlu2 %650 }
 0x120   : > { %v4470_v26 = vpop.permute.xlu1 %598 }
 0x121   : > { %v4472_v54 = vpop.permute.xlu0 %596 }
 0x122   : > { %3179 = vmatmul.msk.f32.gmra.mxu1 %vm820_vm6, %v512_v4 }
 0x125   : > { %1034 = vrot.lane.b32.xlu2 %v3841_v8, %s3719_s6 }
 0x126   : > { %1032 = vrot.lane.b32.xlu1 %v3822_v3, %s3719_s6 }
 0x127   : > { %1030 = vrot.lane.b32.xlu0 %v3810_v0, %s3719_s6  ;;  %v4482_v1 = vpop.permute.xlu2 %656 }
 0x128   : > { %v4484_v5 = vpop.permute.xlu1 %620 }
 0x129   : > { %v4486_v32 = vpop.permute.xlu0 %618 }
 0x12d   : > { %1056 = vrot.lane.b32.xlu2 %v3855_v11, %s3720_s7 }
 0x12e   : > { %1038 = vrot.lane.b32.xlu1 %v4489_v61, %s3719_s6  ;;  %v6349_v61 = vld [vmem:[#allocation19_spill] sm:$0xff] }
 0x12f   : > { %1036 = vrot.lane.b32.xlu0 %v3838_v7, %s3719_s6  ;;  %v4497_v3 = vpop.permute.xlu2 %662 }
 0x130   : > { %v4499_v0 = vpop.permute.xlu1 %626 }
 0x131   : > { %v4501_v8 = vpop.permute.xlu0 %624 }
 0x135   : > { %1062 = vrot.lane.b32.xlu2 %v3870_v14, %s3720_s7 }
 0x136   : > { %1060 = vrot.lane.b32.xlu1 %v3849_v9, %s3720_s7 }
 0x137   : > { %1058 = vrot.lane.b32.xlu0 %v3852_v10, %s3720_s7  ;;  %v4509_v11 = vpop.permute.xlu2 %684 }
 0x138   : > { %v4511_v41 = vpop.permute.xlu1 %648 }
 0x139   : > { %v4513_v7 = vpop.permute.xlu0 %630 }
 0x13d   : > { %1068 = vrot.lane.b32.xlu2 %v3883_v17, %s3720_s7 }
 0x13e   : > { %1066 = vrot.lane.b32.xlu1 %v3864_v12, %s3720_s7 }
 0x13f   : > { %1064 = vrot.lane.b32.xlu0 %v3867_v13, %s3720_s7  ;;  %v4521_v14 = vpop.permute.xlu2 %690 }
 0x140   : > { %v4523_v9 = vpop.permute.xlu1 %654 }
 0x141   : > { %v4525_v10 = vpop.permute.xlu0 %652 }
 0x145   : > { %1090 = vrot.lane.b32.xlu2 %v3897_v20, %s3721_s8 }
 0x146   : > { %1088 = vrot.lane.b32.xlu1 %v3879_v15, %s3721_s8 }
 0x147   : > { %1070 = vrot.lane.b32.xlu0 %v4528_v42, %s3720_s7  ;;  %v713_v12 = vpop.permute.xlu2 %712 }
 0x148   : > { %v4536_v13 = vpop.permute.xlu1 %660 }
 0x149   : > { %v4538_v17 = vpop.permute.xlu0 %658 }
 0x14d   : > { %1096 = vrot.lane.b32.xlu2 %v3912_v23, %s3721_s8 }
 0x14e   : > { %1094 = vrot.lane.b32.xlu1 %v3891_v18, %s3721_s8  ;;  %v3162_v18 = vld [vmem:[%s6186_s1 + $0x20] sm:$0xff] }
 0x14f   : > { %1092 = vrot.lane.b32.xlu0 %v3894_v19, %s3721_s8  ;;  %v4546_v20 = vpop.permute.xlu2 %718  ;;  %863 = vmatpush.msra.mxu0 %v3162_v18 }
 0x150   : > { %v683_v15 = vpop.permute.xlu1 %682  ;;  %3529 = vmatpush.msra.mxu3 %v3162_v18  ;;  %v4595_v18 = vld [vmem:[%s3807_s5 + $0x82] sm:$0xff] }
 0x151   : > { %v681_v62 = vpop.permute.xlu0 %680  ;;  %864 = vmatpush.msra.mxu0 %v3161_v51 }
 0x152   : > { %3530 = vmatpush.msra.mxu3 %v3161_v51  ;;  %v3105_v51 = vld [vmem:[%s3807_s5 + $0x160] sm:$0xff] }
 0x154   : > { %3531 = vmatpush.msk.msrb.mxu3 %vm845_vm0, %v4188_v2  ;;  %v6342_v2 = vld [vmem:[#allocation13_spill] sm:$0xff] }
 0x155   : > { %1102 = vrot.lane.b32.xlu2 %v4552_v37, %s3721_s8 }
 0x156   : > { %1100 = vrot.lane.b32.xlu1 %v3906_v21, %s3721_s8  ;;  %3532 = vmatpush.msrb.mxu3 %v4210_v47  ;;  %v6340_v21 = vld [vmem:[#allocation9_spill] sm:$0xff]  ;;  %v6343_v47 = vld [vmem:[#allocation10_spill] sm:$0xff] }
 0x157   : > { %1098 = vrot.lane.b32.xlu0 %v3909_v22, %s3721_s8  ;;  %v4565_v19 = vpop.permute.xlu2 %724  ;;  %v6341_v22 = vld [vmem:[#allocation56_spill] sm:$0xff]  ;;  %6345 = vst [vmem:[#allocation9_spill] sm:$0xff] %v4595_v18 }
 0x158   : > { %v4567_v23 = vpop.permute.xlu1 %688  ;;  %3533 = vmatpush.msrb.mxu3 %v6341_v22  ;;  %v6347_v22 = vld [vmem:[#allocation12_spill] sm:$0xff] }
 0x159   : > { %v4569_v53 = vpop.permute.xlu0 %686 }
 0x15d   : > { %1124 = vrot.lane.b32.xlu2 %v3939_v29, %s3722_s9  ;;  %v6344_v29 = vld [vmem:[#allocation11_spill] sm:$0xff] }
 0x15e   : > { %1122 = vrot.lane.b32.xlu1 %v3921_v24, %s3722_s9 }
 0x15f   : > { %1120 = vrot.lane.b32.xlu0 %v6340_v21, %s3722_s9  ;;  %v747_v45 = vpop.permute.xlu2 %746  ;;  %v6346_v21 = vld [vmem:[#allocation16_spill] sm:$0xff] }
 0x160   : > { %v4584_v38 = vpop.permute.xlu1 %694 }
 0x161   : > { %v693_v40 = vpop.permute.xlu0 %692 }
 0x165   : > { %1130 = vrot.lane.b32.xlu2 %v6342_v2, %s3722_s9  ;;  %v768_v2 = vsel %vm461_vm1, %v3105_v51, %v4414_v50  ;;  %v6350_v50 = vld [vmem:[#allocation14_spill] sm:$0xff]  ;;  %v6351_v51 = vld [vmem:[#allocation15_spill] sm:$0xff] }
 0x166   : > { %1128 = vrot.lane.b32.xlu1 %v6343_v47, %s3722_s9  ;;  %v776_v42 = vsel %vm470_vm2, %v768_v2, %v4373_v30 }
 0x167   : > { %1126 = vrot.lane.b32.xlu0 %v6344_v29, %s3722_s9  ;;  %v4592_v24 = vpop.permute.xlu2 %752 }
 0x168   : > { %v717_v4 = vpop.permute.xlu1 %716 }
 0x169   : > { %v715_v57 = vpop.permute.xlu0 %714 }
 0x16d   : > { %1152 = vrot.lane.b32.xlu2 %v6346_v21, %s3723_s10  ;;  %v784_v21 = vsel %vm479_vm3, %v776_v42, %v4511_v41 }
 0x16e   : > { %1134 = vrot.lane.b32.xlu1 %v4595_v18, %s3722_s9  ;;  %v4617_v18 = vld [vmem:[%s3807_s5 + $0x170] sm:$0xff] }
 0x16f   : > { %1132 = vrot.lane.b32.xlu0 %v6347_v22, %s3722_s9  ;;  %v4606_v47 = vpop.permute.xlu2 %758  ;;  %6348 = vst [vmem:[#allocation56_spill] sm:$0xff] %v4617_v18  ;;  %v792_v22 = vsel %vm488_vm4, %v784_v21, %v681_v62  ;;  %v769_v30 = vsel %vm461_vm1, %v4617_v18, %v4408_v52 }
 0x170   : > { %v4608_v29 = vpop.permute.xlu1 %722  ;;  %v800_v42 = vsel %vm497_vm5, %v792_v22, %v713_v12  ;;  %v777_v62 = vsel %vm470_vm2, %v769_v30, %v4486_v32  ;;  %v6354_v32 = vld [vmem:[#allocation17_spill] sm:$0xff]  ;;  %v6355_v22 = vld [vmem:[#allocation18_spill] sm:$0xff] }
 0x171   : > { %v4610_v37 = vpop.permute.xlu0 %720  ;;  %v4648_v12 = vld [vmem:[%s3807_s5 + $0x180] sm:$0xff] }
 0x175   : > { %1158 = vrot.lane.b32.xlu2 %v6349_v61, %s3723_s10 }
 0x176   : > { %1156 = vrot.lane.b32.xlu1 %v6350_v50, %s3723_s10  ;;  %v785_v50 = vsel %vm479_vm3, %v777_v62, %v4468_v63 }
 0x177   : > { %1154 = vrot.lane.b32.xlu0 %v6351_v51, %s3723_s10  ;;  %v4629_v2 = vpop.permute.xlu2 %1028  ;;  %v4639_v51 = vld [vmem:[%s3807_s5 + $0x1c0] sm:$0xff]  ;;  %v793_v52 = vsel %vm488_vm4, %v785_v50, %v683_v15  ;;  %v4671_v50 = vld [vmem:[%s3807_s5 + $0x132] sm:$0xff] }
 0x178   : > { %v745_v41 = vpop.permute.xlu1 %744  ;;  %6352 = vst [vmem:[#allocation13_spill] sm:$0xff] %v4639_v51  ;;  %v801_v18 = vsel %vm497_vm5, %v793_v52, %v715_v57  ;;  %v774_v63 = vsel %vm461_vm1, %v4639_v51, %v4472_v54  ;;  %v6358_v52 = vld [vmem:[#allocation24_spill] sm:$0xff] }
 0x179   : > { %v727_v61 = vpop.permute.xlu0 %726  ;;  %v808_v21 = vsel %vm506_vm7, %v800_v42, %v745_v41  ;;  %v770_v41 = vsel %vm461_vm1, %v4648_v12, %v4307_v44  ;;  %v782_v62 = vsel %vm470_vm2, %v774_v63, %v4442_v16  ;;  %v3289_v51 = vld [vmem:[%s3807_s5 + $0x1e2] sm:$0xff] }
 0x17a   : > { %3165 = vmatmul.msk.f32.vlgmr.msra.gmra.mxu0 %vm820_vm6, %v808_v21  ;;  %v778_v42 = vsel %vm470_vm2, %v770_v41, %v4484_v5  ;;  %v790_v21 = vsel %vm479_vm3, %v782_v62, %v4536_v13  ;;  %v6359_v5 = vld [vmem:[#allocation20_spill] sm:$0xff] }
 0x17b   : > { %v786_v54 = vsel %vm479_vm3, %v778_v42, %v4525_v10  ;;  %v798_v44 = vsel %vm488_vm4, %v790_v21, %v693_v40  ;;  %v4717_v42 = vld [vmem:[%s3807_s5 + $0x1a0] sm:$0xff] }
 0x17c   : > { %v794_v16 = vsel %vm488_vm4, %v786_v54, %v4509_v11  ;;  %v806_v11 = vsel %vm497_vm5, %v798_v44, %v4565_v19  ;;  %6360 = vst [vmem:[#allocation16_spill] sm:$0xff] %v4717_v42  ;;  %v6364_v21 = vld [vmem:[#allocation32_spill] sm:$0xff] }
 0x17d   : > { %1164 = vrot.lane.b32.xlu2 %v6353_v36, %s3723_s10  ;;  %v809_v36 = vsel %vm506_vm7, %v801_v18, %v747_v45  ;;  %v4674_v45 = vld [vmem:[%s3807_s5 + $0x190] sm:$0xff]  ;;  %v802_v40 = vsel %vm497_vm5, %v794_v16, %v717_v4 }
 0x17e   : > { %1162 = vrot.lane.b32.xlu1 %v6354_v32, %s3723_s10  ;;  %6356 = vst [vmem:[#allocation10_spill] sm:$0xff] %v4674_v45  ;;  %v4677_v18 = vld [vmem:[%s3807_s5 + $0x1d0] sm:$0xff]  ;;  %v771_v10 = vsel %vm461_vm1, %v4674_v45, %v4446_v48 }
 0x17f   : > { %1160 = vrot.lane.b32.xlu0 %v6355_v22, %s3723_s10  ;;  %v4655_v15 = vpop.permute.xlu2 %1034  ;;  %6357 = vst [vmem:[#allocation11_spill] sm:$0xff] %v4677_v18  ;;  %v775_v13 = vsel %vm461_vm1, %v4677_v18, %v4470_v26  ;;  %v779_v26 = vsel %vm470_vm2, %v771_v10, %v4406_v6  ;;  %v6361_v6 = vld [vmem:[#allocation27_spill] sm:$0xff] }
 0x180   : > { %v751_v57 = vpop.permute.xlu1 %750  ;;  %v783_v63 = vsel %vm470_vm2, %v775_v13, %v4513_v7  ;;  %v787_v4 = vsel %vm479_vm3, %v779_v26, %v4523_v9  ;;  %v4714_v7 = vld [vmem:[%s3807_s5 + $0x60] sm:$0xff]  ;;  %v6362_v9 = vld [vmem:[#allocation22_spill] sm:$0xff] }
 0x181   : > { %v749_v30 = vpop.permute.xlu0 %748  ;;  %v791_v19 = vsel %vm479_vm3, %v783_v63, %v4497_v3  ;;  %v6363_v3 = vld [vmem:[#allocation23_spill] sm:$0xff]  ;;  %v6369_v26 = vld [vmem:[#allocation25_spill] sm:$0xff] }
 0x182   : > { %3166 = vmatmul.msk.f32.gmra.mxu0 %vm820_vm6, %v809_v36  ;;  %v810_v48 = vsel %vm506_vm7, %v802_v40, %v749_v30  ;;  %v795_v30 = vsel %vm488_vm4, %v787_v4, %v4569_v53  ;;  %v799_v62 = vsel %vm488_vm4, %v791_v19, %v4584_v38  ;;  %v468_v53 = vsel %vm461_vm1, %v4714_v7, %v6364_v21  ;;  %v4761_v63 = vld [vmem:[%s3807_s5 + $0x70] sm:$0xff] }
 0x183   : > { %v807_v54 = vsel %vm497_vm5, %v799_v62, %v727_v61  ;;  %v772_v38 = vsel %vm461_vm1, %v4717_v42, %v4444_v27  ;;  %v6365_v27 = vld [vmem:[#allocation28_spill] sm:$0xff]  ;;  %v4774_v4 = vld [vmem:[%s3807_s5 + $0x1b0] sm:$0xff] }
 0x184   : > { %v815_v13 = vsel %vm506_vm7, %v807_v54, %v4606_v47  ;;  %v477_v40 = vsel %vm470_vm2, %v468_v53, %v6365_v27  ;;  %6370 = vst [vmem:[#allocation19_spill] sm:$0xff] %v4774_v4  ;;  %v6372_v19 = vld [vmem:[#allocation31_spill] sm:$0xff] }
 0x185   : > { %1186 = vrot.lane.b32.xlu2 %v6358_v52, %s3724_s11  ;;  %v803_v52 = vsel %vm497_vm5, %v795_v30, %v4546_v20  ;;  %v6367_v20 = vld [vmem:[#allocation48_spill] sm:$0xff]  ;;  %v469_v30 = vsel %vm461_vm1, %v4761_v63, %v6372_v19  ;;  %v6373_v62 = vld [vmem:[#allocation55_spill] sm:$0xff] }
 0x186   : > { %1184 = vrot.lane.b32.xlu1 %v6359_v5, %s3724_s11  ;;  %v780_v5 = vsel %vm470_vm2, %v772_v38, %v4501_v8  ;;  %v811_v10 = vsel %vm506_vm7, %v803_v52, %v751_v57  ;;  %v486_v8 = vsel %vm479_vm3, %v477_v40, %v6367_v20  ;;  %v6368_v57 = vld [vmem:[#allocation60_spill] sm:$0xff]  ;;  %v773_v38 = vsel %vm461_vm1, %v4774_v4, %v4340_v60  ;;  %v6377_v60 = vld [vmem:[#allocation35_spill] sm:$0xff]  ;;  %v6378_v40 = vld [vmem:[#allocation29_spill] sm:$0xff] }
 0x187   : > { %1166 = vrot.lane.b32.xlu0 %v4671_v50, %s3723_s10  ;;  %v4695_v32 = vpop.permute.xlu2 %1056  ;;  %v495_v47 = vsel %vm488_vm4, %v486_v8, %v6368_v57  ;;  %v781_v52 = vsel %vm470_vm2, %v773_v38, %v4499_v0  ;;  %v6379_v20 = vld [vmem:[#allocation30_spill] sm:$0xff]  ;;  %v6389_v38 = vld [vmem:[#allocation40_spill] sm:$0xff] }
 0x188   : > { %v757_v22 = vpop.permute.xlu1 %756  ;;  %v4845_v19 = vld [vmem:[%s3807_s5 + $0x290] sm:$0xff] }
 0x189   : > { %v4701_v36 = vpop.permute.xlu0 %754  ;;  %v814_v41 = vsel %vm506_vm7, %v806_v11, %v757_v22  ;;  %v4754_v22 = vld [vmem:[%s3807_s5 + $0x83] sm:$0xff]  ;;  %v788_v11 = vsel %vm479_vm3, %v780_v5, %v4482_v1  ;;  %v6371_v1 = vld [vmem:[#allocation26_spill] sm:$0xff]  ;;  %6384 = vst [vmem:[#allocation14_spill] sm:$0xff] %v4845_v19 }
 0x18a   : > { %3167 = vmatmul.msk.f32.gmra.mxu0 %vm820_vm6, %v810_v48  ;;  %3171 = vmatmul.msk.f32.vlgmr.msra.gmra.mxu3 %vm820_vm6, %v814_v41  ;;  %6366 = vst [vmem:[#allocation12_spill] sm:$0xff] %v4754_v22  ;;  %v796_v48 = vsel %vm488_vm4, %v788_v11, %v4567_v23  ;;  %v504_v23 = vsel %vm497_vm5, %v495_v47, %v6373_v62  ;;  %v6375_v5 = vld [vmem:[#allocation38_spill] sm:$0xff]  ;;  %v6386_v62 = vld [vmem:[#allocation36_spill] sm:$0xff] }
 0x18b   : > { %v804_v41 = vsel %vm497_vm5, %v796_v48, %v4610_v37  ;;  %v6380_v47 = vld [vmem:[#allocation66_spill] sm:$0xff] }
 0x18c   : > { %v812_v53 = vsel %vm506_vm7, %v804_v41, %v4592_v24  ;;  %v6383_v41 = vld [vmem:[#allocation34_spill] sm:$0xff] }
 0x18d   : > { %1192 = vrot.lane.b32.xlu2 %v6361_v6, %s3724_s11  ;;  %v6374_v6 = vld [vmem:[#allocation42_spill] sm:$0xff] }
 0x18e   : > { %1190 = vrot.lane.b32.xlu1 %v6362_v9, %s3724_s11  ;;  %v478_v9 = vsel %vm470_vm2, %v469_v30, %v6374_v6  ;;  %v6385_v30 = vld [vmem:[#allocation41_spill] sm:$0xff] }
 0x18f   : > { %1188 = vrot.lane.b32.xlu0 %v6363_v3, %s3724_s11  ;;  %v4736_v61 = vpop.permute.xlu2 %1062  ;;  %v513_v3 = vsel %vm506_vm7, %v504_v23, %v4375_v58  ;;  %v789_v58 = vsel %vm479_vm3, %v781_v52, %v4538_v17 }
 0x190   : > { %v4738_v44 = vpop.permute.xlu1 %1026  ;;  %v797_v0 = vsel %vm488_vm4, %v789_v58, %v4521_v14  ;;  %v6381_v14 = vld [vmem:[#allocation37_spill] sm:$0xff]  ;;  %v6390_v58 = vld [vmem:[#allocation47_spill] sm:$0xff] }
 0x191   : > { %v4744_v16 = vpop.permute.xlu0 %1024  ;;  %v805_v17 = vsel %vm497_vm5, %v797_v0, %v4608_v29  ;;  %v6382_v29 = vld [vmem:[#allocation33_spill] sm:$0xff] }
 0x192   : > { %3168 = vmatmul.msk.f32.gmra.mxu0 %vm820_vm6, %v811_v10  ;;  %3172 = vmatmul.msk.f32.gmra.mxu3 %vm820_vm6, %v815_v13  ;;  %v487_v10 = vsel %vm479_vm3, %v478_v9, %v6375_v5  ;;  %v6376_v13 = vld [vmem:[#allocation59_spill] sm:$0xff]  ;;  %v813_v57 = vsel %vm506_vm7, %v805_v17, %v4701_v36  ;;  %v3273_v0 = vld [vmem:[%s3807_s5 + $0x1e1] sm:$0xff]  ;;  %v6394_v17 = vld [vmem:[#allocation46_spill] sm:$0xff] }
 0x193   : > { %v496_v24 = vsel %vm488_vm4, %v487_v10, %v6376_v13  ;;  %v6391_v13 = vld [vmem:[#allocation43_spill] sm:$0xff] }
 0x194   : > { %v505_v27 = vsel %vm497_vm5, %v496_v24, %v4313_v33  ;;  %v6392_v24 = vld [vmem:[#allocation44_spill] sm:$0xff] }
 0x195   : > { %1198 = vrot.lane.b32.xlu2 %v4754_v22, %s3724_s11  ;;  %v514_v48 = vsel %vm506_vm7, %v505_v27, %v6380_v47 }
 0x196   : > { %1196 = vrot.lane.b32.xlu1 %v6369_v26, %s3724_s11 }
 0x197   : > { %1194 = vrot.lane.b32.xlu0 %v6371_v1, %s3724_s11  ;;  %v4783_v54 = vpop.permute.xlu2 %1068 }
 0x198   : > { %v4785_v37 = vpop.permute.xlu1 %1032 }
 0x199   : > { %v4791_v21 = vpop.permute.xlu0 %1030 }
 0x19a   : > { %3169 = vmatmul.msk.f32.gmra.mxu0 %vm820_vm6, %v812_v53  ;;  %3180 = vmatmul.msk.f32.vlgmr.msrb.gmra.mxu3 %vm820_vm6, %v513_v3  ;;  %v6387_v3 = vld [vmem:[#allocation45_spill] sm:$0xff]  ;;  %v6388_v53 = vld [vmem:[#allocation39_spill] sm:$0xff] }
 0x19d   : > { %1406 = vrot.lane.b32.xlu2 %v6377_v60, %s3719_s6 }
 0x19e   : > { %1404 = vrot.lane.b32.xlu1 %v6378_v40, %s3719_s6 }
 0x19f   : > { %1402 = vrot.lane.b32.xlu0 %v6379_v20, %s3719_s6  ;;  %v4820_v8 = vpop.permute.xlu2 %1090  ;;  %v6393_v20 = vld [vmem:[#allocation51_spill] sm:$0xff] }
 0x1a0   : > { %v4822_v11 = vpop.permute.xlu1 %1038 }
 0x1a1   : > { %v4824_v33 = vpop.permute.xlu0 %1036 }
 0x1a2   : > { %3170 = vmatmul.msk.f32.gmra.mxu0 %vm820_vm6, %v813_v57  ;;  %3181 = vmatmul.msk.f32.gmra.mxu3 %vm820_vm6, %v514_v48 }
 0x1a5   : > { %1412 = vrot.lane.b32.xlu2 %v6381_v14, %s3719_s6  ;;  %v6395_v14 = vld [vmem:[#allocation54_spill] sm:$0xff] }
 0x1a6   : > { %1410 = vrot.lane.b32.xlu1 %v6382_v29, %s3719_s6  ;;  %v6396_v29 = vld [vmem:[#allocation49_spill] sm:$0xff] }
 0x1a7   : > { %1408 = vrot.lane.b32.xlu0 %v6383_v41, %s3719_s6  ;;  %v4838_v26 = vpop.permute.xlu2 %1096  ;;  %v6397_v41 = vld [vmem:[#allocation50_spill] sm:$0xff] }
 0x1a8   : > { %v4840_v1 = vpop.permute.xlu1 %1060 }
 0x1a9   : > { %v4842_v36 = vpop.permute.xlu0 %1058 }
 0x1ad   : > { %1434 = vrot.lane.b32.xlu2 %v6385_v30, %s3720_s7 }
 0x1ae   : > { %1416 = vrot.lane.b32.xlu1 %v4845_v19, %s3719_s6  ;;  %v6404_v19 = vld [vmem:[#allocation61_spill] sm:$0xff] }
 0x1af   : > { %1414 = vrot.lane.b32.xlu0 %v6386_v62, %s3719_s6  ;;  %v4853_v23 = vpop.permute.xlu2 %1102 }
 0x1b0   : > { %v4855_v6 = vpop.permute.xlu1 %1066 }
 0x1b1   : > { %v4857_v9 = vpop.permute.xlu0 %1064 }
 0x1b5   : > { %1440 = vrot.lane.b32.xlu2 %v6387_v3, %s3720_s7 }
 0x1b6   : > { %1438 = vrot.lane.b32.xlu1 %v6388_v53, %s3720_s7  ;;  %v3240_v53 = vld [vmem:[%s6186_s1 + $0x40] sm:$0x1f] }
 0x1b7   : > { %1436 = vrot.lane.b32.xlu0 %v6389_v38, %s3720_s7  ;;  %v4865_v52 = vpop.permute.xlu2 %1124  ;;  %v3281_v38 = vld [vmem:[%s3807_s5 + $0x291] sm:$0xff]  ;;  %3241 = vmatpush.msk.msra.mxu2 %vm845_vm0, %v3240_v53 }
 0x1b8   : > { %v1089_v5 = vpop.permute.xlu1 %1088  ;;  %3534 = vmatpush.msk.msra.mxu3 %vm845_vm0, %v3240_v53  ;;  %v6402_v53 = vld [vmem:[#allocation58_spill] sm:$0xff] }
 0x1b9   : > { %v4867_v10 = vpop.permute.xlu0 %1070 }
 0x1bd   : > { %1446 = vrot.lane.b32.xlu2 %v6390_v58, %s3720_s7  ;;  %v6398_v58 = vld [vmem:[#allocation52_spill] sm:$0xff] }
 0x1be   : > { %1444 = vrot.lane.b32.xlu1 %v6391_v13, %s3720_s7  ;;  %v6399_v13 = vld [vmem:[#allocation53_spill] sm:$0xff] }
 0x1bf   : > { %1442 = vrot.lane.b32.xlu0 %v6392_v24, %s3720_s7  ;;  %v4875_v27 = vpop.permute.xlu2 %1130  ;;  %v3239_v24 = vld [vmem:[%s6186_s1 + $0x38] sm:$0xff] }
 0x1c0   : > { %v4877_v60 = vpop.permute.xlu1 %1094  ;;  %1301 = vmatpush.msra.mxu2 %v3239_v24  ;;  %3535 = vmatpush.msra.mxu3 %v3239_v24  ;;  %v6403_v24 = vld [vmem:[#allocation65_spill] sm:$0xff] }
 0x1c1   : > { %v4879_v40 = vpop.permute.xlu0 %1092 }
 0x1c5   : > { %1468 = vrot.lane.b32.xlu2 %v6393_v20, %s3721_s8 }
 0x1c6   : > { %1466 = vrot.lane.b32.xlu1 %v6394_v17, %s3721_s8 }
 0x1c7   : > { %1448 = vrot.lane.b32.xlu0 %v3273_v0, %s3720_s7  ;;  %v1153_v57 = vpop.permute.xlu2 %1152 }
 0x1c8   : > { %v4887_v47 = vpop.permute.xlu1 %1100 }
 0x1c9   : > { %v4889_v48 = vpop.permute.xlu0 %1098 }
 0x1cd   : > { %1474 = vrot.lane.b32.xlu2 %v6395_v14, %s3721_s8  ;;  %v3238_v14 = vld [vmem:[%s6186_s1 + $0x30] sm:$0xff] }
 0x1ce   : > { %1472 = vrot.lane.b32.xlu1 %v6396_v29, %s3721_s8  ;;  %1302 = vmatpush.msra.mxu2 %v3238_v14  ;;  %v6400_v29 = vld [vmem:[#allocation63_spill] sm:$0xff] }
 0x1cf   : > { %1470 = vrot.lane.b32.xlu0 %v6397_v41, %s3721_s8  ;;  %v4897_v30 = vpop.permute.xlu2 %1158  ;;  %3536 = vmatpush.msra.mxu3 %v3238_v14  ;;  %v6401_v41 = vld [vmem:[#allocation57_spill] sm:$0xff]  ;;  %v6405_v14 = vld [vmem:[#allocation62_spill] sm:$0xff] }
 0x1d0   : > { %v1123_v62 = vpop.permute.xlu1 %1122 }
 0x1d1   : > { %v1121_v3 = vpop.permute.xlu0 %1120 }
 0x1d5   : > { %1480 = vrot.lane.b32.xlu2 %v3281_v38, %s3721_s8 }
 0x1d6   : > { %1478 = vrot.lane.b32.xlu1 %v6398_v58, %s3721_s8 }
 0x1d7   : > { %1476 = vrot.lane.b32.xlu0 %v6399_v13, %s3721_s8  ;;  %v4913_v0 = vpop.permute.xlu2 %1164 }
 0x1d8   : > { %v4915_v20 = vpop.permute.xlu1 %1128 }
 0x1d9   : > { %v4917_v17 = vpop.permute.xlu0 %1126 }
 0x1dd   : > { %1502 = vrot.lane.b32.xlu2 %v6400_v29, %s3722_s9 }
 0x1de   : > { %1500 = vrot.lane.b32.xlu1 %v6401_v41, %s3722_s9 }
 0x1df   : > { %1498 = vrot.lane.b32.xlu0 %v6402_v53, %s3722_s9  ;;  %v1187_v38 = vpop.permute.xlu2 %1186  ;;  %v6406_v53 = vld [vmem:[#allocation64_spill] sm:$0xff] }
 0x1e0   : > { %v4928_v58 = vpop.permute.xlu1 %1134 }
 0x1e1   : > { %v1133_v13 = vpop.permute.xlu0 %1132 }
 0x1e5   : > { %1508 = vrot.lane.b32.xlu2 %v6403_v24, %s3722_s9  ;;  %v6407_v24 = vld [vmem:[#allocation69_spill] sm:$0xff] }
 0x1e6   : > { %1506 = vrot.lane.b32.xlu1 %v6404_v19, %s3722_s9  ;;  %v1208_v19 = vsel %vm461_vm1, %v6407_v24, %v4744_v16  ;;  %v6409_v16 = vld [vmem:[#allocation68_spill] sm:$0xff]  ;;  %v1209_v24 = vsel %vm461_vm1, %v4336_v39, %v4738_v44  ;;  %v6410_v44 = vld [vmem:[#allocation70_spill] sm:$0xff] }
 0x1e7   : > { %1504 = vrot.lane.b32.xlu0 %v6405_v14, %s3722_s9  ;;  %v4936_v29 = vpop.permute.xlu2 %1192  ;;  %v1216_v42 = vsel %vm470_vm2, %v1208_v19, %v4695_v32 }
 0x1e8   : > { %v1157_v18 = vpop.permute.xlu1 %1156 }
 0x1e9   : > { %v1155_v41 = vpop.permute.xlu0 %1154 }
 0x1ed   : > { %1530 = vrot.lane.b32.xlu2 %v4292_v31, %s3723_s10  ;;  %v1224_v31 = vsel %vm479_vm3, %v1216_v42, %v1089_v5  ;;  %v1217_v5 = vsel %vm470_vm2, %v1209_v24, %v4842_v36  ;;  %v1214_v36 = vsel %vm461_vm1, %v4761_v63, %v4824_v33 }
 0x1ee   : > { %1512 = vrot.lane.b32.xlu1 %v3289_v51, %s3722_s9  ;;  %v1232_v51 = vsel %vm488_vm4, %v1224_v31, %v1121_v3  ;;  %v1225_v19 = vsel %vm479_vm3, %v1217_v5, %v4820_v8 }
 0x1ef   : > { %1510 = vrot.lane.b32.xlu0 %v6406_v53, %s3722_s9  ;;  %v4947_v22 = vpop.permute.xlu2 %1198  ;;  %v6408_v53 = vld [vmem:[#allocation67_spill] sm:$0xff]  ;;  %v1240_v42 = vsel %vm497_vm5, %v1232_v51, %v1153_v57  ;;  %v1233_v31 = vsel %vm488_vm4, %v1225_v19, %v1123_v62  ;;  %v1222_v51 = vsel %vm470_vm2, %v1214_v36, %v4783_v54  ;;  %v5097_v36 = vld [vmem:[%s3807_s5 + $0xe0] sm:$0xff] }
 0x1f0   : > { %v4949_v14 = vpop.permute.xlu1 %1162  ;;  %v1241_v39 = vsel %vm497_vm5, %v1233_v31, %v1155_v41  ;;  %v1230_v33 = vsel %vm479_vm3, %v1222_v51, %v4887_v47  ;;  %v5122_v51 = vld [vmem:[%s3807_s5 + $0x120] sm:$0xff] }
 0x1f1   : > { %v4951_v4 = vpop.permute.xlu0 %1160  ;;  %v1249_v41 = vsel %vm506_vm7, %v1241_v39, %v1187_v38  ;;  %v5003_v38 = vld [vmem:[%s3807_s5 + $0x80] sm:$0xff]  ;;  %6415 = vst [vmem:[#allocation21_spill] sm:$0xff] %v5122_v51 }
 0x1f2   : > { %v1215_v54 = vsel %vm461_vm1, %v5003_v38, %v4822_v11 }
 0x1f5   : > { %1536 = vrot.lane.b32.xlu2 %v4326_v28, %s3723_s10 }
 0x1f6   : > { %1534 = vrot.lane.b32.xlu1 %v6408_v53, %s3723_s10  ;;  %v3297_v53 = vld [vmem:[%s3807_s5 + $0x292] sm:$0xff] }
 0x1f7   : > { %1532 = vrot.lane.b32.xlu0 %v6409_v16, %s3723_s10  ;;  %v4966_v45 = vpop.permute.xlu2 %1406  ;;  %v1238_v16 = vsel %vm488_vm4, %v1230_v33, %v1133_v13 }
 0x1f8   : > { %v1185_v32 = vpop.permute.xlu1 %1184 }
 0x1f9   : > { %v1167_v3 = vpop.permute.xlu0 %1166  ;;  %v1248_v28 = vsel %vm506_vm7, %v1240_v42, %v1185_v32 }
 0x1fa   : > { %3242 = vmatmul.msk.f32.vlgmr.msra.gmra.mxu2 %vm820_vm6, %v1248_v28 }
 0x1fd   : > { %1542 = vrot.lane.b32.xlu2 %v4356_v56, %s3723_s10  ;;  %v1210_v56 = vsel %vm461_vm1, %v4359_v34, %v4629_v2  ;;  %v1211_v2 = vsel %vm461_vm1, %v4393_v49, %v4791_v21 }
 0x1fe   : > { %1540 = vrot.lane.b32.xlu1 %v4318_v25, %s3723_s10  ;;  %v1218_v25 = vsel %vm470_vm2, %v1210_v56, %v4840_v1 }
 0x1ff   : > { %1538 = vrot.lane.b32.xlu0 %v6410_v44, %s3723_s10  ;;  %v4986_v8 = vpop.permute.xlu2 %1412  ;;  %v1226_v63 = vsel %vm479_vm3, %v1218_v25, %v4879_v40  ;;  %v5094_v44 = vld [vmem:[%s3807_s5 + $0xf0] sm:$0xff] }
 0x200   : > { %v1191_v57 = vpop.permute.xlu1 %1190  ;;  %v1234_v34 = vsel %vm488_vm4, %v1226_v63, %v4865_v52  ;;  %v1223_v52 = vsel %vm470_vm2, %v1215_v54, %v4867_v10  ;;  %v5128_v63 = vld [vmem:[%s3807_s5 + $0x100] sm:$0xff] }
 0x201   : > { %v1189_v62 = vpop.permute.xlu0 %1188  ;;  %v1242_v1 = vsel %vm497_vm5, %v1234_v34, %v1157_v18  ;;  %v1219_v18 = vsel %vm470_vm2, %v1211_v2, %v4736_v61  ;;  %v1231_v11 = vsel %vm479_vm3, %v1223_v52, %v4853_v23  ;;  %v6411_v61 = vld [vmem:[#allocation71_spill] sm:$0xff]  ;;  %v1212_v23 = vsel %vm461_vm1, %v4438_v35, %v4785_v37  ;;  %v3305_v35 = vld [vmem:[%s3807_s5 + $0x1e3] sm:$0xff]  ;;  %v6417_v2 = vld [vmem:[#allocation74_spill] sm:$0xff] }
 0x202   : > { %3243 = vmatmul.msk.f32.gmra.mxu2 %vm820_vm6, %v1249_v41  ;;  %v1250_v49 = vsel %vm506_vm7, %v1242_v1, %v1189_v62  ;;  %v1227_v21 = vsel %vm479_vm3, %v1219_v18, %v4877_v60  ;;  %v6412_v60 = vld [vmem:[#allocation72_spill] sm:$0xff] }
 0x203   : > { %v1235_v10 = vsel %vm488_vm4, %v1227_v21, %v4917_v17  ;;  %v3333_v34 = vld [vmem:[%s3807_s5 + $0x140] sm:$0xff]  ;;  %v5176_v21 = vld [vmem:[%s3807_s5 + $0x71] sm:$0xff] }
 0x204   : > { %v1243_v42 = vsel %vm497_vm5, %v1235_v10, %v4897_v30  ;;  %v5158_v52 = vld [vmem:[%s3807_s5 + $0x41] sm:$0xff]  ;;  %6419 = vst [vmem:[#allocation24_spill] sm:$0xff] %v5176_v21  ;;  %v6421_v10 = vld [vmem:[#allocation75_spill] sm:$0xff] }
 0x205   : > { %1564 = vrot.lane.b32.xlu2 %v4390_v55, %s3724_s11 }
 0x206   : > { %1562 = vrot.lane.b32.xlu1 %v4350_v46, %s3724_s11  ;;  %v1246_v46 = vsel %vm497_vm5, %v1238_v16, %v4913_v0  ;;  %v1239_v0 = vsel %vm488_vm4, %v1231_v11, %v4928_v58  ;;  %v3334_v16 = vld [vmem:[%s3807_s5 + $0x21] sm:$0xff] }
 0x207   : > { %1544 = vrot.lane.b32.xlu0 %v3297_v53, %s3723_s10  ;;  %v5020_v40 = vpop.permute.xlu2 %1434  ;;  %v1247_v32 = vsel %vm497_vm5, %v1239_v0, %v1167_v3  ;;  %v1251_v3 = vsel %vm506_vm7, %v1243_v42, %v1191_v57  ;;  %v5179_v11 = vld [vmem:[%s3807_s5 + $0x61] sm:$0xff] }
 0x208   : > { %v1197_v55 = vpop.permute.xlu1 %1196  ;;  %v1255_v28 = vsel %vm506_vm7, %v1247_v32, %v4947_v22  ;;  %v6414_v22 = vld [vmem:[#allocation73_spill] sm:$0xff]  ;;  %6420 = vst [vmem:[#allocation20_spill] sm:$0xff] %v5179_v11 }
 0x209   : > { %v1254_v47 = vsel %vm506_vm7, %v1246_v46, %v1197_v55  ;;  %v1195_v13 = vpop.permute.xlu0 %1194  ;;  %v5155_v46 = vld [vmem:[%s3807_s5 + $0x51] sm:$0xff] }
 0x20a   : > { %3244 = vmatmul.msk.f32.gmra.mxu2 %vm820_vm6, %v1250_v49  ;;  %3248 = vmatmul.msk.f32.vlgmr.msra.gmra.mxu3 %vm820_vm6, %v1254_v47  ;;  %6418 = vst [vmem:[#allocation18_spill] sm:$0xff] %v5155_v46  ;;  %v5161_v47 = vld [vmem:[%s3807_s5 + $0x31] sm:$0xff] }
 0x20d   : > { %v884_v24 = vpop.f32.mrf.mxu3  ;;  %1570 = vrot.lane.b32.xlu2 %v4427_v59, %s3724_s11  ;;  %v1220_v59 = vsel %vm470_vm2, %v1212_v23, %v4857_v9  ;;  %v3341_v23 = vld [vmem:[%s3807_s5 + $0x91] sm:$0xff] }
 0x20e   : > { %1568 = vrot.lane.b32.xlu1 %v6411_v61, %s3724_s11  ;;  %v1228_v37 = vsel %vm479_vm3, %v1220_v59, %v4838_v26  ;;  %v5194_v61 = vld [vmem:[%s3807_s5 + $0xe1] sm:$0xff] }
 0x20f   : > { %1566 = vrot.lane.b32.xlu0 %v6412_v60, %s3724_s11  ;;  %v5050_v17 = vpop.permute.xlu2 %1440  ;;  %v1236_v9 = vsel %vm488_vm4, %v1228_v37, %v4915_v20  ;;  %v3342_v60 = vld [vmem:[%s3807_s5 + $0xd1] sm:$0xff] }
 0x210   : > { %v5052_v58 = vpop.permute.xlu1 %1404  ;;  %v1244_v19 = vsel %vm497_vm5, %v1236_v9, %v4951_v4  ;;  %v1213_v4 = vsel %vm461_vm1, %v4714_v7, %v4655_v15  ;;  %v5215_v37 = vld [vmem:[%s3807_s5 + $0xf1] sm:$0xff] }
 0x211   : > { %v5058_v5 = vpop.permute.xlu0 %1402  ;;  %v1252_v20 = vsel %vm506_vm7, %v1244_v19, %v4936_v29  ;;  %v3326_v29 = vld [vmem:[%s3807_s5 + $0xd0] sm:$0xff] }
 0x212   : > { %3245 = vmatmul.msk.f32.gmra.mxu2 %vm820_vm6, %v1251_v3  ;;  %3249 = vmatmul.msk.f32.gmra.mxu3 %vm820_vm6, %v1255_v28  ;;  %v5209_v28 = vld [vmem:[%s3807_s5 + $0x111] sm:$0xff] }
 0x213   : > { %6422 = vst [vmem:[#allocation27_spill] sm:$0xff] %v5209_v28 }
 0x215   : > { %v5070_v30 = vpop.f32.mrf.mxu3  ;;  %1576 = vrot.lane.b32.xlu2 %v3305_v35, %s3724_s11  ;;  %v5212_v35 = vld [vmem:[%s3807_s5 + $0x101] sm:$0xff] }
 0x216   : > { %6413 = vst [vmem:[#allocation15_spill] sm:$0xff] %v5070_v30  ;;  %1574 = vrot.lane.b32.xlu1 %v4419_v43, %s3724_s11  ;;  %v1221_v43 = vsel %vm470_vm2, %v1213_v4, %v4855_v6  ;;  %v5231_v4 = vld [vmem:[%s3807_s5 + $0x141] sm:$0xff] }
 0x217   : > { %1572 = vrot.lane.b32.xlu0 %v6414_v22, %s3724_s11  ;;  %v5079_v31 = vpop.permute.xlu2 %1446  ;;  %v1229_v57 = vsel %vm479_vm3, %v1221_v43, %v4889_v48  ;;  %6423 = vst [vmem:[#allocation22_spill] sm:$0xff] %v5212_v35  ;;  %v5235_v43 = vld [vmem:[%s3807_s5 + $0x121] sm:$0xff] }
 0x218   : > { %v5081_v26 = vpop.permute.xlu1 %1410  ;;  %v1237_v15 = vsel %vm488_vm4, %v1229_v57, %v4875_v27  ;;  %v5125_v27 = vld [vmem:[%s3807_s5 + $0x110] sm:$0xff]  ;;  %6424 = vst [vmem:[#allocation23_spill] sm:$0xff] %v5231_v4  ;;  %v6426_v57 = vld [vmem:[#allocation76_spill] sm:$0xff] }
 0x219   : > { %v5083_v39 = vpop.permute.xlu0 %1408  ;;  %v1245_v7 = vsel %vm497_vm5, %v1237_v15, %v4949_v14  ;;  %6416 = vst [vmem:[#allocation17_spill] sm:$0xff] %v5125_v27 }
 0x21a   : > { %3246 = vmatmul.msk.f32.gmra.mxu2 %vm820_vm6, %v1252_v20  ;;  %v1253_v25 = vsel %vm506_vm7, %v1245_v7, %v1195_v13  ;;  %v3308_v20 = vld [vmem:[%s6186_s1 + $0x58] sm:$0x1f]  ;;  %6425 = vst [vmem:[#allocation32_spill] sm:$0xff] %v5235_v43 }
 0x21b   : > { %3309 = vmatpush.msk.msrb.mxu3 %vm845_vm0, %v3308_v20  ;;  %v5272_v20 = vld [vmem:[%s3807_s5 + $0x72] sm:$0xff] }
 0x21c   : > { %6427 = vst [vmem:[#allocation28_spill] sm:$0xff] %v5272_v20 }
 0x21d   : > { %v952_v62 = vpop.f32.mrf.mxu3  ;;  %1784 = vrot.lane.b32.xlu2 %v5094_v44, %s3719_s6 }
 0x21e   : > { %v5102_v41 = vadd.f32 %v952_v62, %v884_v24  ;;  %1782 = vrot.lane.b32.xlu1 %v5097_v36, %s3719_s6 }
 0x21f   : > { %1780 = vrot.lane.b32.xlu0 %v3326_v29, %s3719_s6  ;;  %v5113_v6 = vpop.permute.xlu2 %1468  ;;  %v3307_v29 = vld [vmem:[%s6186_s1 + $0x50] sm:$0xff] }
 0x220   : > { %v5115_v48 = vpop.permute.xlu1 %1416  ;;  %1679 = vmatpush.msrb.mxu3 %v3307_v29  ;;  %v5278_v29 = vld [vmem:[%s3807_s5 + $0x52] sm:$0xff] }
 0x221   : > { %v5117_v56 = vpop.permute.xlu0 %1414 }
 0x222   : > { %3247 = vmatmul.msk.f32.gmra.mxu2 %vm820_vm6, %v1253_v25  ;;  %v3306_v25 = vld [vmem:[%s6186_s1 + $0x48] sm:$0xff] }
 0x223   : > { %1680 = vmatpush.msrb.mxu3 %v3306_v25 }
 0x225   : > { %1790 = vrot.lane.b32.xlu2 %v5122_v51, %s3719_s6  ;;  %v6431_v51 = vld [vmem:[#allocation9_spill] sm:$0xff] }
 0x226   : > { %1788 = vrot.lane.b32.xlu1 %v5125_v27, %s3719_s6 }
 0x227   : > { %1786 = vrot.lane.b32.xlu0 %v5128_v63, %s3719_s6  ;;  %v5136_v14 = vpop.permute.xlu2 %1474 }
 0x228   : > { %v5138_v33 = vpop.permute.xlu1 %1438 }
 0x229   : > { %v5140_v53 = vpop.permute.xlu0 %1436 }
 0x22d   : > { %1812 = vrot.lane.b32.xlu2 %v3334_v16, %s3720_s7  ;;  %v5256_v16 = vld [vmem:[%s3807_s5 + $0x42] sm:$0xff] }
 0x22e   : > { %1794 = vrot.lane.b32.xlu1 %v3333_v34, %s3719_s6  ;;  %v5259_v34 = vld [vmem:[%s3807_s5 + $0x32] sm:$0xff] }
 0x22f   : > { %1792 = vrot.lane.b32.xlu0 %v6417_v2, %s3719_s6  ;;  %v5148_v54 = vpop.permute.xlu2 %1480  ;;  %v3350_v2 = vld [vmem:[%s3807_s5 + $0x22] sm:$0xff] }
 0x230   : > { %v5150_v1 = vpop.permute.xlu1 %1444 }
 0x231   : > { %v5152_v55 = vpop.permute.xlu0 %1442 }
 0x235   : > { %1818 = vrot.lane.b32.xlu2 %v5155_v46, %s3720_s7  ;;  %v5308_v46 = vpop.f32.mrf.mxu1 }
 0x236   : > { %1816 = vrot.lane.b32.xlu1 %v5158_v52, %s3720_s7  ;;  %6433 = vst [vmem:[#allocation26_spill] sm:$0xff] %v5308_v46 }
 0x237   : > { %1814 = vrot.lane.b32.xlu0 %v5161_v47, %s3720_s7  ;;  %v5169_v13 = vpop.permute.xlu2 %1502 }
 0x238   : > { %v5171_v49 = vpop.permute.xlu1 %1466 }
 0x239   : > { %v5173_v18 = vpop.permute.xlu0 %1448 }
 0x23d   : > { %1824 = vrot.lane.b32.xlu2 %v6421_v10, %s3720_s7 }
 0x23e   : > { %1822 = vrot.lane.b32.xlu1 %v5176_v21, %s3720_s7  ;;  %v6432_v21 = vld [vmem:[#allocation56_spill] sm:$0xff] }
 0x23f   : > { %1820 = vrot.lane.b32.xlu0 %v5179_v11, %s3720_s7  ;;  %v5187_v0 = vpop.permute.xlu2 %1508 }
 0x240   : > { %v5189_v24 = vpop.permute.xlu1 %1472 }
 0x241   : > { %v5191_v32 = vpop.permute.xlu0 %1470 }
 0x245   : > { %1846 = vrot.lane.b32.xlu2 %v5194_v61, %s3721_s8 }
 0x246   : > { %1844 = vrot.lane.b32.xlu1 %v3342_v60, %s3721_s8 }
 0x247   : > { %1826 = vrot.lane.b32.xlu0 %v3341_v23, %s3720_s7  ;;  %v5202_v42 = vpop.permute.xlu2 %1530 }
 0x248   : > { %v5204_v59 = vpop.permute.xlu1 %1478 }
 0x249   : > { %v5206_v3 = vpop.permute.xlu0 %1476 }
 0x24d   : > { %1852 = vrot.lane.b32.xlu2 %v5209_v28, %s3721_s8 }
 0x24e   : > { %1850 = vrot.lane.b32.xlu1 %v5212_v35, %s3721_s8  ;;  %v5346_v35 = vld [vmem:[%s3807_s5 + $0x122] sm:$0xff] }
 0x24f   : > { %1848 = vrot.lane.b32.xlu0 %v5215_v37, %s3721_s8  ;;  %v5223_v9 = vpop.permute.xlu2 %1536 }
 0x250   : > { %v5225_v19 = vpop.permute.xlu1 %1500 }
 0x251   : > { %v1499_v22 = vpop.permute.xlu0 %1498 }
 0x255   : > { %1858 = vrot.lane.b32.xlu2 %v5231_v4, %s3721_s8  ;;  %v3358_v4 = vld [vmem:[%s3807_s5 + $0xd2] sm:$0xff] }
 0x256   : > { %1856 = vrot.lane.b32.xlu1 %v6426_v57, %s3721_s8  ;;  %v5275_v57 = vld [vmem:[%s3807_s5 + $0x62] sm:$0xff] }
 0x257   : > { %1854 = vrot.lane.b32.xlu0 %v5235_v43, %s3721_s8  ;;  %v5246_v62 = vpop.permute.xlu2 %1542  ;;  %6428 = vst [vmem:[#allocation48_spill] sm:$0xff] %v5275_v57  ;;  %v5290_v43 = vld [vmem:[%s3807_s5 + $0x92] sm:$0xff] }
 0x258   : > { %v5248_v15 = vpop.permute.xlu1 %1506  ;;  %6429 = vst [vmem:[#allocation60_spill] sm:$0xff] %v5290_v43 }
 0x259   : > { %v5250_v7 = vpop.permute.xlu0 %1504 }
 0x25d   : > { %1880 = vrot.lane.b32.xlu2 %v5256_v16, %s3722_s9 }
 0x25e   : > { %1878 = vrot.lane.b32.xlu1 %v5259_v34, %s3722_s9 }
 0x25f   : > { %1876 = vrot.lane.b32.xlu0 %v3350_v2, %s3722_s9  ;;  %v1565_v10 = vpop.permute.xlu2 %1564 }
 0x260   : > { %v5267_v60 = vpop.permute.xlu1 %1512 }
 0x261   : > { %v5269_v23 = vpop.permute.xlu0 %1510 }
 0x265   : > { %1886 = vrot.lane.b32.xlu2 %v5272_v20, %s3722_s9  ;;  %v5295_v20 = vpop.f32.mrf.mxu0 }
 0x266   : > { %1884 = vrot.lane.b32.xlu1 %v5275_v57, %s3722_s9  ;;  %6430 = vst [vmem:[#allocation25_spill] sm:$0xff] %v5295_v20  ;;  %v1586_v57 = vsel %vm461_vm1, %v6432_v21, %v5058_v5  ;;  %v5316_v20 = vld [vmem:[%s3807_s5 + $0xf2] sm:$0xff]  ;;  %v5321_v5 = vld [vmem:[%s3807_s5 + $0xe2] sm:$0xff] }
 0x267   : > { %1882 = vrot.lane.b32.xlu0 %v5278_v29, %s3722_s9  ;;  %v5286_v25 = vpop.permute.xlu2 %1570 }
 0x268   : > { %v1535_v2 = vpop.permute.xlu1 %1534 }
 0x269   : > { %v1533_v30 = vpop.permute.xlu0 %1532 }
 0x26d   : > { %1908 = vrot.lane.b32.xlu2 %v3358_v4, %s3723_s10  ;;  %v1594_v4 = vsel %vm470_vm2, %v1586_v57, %v5020_v40  ;;  %v1587_v40 = vsel %vm461_vm1, %v4648_v12, %v5052_v58  ;;  %v5351_v58 = vld [vmem:[%s3807_s5 + $0x112] sm:$0xff] }
 0x26e   : > { %1890 = vrot.lane.b32.xlu1 %v5290_v43, %s3722_s9  ;;  %v5313_v43 = vld [vmem:[%s3807_s5 + $0x102] sm:$0xff] }
 0x26f   : > { %1888 = vrot.lane.b32.xlu0 %v6431_v51, %s3722_s9  ;;  %v5302_v11 = vpop.permute.xlu2 %1576  ;;  %6434 = vst [vmem:[#allocation31_spill] sm:$0xff] %v5313_v43  ;;  %v1602_v51 = vsel %vm479_vm3, %v1594_v4, %v5171_v49 }
 0x270   : > { %v5304_v28 = vpop.permute.xlu1 %1540  ;;  %v1610_v21 = vsel %vm488_vm4, %v1602_v51, %v1499_v22  ;;  %v1595_v22 = vsel %vm470_vm2, %v1587_v40, %v5140_v53 }
 0x271   : > { %v5306_v27 = vpop.permute.xlu0 %1538  ;;  %v1618_v4 = vsel %vm497_vm5, %v1610_v21, %v5202_v42  ;;  %v1603_v12 = vsel %vm479_vm3, %v1595_v22, %v5113_v6  ;;  %v5353_v42 = vpop.f32.mrf.mxu1  ;;  %v6438_v22 = vld [vmem:[#allocation10_spill] sm:$0xff] }
 0x272   : > { %6436 = vst [vmem:[#allocation42_spill] sm:$0xff] %v5353_v42  ;;  %v1611_v53 = vsel %vm488_vm4, %v1603_v12, %v5225_v19  ;;  %v3366_v12 = vld [vmem:[%s3807_s5 + $0x23] sm:$0xff] }
 0x273   : > { %v1619_v40 = vsel %vm497_vm5, %v1611_v53, %v1533_v30  ;;  %v5376_v30 = vld [vmem:[%s3807_s5 + $0x33] sm:$0xff] }
 0x274   : > { %v1627_v19 = vsel %vm506_vm7, %v1619_v40, %v1565_v10  ;;  %v5384_v10 = vpop.f32.mrf.mxu3 }
 0x275   : > { %1914 = vrot.lane.b32.xlu2 %v5313_v43, %s3723_s10  ;;  %v5342_v43 = vpop.f32.mrf.mxu0  ;;  %6439 = vst [vmem:[#allocation59_spill] sm:$0xff] %v5384_v10 }
 0x276   : > { %1912 = vrot.lane.b32.xlu1 %v5316_v20, %s3723_s10  ;;  %6435 = vst [vmem:[#allocation55_spill] sm:$0xff] %v5342_v43  ;;  %v5382_v43 = vld [vmem:[%s3807_s5 + $0x142] sm:$0xff] }
 0x277   : > { %1910 = vrot.lane.b32.xlu0 %v5321_v5, %s3723_s10  ;;  %v5333_v57 = vpop.permute.xlu2 %1784 }
 0x278   : > { %v1563_v49 = vpop.permute.xlu1 %1562 }
 0x279   : > { %v1626_v51 = vsel %vm506_vm7, %v1618_v4, %v1563_v49  ;;  %v5340_v46 = vpop.permute.xlu0 %1544 }
 0x27a   : > { %3310 = vmatmul.msk.f32.vlgmr.msrb.gmra.mxu3 %vm820_vm6, %v1626_v51  ;;  %v1588_v51 = vsel %vm461_vm1, %v6438_v22, %v4966_v45  ;;  %v940_v45 = vpop.f32.mrf.mxu1 }
 0x27d   : > { %v5357_v21 = vpop.f32.mrf.mxu2  ;;  %1920 = vrot.lane.b32.xlu2 %v4671_v50, %s3723_s10  ;;  %v1596_v50 = vsel %vm470_vm2, %v1588_v51, %v5138_v33  ;;  %v872_v53 = vpop.f32.mrf.mxu0 }
 0x27e   : > { %6437 = vst [vmem:[#allocation38_spill] sm:$0xff] %v5357_v21  ;;  %1918 = vrot.lane.b32.xlu1 %v5346_v35, %s3723_s10  ;;  %v1604_v42 = vsel %vm479_vm3, %v1596_v50, %v5191_v32  ;;  %v6441_v32 = vld [vmem:[#allocation16_spill] sm:$0xff] }
 0x27f   : > { %1916 = vrot.lane.b32.xlu0 %v5351_v58, %s3723_s10  ;;  %v5366_v6 = vpop.permute.xlu2 %1790  ;;  %v1612_v33 = vsel %vm488_vm4, %v1604_v42, %v5169_v13  ;;  %v5408_v42 = vld [vmem:[%s3807_s5 + $0x63] sm:$0xff] }
 0x280   : > { %v1569_v49 = vpop.permute.xlu1 %1568  ;;  %v1620_v22 = vsel %vm497_vm5, %v1612_v33, %v1535_v2  ;;  %v5416_v33 = vld [vmem:[%s3807_s5 + $0x43] sm:$0xff] }
 0x281   : > { %v1567_v4 = vpop.permute.xlu0 %1566 }
 0x282   : > { %3311 = vmatmul.msk.f32.gmra.mxu3 %vm820_vm6, %v1627_v19  ;;  %v1589_v19 = vsel %vm461_vm1, %v6441_v32, %v5083_v39  ;;  %v941_v39 = vadd.f32 %v940_v45, %v872_v53 }
 0x283   : > { %v1597_v13 = vsel %vm470_vm2, %v1589_v19, %v5050_v17 }
 0x284   : > { %v1605_v2 = vsel %vm479_vm3, %v1597_v13, %v5189_v24  ;;  %v3318_v24 = vld [vmem:[%s3807_s5 + $0x20] sm:$0xff]  ;;  %v943_v13 = vpop.f32.mrf.mxu1 }
 0x285   : > { %v5386_v40 = vpop.f32.mrf.mxu2  ;;  %1942 = vrot.lane.b32.xlu2 %v5376_v30, %s3724_s11  ;;  %v1613_v32 = vsel %vm488_vm4, %v1605_v2, %v5250_v7  ;;  %v875_v17 = vpop.f32.mrf.mxu0  ;;  %v6443_v7 = vld [vmem:[#allocation19_spill] sm:$0xff] }
 0x286   : > { %6440 = vst [vmem:[#allocation35_spill] sm:$0xff] %v5386_v40  ;;  %1940 = vrot.lane.b32.xlu1 %v3366_v12, %s3724_s11  ;;  %v1628_v12 = vsel %vm506_vm7, %v1620_v22, %v1567_v4  ;;  %v5411_v40 = vld [vmem:[%s3807_s5 + $0x53] sm:$0xff]  ;;  %v1590_v53 = vsel %vm461_vm1, %v6443_v7, %v5081_v26  ;;  %v1621_v19 = vsel %vm497_vm5, %v1613_v32, %v5223_v9 }
 0x287   : > { %1922 = vrot.lane.b32.xlu0 %v5382_v43, %s3723_s10  ;;  %v1813_v51 = vpop.permute.xlu2 %1812  ;;  %v944_v7 = vadd.f32 %v943_v13, %v875_v17  ;;  %v5453_v32 = vld [vmem:[%s3807_s5 + $0x73] sm:$0xff] }
 0x288   : > { %v5399_v50 = vpop.permute.xlu1 %1574 }
 0x289   : > { %v5401_v10 = vpop.permute.xlu0 %1572 }
 0x28a   : > { %3312 = vmatmul.msk.f32.gmra.mxu3 %vm820_vm6, %v1628_v12 }
 0x28d   : > { %v1310_v4 = vpop.f32.mrf.mxu2  ;;  %v1322_v22 = vpop.f32.mrf.mxu3  ;;  %1948 = vrot.lane.b32.xlu2 %v5408_v42, %s3724_s11 }
 0x28e   : > { %v5420_v12 = vadd.f32 %v1310_v4, %v941_v39  ;;  %v5423_v21 = vadd.f32 %v1322_v22, %v5102_v41  ;;  %1946 = vrot.lane.b32.xlu1 %v5411_v40, %s3724_s11  ;;  %v1598_v39 = vsel %vm470_vm2, %v1590_v53, %v5152_v55  ;;  %v1629_v4 = vsel %vm506_vm7, %v1621_v19, %v1569_v49 }
 0x28f   : > { %1944 = vrot.lane.b32.xlu0 %v5416_v33, %s3724_s11  ;;  %v1819_v45 = vpop.permute.xlu2 %1818  ;;  %v1606_v9 = vsel %vm479_vm3, %v1598_v39, %v5136_v14  ;;  %v5468_v14 = vld [vmem:[%s3807_s5 + $0x50] sm:$0xff]  ;;  %v6445_v39 = vld [vmem:[#allocation13_spill] sm:$0xff] }
 0x290   : > { %6442 = vst [vmem:[#allocation29_spill] sm:$0xff] %v5423_v21  ;;  %v5435_v41 = vpop.permute.xlu1 %1782  ;;  %v5445_v21 = vld [vmem:[%s3807_s5 + $0x93] sm:$0xff]  ;;  %v1614_v55 = vsel %vm488_vm4, %v1606_v9, %v5248_v15 }
 0x291   : > { %v1781_v2 = vpop.permute.xlu0 %1780  ;;  %v1622_v49 = vsel %vm497_vm5, %v1614_v55, %v5306_v27  ;;  %v878_v27 = vpop.f32.mrf.mxu0  ;;  %v3396_v9 = vld [vmem:[%s3807_s5 + $0x250] sm:$0xff]  ;;  %v3395_v55 = vld [vmem:[%s3807_s5 + $0x240] sm:$0xff] }
 0x292   : > { %v1964_v22 = vsel %vm461_vm1, %v3318_v24, %v1781_v2  ;;  %3313 = vmatmul.msk.f32.gmra.mxu3 %vm820_vm6, %v1629_v4  ;;  %v1630_v13 = vsel %vm506_vm7, %v1622_v49, %v5286_v25  ;;  %v1591_v2 = vsel %vm461_vm1, %v6445_v39, %v4986_v8  ;;  %v3394_v49 = vld [vmem:[%s3807_s5 + $0x230] sm:$0xff] }
 0x293   : > { %v5448_v26 = vsel %vm470_vm2, %v1964_v22, %v1813_v51  ;;  %v6444_v51 = vld [vmem:[#allocation12_spill] sm:$0xff]  ;;  %v946_v22 = vpop.f32.mrf.mxu1 }
 0x295   : > { %v1313_v53 = vpop.f32.mrf.mxu2  ;;  %1954 = vrot.lane.b32.xlu2 %v5445_v21, %s3724_s11 }
 0x296   : > { %v5459_v24 = vadd.f32 %v1313_v53, %v944_v7  ;;  %1952 = vrot.lane.b32.xlu1 %v6444_v51, %s3724_s11  ;;  %v1599_v7 = vsel %vm470_vm2, %v1591_v2, %v5150_v1  ;;  %v947_v51 = vadd.f32 %v946_v22, %v878_v27 }
 0x297   : > { %1950 = vrot.lane.b32.xlu0 %v5453_v32, %s3724_s11  ;;  %v1825_v15 = vpop.permute.xlu2 %1824  ;;  %v1607_v25 = vsel %vm479_vm3, %v1599_v7, %v5206_v3  ;;  %v3398_v7 = vld [vmem:[%s3807_s5 + $0x270] sm:$0xff] }
 0x298   : > { %v5470_v17 = vpop.permute.xlu1 %1788  ;;  %v1615_v1 = vsel %vm488_vm4, %v1607_v25, %v5187_v0  ;;  %v5526_v25 = vld [vmem:[%s3807_s5 + $0x30] sm:$0xff] }
 0x299   : > { %v1787_v19 = vpop.permute.xlu0 %1786  ;;  %v1623_v27 = vsel %vm497_vm5, %v1615_v1, %v5304_v28  ;;  %v1965_v1 = vsel %vm461_vm1, %v5526_v25, %v5435_v41 }
 0x29a   : > { %v1967_v4 = vsel %vm461_vm1, %v5468_v14, %v1787_v19  ;;  %3314 = vmatmul.msk.f32.gmra.mxu3 %vm820_vm6, %v1630_v13 }
 0x29b   : > { %v5485_v53 = vsel %vm470_vm2, %v1967_v4, %v1819_v45  ;;  %v6446_v45 = vld [vmem:[#allocation11_spill] sm:$0xff]  ;;  %v1631_v4 = vsel %vm506_vm7, %v1623_v27, %v5401_v10  ;;  %v3402_v27 = vld [vmem:[%s3807_s5 + $0x181] sm:$0xff] }
 0x29c   : > { %v1592_v3 = vsel %vm461_vm1, %v6446_v45, %v5117_v56  ;;  %v3399_v56 = vld [vmem:[%s3807_s5 + $0x280] sm:$0xff] }
 0x29d   : > { %v1316_v8 = vpop.f32.mrf.mxu2  ;;  %2162 = vrot.lane.b32.xlu2 %v3396_v9, %s3719_s6  ;;  %v1600_v22 = vsel %vm470_vm2, %v1592_v3, %v5079_v31 }
 0x29e   : > { %v5490_v19 = vadd.f32 %v1316_v8, %v947_v51  ;;  %2160 = vrot.lane.b32.xlu1 %v3395_v55, %s3719_s6  ;;  %v1608_v28 = vsel %vm479_vm3, %v1600_v22, %v5204_v59  ;;  %v3397_v55 = vld [vmem:[%s3807_s5 + $0x260] sm:$0xff] }
 0x29f   : > { %2158 = vrot.lane.b32.xlu0 %v3394_v49, %s3719_s6  ;;  %v1847_v13 = vpop.permute.xlu2 %1846  ;;  %v5518_v51 = vld [vmem:[%s3807_s5 + $0x1e0] sm:$0xff]  ;;  %v1616_v10 = vsel %vm488_vm4, %v1608_v28, %v5269_v23 }
 0x2a0   : > { %v1795_v39 = vpop.permute.xlu1 %1794  ;;  %v1593_v31 = vsel %vm461_vm1, %v5518_v51, %v5115_v48  ;;  %v1624_v49 = vsel %vm497_vm5, %v1616_v10, %v5246_v62  ;;  %v3405_v10 = vld [vmem:[%s3807_s5 + $0x1b1] sm:$0xff] }
 0x2a1   : > { %v1793_v2 = vpop.permute.xlu0 %1792  ;;  %v1601_v8 = vsel %vm470_vm2, %v1593_v31, %v5173_v18  ;;  %v3404_v31 = vld [vmem:[%s3807_s5 + $0x1a1] sm:$0xff] }
 0x2a2   : > { %v1970_v0 = vsel %vm461_vm1, %v5003_v38, %v1793_v2  ;;  %3315 = vmatmul.msk.f32.gmra.mxu3 %vm820_vm6, %v1631_v4  ;;  %v5523_v38 = vld [vmem:[%s3807_s5 + $0x40] sm:$0xff]  ;;  %v1609_v18 = vsel %vm479_vm3, %v1601_v8, %v5148_v54  ;;  %v3323_v4 = vld [vmem:[%s3807_s5 + $0x70] sm:$0xff] }
 0x2a3   : > { %v5512_v9 = vsel %vm470_vm2, %v1970_v0, %v1825_v15  ;;  %v1966_v59 = vsel %vm461_vm1, %v5523_v38, %v5333_v57  ;;  %v1632_v57 = vsel %vm506_vm7, %v1624_v49, %v5399_v50  ;;  %v3401_v2 = vld [vmem:[%s3807_s5 + $0x2a0] sm:$0xff]  ;;  %v1617_v41 = vsel %vm488_vm4, %v1609_v18, %v5267_v60 }
 0x2a4   : > { %v1625_v50 = vsel %vm497_vm5, %v1617_v41, %v5340_v46  ;;  %v5562_v0 = vld [vmem:[%s3807_s5 + $0x60] sm:$0xff]  ;;  %v1969_v54 = vsel %vm461_vm1, %v3323_v4, %v5366_v6 }
 0x2a5   : > { %2168 = vrot.lane.b32.xlu2 %v3399_v56, %s3719_s6  ;;  %v1968_v46 = vsel %vm461_vm1, %v5562_v0, %v5470_v17  ;;  %v1633_v28 = vsel %vm506_vm7, %v1625_v50, %v5302_v11  ;;  %v3418_v18 = vld [vmem:[%s3807_s5 + $0x182] sm:$0xff] }
 0x2a6   : > { %2166 = vrot.lane.b32.xlu1 %v3398_v7, %s3719_s6  ;;  %v3434_v50 = vld [vmem:[%s3807_s5 + $0x183] sm:$0xff] }
 0x2a7   : > { %2164 = vrot.lane.b32.xlu0 %v3397_v55, %s3719_s6  ;;  %v1853_v23 = vpop.permute.xlu2 %1852 }
 0x2a8   : > { %v1817_v15 = vpop.permute.xlu1 %1816 }
 0x2a9   : > { %v1974_v48 = vsel %vm470_vm2, %v1966_v59, %v1817_v15  ;;  %v1815_v45 = vpop.permute.xlu0 %1814  ;;  %v3403_v59 = vld [vmem:[%s3807_s5 + $0x191] sm:$0xff] }
 0x2aa   : > { %v1973_v3 = vsel %vm470_vm2, %v1965_v1, %v1815_v45  ;;  %3316 = vmatmul.msk.f32.gmra.mxu3 %vm820_vm6, %v1632_v57  ;;  %v3325_v15 = vld [vmem:[%s3807_s5 + $0x90] sm:$0xff] }
 0x2ab   : > { %v5552_v62 = vsel %vm479_vm3, %v1973_v3, %v1847_v13  ;;  %v6447_v13 = vld [vmem:[#allocation14_spill] sm:$0xff]  ;;  %v1971_v49 = vsel %vm461_vm1, %v3325_v15, %v1795_v39 }
 0x2ad   : > { %2190 = vrot.lane.b32.xlu2 %v3402_v27, %s3720_s7 }
 0x2ae   : > { %2172 = vrot.lane.b32.xlu1 %v3401_v2, %s3719_s6 }
 0x2af   : > { %2170 = vrot.lane.b32.xlu0 %v6447_v13, %s3719_s6  ;;  %v1859_v60 = vpop.permute.xlu2 %1858  ;;  %v3375_v13 = vld [vmem:[%s6186_s1 + $0x68] sm:$0xff] }
 0x2b0   : > { %v1823_v22 = vpop.permute.xlu1 %1822 }
 0x2b1   : > { %v1977_v56 = vsel %vm470_vm2, %v1969_v54, %v1823_v22  ;;  %v1821_v7 = vpop.permute.xlu0 %1820 }
 0x2b2   : > { %v1976_v55 = vsel %vm470_vm2, %v1968_v46, %v1821_v7  ;;  %3317 = vmatmul.msk.f32.gmra.mxu3 %vm820_vm6, %v1633_v28 }
 0x2b3   : > { %v5581_v6 = vsel %vm479_vm3, %v1976_v55, %v1853_v23  ;;  %v3419_v55 = vld [vmem:[%s3807_s5 + $0x192] sm:$0xff] }
 0x2b5   : > { %2196 = vrot.lane.b32.xlu2 %v3405_v10, %s3720_s7  ;;  %v3411_v10 = vld [vmem:[%s3807_s5 + $0x241] sm:$0xff] }
 0x2b6   : > { %2194 = vrot.lane.b32.xlu1 %v3404_v31, %s3720_s7  ;;  %v3435_v31 = vld [vmem:[%s3807_s5 + $0x193] sm:$0xff] }
 0x2b7   : > { %2192 = vrot.lane.b32.xlu0 %v3403_v59, %s3720_s7  ;;  %v5588_v17 = vpop.permute.xlu2 %1880  ;;  %v3427_v59 = vld [vmem:[%s3807_s5 + $0x242] sm:$0xff] }
 0x2b8   : > { %v5590_v11 = vpop.permute.xlu1 %1844 }
 0x2b9   : > { %v1827_v8 = vpop.permute.xlu0 %1826 }
 0x2ba   : > { %v1979_v1 = vsel %vm470_vm2, %v1971_v49, %v1827_v8 }
 0x2bb   : > { %v1987_v23 = vsel %vm479_vm3, %v1979_v1, %v1859_v60 }
 0x2bd   : > { %2600 = vrot.lane.b32.xlu2 %v5194_v61, %s3721_s8 }
 0x2be   : > { %2568 = vrot.lane.b32.xlu1 %v5161_v47, %s3720_s7 }
 0x2bf   : > { %2536 = vrot.lane.b32.xlu0 %v5097_v36, %s3719_s6  ;;  %v1887_v45 = vpop.permute.xlu2 %1886 }
 0x2c0   : > { %v1851_v57 = vpop.permute.xlu1 %1850 }
 0x2c1   : > { %v5603_v39 = vsel %vm479_vm3, %v5485_v53, %v1851_v57  ;;  %v1849_v3 = vpop.permute.xlu0 %1848 }
 0x2c2   : > { %v5606_v27 = vsel %vm479_vm3, %v1974_v48, %v1849_v3  ;;  %v3426_v48 = vld [vmem:[%s3807_s5 + $0x232] sm:$0xff] }
 0x2c5   : > { %2696 = vrot.lane.b32.xlu2 %v5376_v30, %s3724_s11  ;;  %v3410_v30 = vld [vmem:[%s3807_s5 + $0x231] sm:$0xff] }
 0x2c6   : > { %2664 = vrot.lane.b32.xlu1 %v5321_v5, %s3723_s10 }
 0x2c7   : > { %2632 = vrot.lane.b32.xlu0 %v5259_v34, %s3722_s9  ;;  %v1909_v36 = vpop.permute.xlu2 %1908 }
 0x2c8   : > { %v1857_v47 = vpop.permute.xlu1 %1856 }
 0x2c9   : > { %v1986_v61 = vsel %vm479_vm3, %v5512_v9, %v1857_v47  ;;  %v1855_v53 = vpop.permute.xlu0 %1854  ;;  %v3376_v9 = vld [vmem:[%s6186_s1 + $0x70] sm:$0x1f] }
 0x2ca   : > { %v1985_v2 = vsel %vm479_vm3, %v1977_v56, %v1855_v53  ;;  %3377 = vmatpush.msk.msrb.mxu0 %vm845_vm0, %v3376_v9 }
 0x2cb   : > { %v5620_v41 = vsel %vm488_vm4, %v1985_v2, %v1887_v45 }
 0x2cc   : > { %2057 = vmatpush.msrb.mxu0 %v3375_v13 }
 0x2cd   : > { %2286 = vrot.lane.b32.xlu2 %v3426_v48, %s3723_s10 }
 0x2ce   : > { %2254 = vrot.lane.b32.xlu1 %v3418_v18, %s3722_s9 }
 0x2cf   : > { %2222 = vrot.lane.b32.xlu0 %v3410_v30, %s3721_s8  ;;  %v5626_v34 = vpop.permute.xlu2 %1914  ;;  %v3420_v30 = vld [vmem:[%s3807_s5 + $0x1a2] sm:$0xff] }
 0x2d0   : > { %v1879_v5 = vpop.permute.xlu1 %1878 }
 0x2d1   : > { %v1877_v4 = vpop.permute.xlu0 %1876  ;;  %v1989_v47 = vsel %vm488_vm4, %v5552_v62, %v1879_v5  ;;  %v3428_v62 = vld [vmem:[%s3807_s5 + $0x252] sm:$0xff]  ;;  %v6451_v5 = vld [vmem:[#allocation17_spill] sm:$0xff] }
 0x2d5   : > { %2570 = vrot.lane.b32.xlu2 %v5158_v52, %s3720_s7  ;;  %v3374_v52 = vld [vmem:[%s6186_s1 + $0x60] sm:$0xff] }
 0x2d6   : > { %2318 = vrot.lane.b32.xlu1 %v3434_v50, %s3724_s11  ;;  %2058 = vmatpush.msrb.mxu0 %v3374_v52 }
 0x2d7   : > { %2538 = vrot.lane.b32.xlu0 %v5094_v44, %s3719_s6  ;;  %v5641_v54 = vpop.permute.xlu2 %1920 }
 0x2d8   : > { %v5643_v60 = vpop.permute.xlu1 %1884 }
 0x2d9   : > { %v5645_v22 = vpop.permute.xlu0 %1882 }
 0x2dd   : > { %2666 = vrot.lane.b32.xlu2 %v5316_v20, %s3723_s10 }
 0x2de   : > { %2634 = vrot.lane.b32.xlu1 %v5256_v16, %s3722_s9 }
 0x2df   : > { %2602 = vrot.lane.b32.xlu0 %v5215_v37, %s3721_s8  ;;  %v1943_v44 = vpop.permute.xlu2 %1942 }
 0x2e0   : > { %v1891_v46 = vpop.permute.xlu1 %1890 }
 0x2e1   : > { %v5657_v56 = vsel %vm488_vm4, %v1987_v23, %v1891_v46  ;;  %v1889_v7 = vpop.permute.xlu0 %1888  ;;  %v6448_v23 = vld [vmem:[#allocation22_spill] sm:$0xff]  ;;  %v1991_v46 = vsel %vm488_vm4, %v5603_v39, %v5645_v22  ;;  %v1992_v39 = vsel %vm488_vm4, %v5581_v6, %v5643_v60 }
 0x2e2   : > { %v5660_v28 = vsel %vm488_vm4, %v1986_v61, %v1889_v7 }
 0x2e5   : > { %2256 = vrot.lane.b32.xlu2 %v3419_v55, %s3722_s9 }
 0x2e6   : > { %2224 = vrot.lane.b32.xlu1 %v3411_v10, %s3721_s8  ;;  %v1999_v10 = vsel %vm497_vm5, %v1991_v46, %v5626_v34  ;;  %v6454_v34 = vld [vmem:[#allocation48_spill] sm:$0xff] }
 0x2e7   : > { %2698 = vrot.lane.b32.xlu0 %v5416_v33, %s3724_s11  ;;  %v5668_v16 = vpop.permute.xlu2 %1948  ;;  %v1980_v33 = vsel %vm479_vm3, %v5448_v26, %v5590_v11 }
 0x2e8   : > { %v1913_v37 = vpop.permute.xlu1 %1912  ;;  %v1988_v1 = vsel %vm488_vm4, %v1980_v33, %v1877_v4 }
 0x2e9   : > { %v1911_v20 = vpop.permute.xlu0 %1910  ;;  %v1996_v3 = vsel %vm497_vm5, %v1988_v1, %v1909_v36  ;;  %v6450_v36 = vld [vmem:[#allocation31_spill] sm:$0xff]  ;;  %v3429_v1 = vld [vmem:[%s3807_s5 + $0x262] sm:$0xff] }
 0x2ea   : > { %v1997_v61 = vsel %vm497_vm5, %v1989_v47, %v1911_v20 }
 0x2eb   : > { %v2005_v18 = vsel %vm506_vm7, %v1997_v61, %v1943_v44  ;;  %v3436_v44 = vld [vmem:[%s3807_s5 + $0x1a3] sm:$0xff] }
 0x2ed   : > { %2320 = vrot.lane.b32.xlu2 %v3435_v31, %s3724_s11  ;;  %v3389_v31 = vld [vmem:[%s3807_s5 + $0x1b0] sm:$0xff] }
 0x2ee   : > { %2540 = vrot.lane.b32.xlu1 %v5128_v63, %s3719_s6  ;;  %v6449_v63 = vld [vmem:[#allocation18_spill] sm:$0xff] }
 0x2ef   : > { %2288 = vrot.lane.b32.xlu0 %v3427_v59, %s3723_s10  ;;  %v5676_v15 = vpop.permute.xlu2 %1954  ;;  %v3512_v59 = vld [vmem:[%s6186_s1 + $0xa0] sm:$0x1f] }
 0x2f0   : > { %v5678_v49 = vpop.permute.xlu1 %1918  ;;  %3513 = vmatpush.msk.msrb.mxu2 %vm845_vm0, %v3512_v59  ;;  %v3430_v59 = vld [vmem:[%s3807_s5 + $0x272] sm:$0xff] }
 0x2f1   : > { %v1917_v8 = vpop.permute.xlu0 %1916 }
 0x2f2   : > { %v2000_v22 = vsel %vm497_vm5, %v1992_v39, %v1917_v8 }
 0x2f5   : > { %2636 = vrot.lane.b32.xlu2 %v5278_v29, %s3722_s9  ;;  %v3412_v29 = vld [vmem:[%s3807_s5 + $0x251] sm:$0xff] }
 0x2f6   : > { %2604 = vrot.lane.b32.xlu1 %v6448_v23, %s3721_s8  ;;  %v3421_v23 = vld [vmem:[%s3807_s5 + $0x1b2] sm:$0xff] }
 0x2f7   : > { %2572 = vrot.lane.b32.xlu0 %v6449_v63, %s3720_s7  ;;  %v5690_v45 = vpop.permute.xlu2 %2162  ;;  %v3510_v63 = vld [vmem:[%s6186_s1 + $0x90] sm:$0xff] }
 0x2f8   : > { %v1941_v57 = vpop.permute.xlu1 %1940 }
 0x2f9   : > { %v2004_v26 = vsel %vm506_vm7, %v1996_v3, %v1941_v57  ;;  %v5694_v11 = vpop.permute.xlu0 %1922  ;;  %v2001_v3 = vsel %vm497_vm5, %v5620_v41, %v5678_v49  ;;  %v6456_v41 = vld [vmem:[#allocation21_spill] sm:$0xff] }
 0x2fa   : > { %3378 = vmatmul.msk.f32.vlgmr.msrb.gmra.mxu0 %vm820_vm6, %v2004_v26  ;;  %v3443_v49 = vld [vmem:[%s6186_s1 + $0x80] sm:$0xff] }
 0x2fd   : > { %2226 = vrot.lane.b32.xlu2 %v3412_v29, %s3721_s8 }
 0x2fe   : > { %2700 = vrot.lane.b32.xlu1 %v5411_v40, %s3724_s11  ;;  %v1990_v40 = vsel %vm488_vm4, %v5606_v27, %v5588_v17  ;;  %v6452_v17 = vld [vmem:[#allocation27_spill] sm:$0xff]  ;;  %v6453_v27 = vld [vmem:[#allocation20_spill] sm:$0xff] }
 0x2ff   : > { %2668 = vrot.lane.b32.xlu0 %v6450_v36, %s3723_s10  ;;  %v5706_v53 = vpop.permute.xlu2 %2168  ;;  %v1998_v4 = vsel %vm497_vm5, %v1990_v40, %v1913_v37  ;;  %v3437_v36 = vld [vmem:[%s3807_s5 + $0x1b3] sm:$0xff]  ;;  %v2002_v40 = vsel %vm497_vm5, %v5660_v28, %v5641_v54  ;;  %v2003_v54 = vsel %vm497_vm5, %v5657_v56, %v5694_v11  ;;  %v6457_v28 = vld [vmem:[#allocation28_spill] sm:$0xff] }
 0x300   : > { %v1947_v2 = vpop.permute.xlu1 %1946  ;;  %v3414_v56 = vld [vmem:[%s3807_s5 + $0x271] sm:$0xff]  ;;  %v3406_v11 = vld [vmem:[%s3807_s5 + $0x1c1] sm:$0xff] }
 0x301   : > { %v1945_v48 = vpop.permute.xlu0 %1944  ;;  %v2007_v20 = vsel %vm506_vm7, %v1999_v10, %v1947_v2  ;;  %v3444_v2 = vld [vmem:[%s6186_s1 + $0x88] sm:$0x1f] }
 0x302   : > { %3379 = vmatmul.msk.f32.gmra.mxu0 %vm820_vm6, %v2005_v18  ;;  %v2006_v52 = vsel %vm506_vm7, %v1998_v4, %v1945_v48  ;;  %3445 = vmatpush.msk.msrb.mxu1 %vm845_vm0, %v3444_v2  ;;  %v3388_v48 = vld [vmem:[%s3807_s5 + $0x1a0] sm:$0xff] }
 0x303   : > { %v6455_v18 = vld [vmem:[#allocation24_spill] sm:$0xff] }
 0x304   : > { %2435 = vmatpush.msrb.mxu1 %v3443_v49 }
 0x305   : > { %2542 = vrot.lane.b32.xlu2 %v6451_v5, %s3719_s6 }
 0x306   : > { %2290 = vrot.lane.b32.xlu1 %v3428_v62, %s3723_s10  ;;  %v2344_v62 = vsel %vm461_vm1, %v3388_v48, %v5690_v45  ;;  %v3442_v45 = vld [vmem:[%s6186_s1 + $0x78] sm:$0xff] }
 0x307   : > { %2258 = vrot.lane.b32.xlu0 %v3420_v30, %s3722_s9  ;;  %v5720_v9 = vpop.permute.xlu2 %2190  ;;  %2436 = vmatpush.msrb.mxu1 %v3442_v45  ;;  %v3407_v48 = vld [vmem:[%s3807_s5 + $0x1d1] sm:$0xff]  ;;  %v3415_v45 = vld [vmem:[%s3807_s5 + $0x281] sm:$0xff] }
 0x308   : > { %v1953_v50 = vpop.permute.xlu1 %1952 }
 0x309   : > { %v1951_v13 = vpop.permute.xlu0 %1950 }
 0x30a   : > { %3380 = vmatmul.msk.f32.gmra.mxu0 %vm820_vm6, %v2006_v52  ;;  %v2009_v61 = vsel %vm506_vm7, %v2001_v3, %v1951_v13  ;;  %v2010_v52 = vsel %vm506_vm7, %v2002_v40, %v1953_v50 }
 0x30d   : > { %2606 = vrot.lane.b32.xlu2 %v6452_v17, %s3721_s8 }
 0x30e   : > { %2574 = vrot.lane.b32.xlu1 %v6453_v27, %s3720_s7  ;;  %v2011_v27 = vsel %vm506_vm7, %v2003_v54, %v5676_v15  ;;  %v3423_v54 = vld [vmem:[%s3807_s5 + $0x1d2] sm:$0xff] }
 0x30f   : > { %2322 = vrot.lane.b32.xlu0 %v3436_v44, %s3724_s11  ;;  %v2197_v7 = vpop.permute.xlu2 %2196  ;;  %v6458_v44 = vld [vmem:[#allocation32_spill] sm:$0xff] }
 0x310   : > { %v5733_v55 = vpop.permute.xlu1 %2160 }
 0x311   : > { %v5737_v37 = vpop.permute.xlu0 %2158 }
 0x312   : > { %3381 = vmatmul.msk.f32.gmra.mxu0 %vm820_vm6, %v2007_v20 }
 0x315   : > { %2702 = vrot.lane.b32.xlu2 %v5408_v42, %s3724_s11  ;;  %v2008_v42 = vsel %vm506_vm7, %v2000_v22, %v5668_v16  ;;  %v3413_v16 = vld [vmem:[%s3807_s5 + $0x261] sm:$0xff] }
 0x316   : > { %2670 = vrot.lane.b32.xlu1 %v5351_v58, %s3723_s10  ;;  %v3511_v58 = vld [vmem:[%s6186_s1 + $0x98] sm:$0xff] }
 0x317   : > { %2638 = vrot.lane.b32.xlu0 %v6454_v34, %s3722_s9  ;;  %v2601_v6 = vpop.permute.xlu2 %2600  ;;  %2813 = vmatpush.msrb.mxu2 %v3511_v58 }
 0x318   : > { %v5755_v60 = vpop.permute.xlu1 %2166 }
 0x319   : > { %v2165_v8 = vpop.permute.xlu0 %2164  ;;  %2814 = vmatpush.msrb.mxu2 %v3510_v63  ;;  %v3483_v63 = vld [vmem:[%s3807_s5 + $0x131] sm:$0xff] }
 0x31a   : > { %v2345_v33 = vsel %vm461_vm1, %v3389_v31, %v2165_v8  ;;  %3382 = vmatmul.msk.f32.gmra.mxu0 %vm820_vm6, %v2008_v42  ;;  %v3467_v31 = vld [vmem:[%s3807_s5 + $0x130] sm:$0xff] }
 0x31b   : > { %v5771_v57 = vsel %vm470_vm2, %v2345_v33, %v2197_v7 }
 0x31d   : > { %2292 = vrot.lane.b32.xlu2 %v3429_v1, %s3723_s10 }
 0x31e   : > { %2260 = vrot.lane.b32.xlu1 %v3421_v23, %s3722_s9 }
 0x31f   : > { %2228 = vrot.lane.b32.xlu0 %v3413_v16, %s3721_s8  ;;  %v2697_v26 = vpop.permute.xlu2 %2696  ;;  %v3475_v16 = vld [vmem:[%s3807_s5 + $0x81] sm:$0xff] }
 0x320   : > { %v5780_v29 = vpop.permute.xlu1 %2172 }
 0x321   : > { %v5782_v47 = vpop.permute.xlu0 %2170 }
 0x322   : > { %3383 = vmatmul.msk.f32.gmra.mxu0 %vm820_vm6, %v2009_v61 }
 0x325   : > { %2576 = vrot.lane.b32.xlu2 %v6455_v18, %s3720_s7  ;;  %v3499_v18 = vld [vmem:[%s3807_s5 + $0x132] sm:$0xff] }
 0x326   : > { %2324 = vrot.lane.b32.xlu1 %v3437_v36, %s3724_s11 }
 0x327   : > { %2544 = vrot.lane.b32.xlu0 %v6456_v41, %s3719_s6  ;;  %v2287_v30 = vpop.permute.xlu2 %2286  ;;  %v3491_v41 = vld [vmem:[%s3807_s5 + $0x82] sm:$0xff] }
 0x328   : > { %v2195_v5 = vpop.permute.xlu1 %2194 }
 0x329   : > { %v5806_v4 = vsel %vm470_vm2, %v2344_v62, %v2195_v5  ;;  %v5808_v13 = vpop.permute.xlu0 %2192 }
 0x32a   : > { %3384 = vmatmul.msk.f32.gmra.mxu0 %vm820_vm6, %v2010_v52 }
 0x32d   : > { %2672 = vrot.lane.b32.xlu2 %v5346_v35, %s3723_s10 }
 0x32e   : > { %2640 = vrot.lane.b32.xlu1 %v6457_v28, %s3722_s9  ;;  %v3507_v28 = vld [vmem:[%s3807_s5 + $0x83] sm:$0xff] }
 0x32f   : > { %2608 = vrot.lane.b32.xlu0 %v6458_v44, %s3721_s8  ;;  %v2571_v50 = vpop.permute.xlu2 %2570 }
 0x330   : > { %v2569_v46 = vpop.permute.xlu1 %2568 }
 0x331   : > { %v2537_v17 = vpop.permute.xlu0 %2536 }
 0x332   : > { %3385 = vmatmul.msk.f32.gmra.mxu0 %vm820_vm6, %v2011_v27  ;;  %v2720_v35 = vsel %vm461_vm1, %v5526_v25, %v2537_v17  ;;  %v3386_v25 = vld [vmem:[%s3807_s5 + $0x180] sm:$0xff]  ;;  %v3387_v17 = vld [vmem:[%s3807_s5 + $0x190] sm:$0xff] }
 0x333   : > { %v2728_v7 = vsel %vm470_vm2, %v2720_v35, %v2569_v46  ;;  %v2342_v42 = vsel %vm461_vm1, %v3386_v25, %v5737_v37  ;;  %v3438_v37 = vld [vmem:[%s3807_s5 + $0x1c3] sm:$0xff] }
 0x334   : > { %v2736_v20 = vsel %vm479_vm3, %v2728_v7, %v2601_v6  ;;  %v2350_v33 = vsel %vm470_vm2, %v2342_v42, %v5720_v9  ;;  %v2343_v7 = vsel %vm461_vm1, %v3387_v17, %v5733_v55 }
 0x335   : > { %2230 = vrot.lane.b32.xlu2 %v3414_v56, %s3721_s8  ;;  %v3468_v56 = vld [vmem:[%s3807_s5 + $0x140] sm:$0xff] }
 0x336   : > { %2704 = vrot.lane.b32.xlu1 %v5453_v32, %s3724_s11  ;;  %v3422_v32 = vld [vmem:[%s3807_s5 + $0x1c2] sm:$0xff] }
 0x337   : > { %2198 = vrot.lane.b32.xlu0 %v3406_v11, %s3720_s7  ;;  %v2667_v15 = vpop.permute.xlu2 %2666  ;;  %v3439_v11 = vld [vmem:[%s3807_s5 + $0x1d3] sm:$0xff] }
 0x338   : > { %v2665_v10 = vpop.permute.xlu1 %2664 }
 0x339   : > { %v2633_v39 = vpop.permute.xlu0 %2632 }
 0x33a   : > { %v2744_v22 = vsel %vm488_vm4, %v2736_v20, %v2633_v39  ;;  %v2351_v20 = vsel %vm470_vm2, %v2343_v7, %v5808_v13  ;;  %v3476_v13 = vld [vmem:[%s3807_s5 + $0x91] sm:$0xff] }
 0x33b   : > { %v2752_v34 = vsel %vm497_vm5, %v2744_v22, %v2665_v10  ;;  %v3431_v10 = vld [vmem:[%s3807_s5 + $0x282] sm:$0xff] }
 0x33c   : > { %v2760_v8 = vsel %vm506_vm7, %v2752_v34, %v2697_v26 }
 0x33d   : > { %3514 = vmatmul.msk.f32.vlgmr.msrb.gmra.mxu2 %vm820_vm6, %v2760_v8  ;;  %2546 = vrot.lane.b32.xlu2 %v3467_v31, %s3719_s6  ;;  %v6460_v8 = vld [vmem:[#allocation60_spill] sm:$0xff] }
 0x33e   : > { %2294 = vrot.lane.b32.xlu1 %v3430_v59, %s3723_s10  ;;  %v6459_v59 = vld [vmem:[#allocation23_spill] sm:$0xff] }
 0x33f   : > { %2262 = vrot.lane.b32.xlu0 %v3422_v32, %s3722_s9  ;;  %v2257_v6 = vpop.permute.xlu2 %2256 }
 0x340   : > { %v2255_v58 = vpop.permute.xlu1 %2254 }
 0x341   : > { %v2223_v1 = vpop.permute.xlu0 %2222 }
 0x342   : > { %v2358_v23 = vsel %vm479_vm3, %v2350_v33, %v2223_v1  ;;  %v3408_v1 = vld [vmem:[%s3807_s5 + $0x1e1] sm:$0xff] }
 0x343   : > { %v2366_v3 = vsel %vm488_vm4, %v2358_v23, %v2255_v58 }
 0x344   : > { %v2374_v9 = vsel %vm497_vm5, %v2366_v3, %v2287_v30 }
 0x345   : > { %2610 = vrot.lane.b32.xlu2 %v3483_v63, %s3721_s8 }
 0x346   : > { %2578 = vrot.lane.b32.xlu1 %v3475_v16, %s3720_s7 }
 0x347   : > { %2326 = vrot.lane.b32.xlu0 %v3438_v37, %s3724_s11  ;;  %v2321_v26 = vpop.permute.xlu2 %2320 }
 0x348   : > { %v2319_v61 = vpop.permute.xlu1 %2318 }
 0x349   : > { %v2382_v36 = vsel %vm506_vm7, %v2374_v9, %v2319_v61  ;;  %v2539_v2 = vpop.permute.xlu0 %2538  ;;  %v3424_v61 = vld [vmem:[%s3807_s5 + $0x1e2] sm:$0xff]  ;;  %v3432_v9 = vld [vmem:[%s3807_s5 + $0x292] sm:$0xff] }
 0x34a   : > { %3446 = vmatmul.msk.f32.vlgmr.msrb.gmra.mxu1 %vm820_vm6, %v2382_v36  ;;  %v2721_v49 = vsel %vm461_vm1, %v5523_v38, %v2539_v2 }
 0x34b   : > { %v2729_v40 = vsel %vm470_vm2, %v2721_v49, %v2571_v50 }
 0x34d   : > { %2200 = vrot.lane.b32.xlu2 %v3407_v48, %s3720_s7  ;;  %v3440_v48 = vld [vmem:[%s3807_s5 + $0x1e3] sm:$0xff] }
 0x34e   : > { %2674 = vrot.lane.b32.xlu1 %v3499_v18, %s3723_s10  ;;  %v3477_v18 = vld [vmem:[%s3807_s5 + $0xa1] sm:$0xff] }
 0x34f   : > { %2642 = vrot.lane.b32.xlu0 %v3491_v41, %s3722_s9  ;;  %v2637_v62 = vpop.permute.xlu2 %2636  ;;  %v3469_v41 = vld [vmem:[%s3807_s5 + $0x150] sm:$0xff] }
 0x350   : > { %v2635_v30 = vpop.permute.xlu1 %2634 }
 0x351   : > { %v2603_v5 = vpop.permute.xlu0 %2602 }
 0x352   : > { %v2737_v52 = vsel %vm479_vm3, %v2729_v40, %v2603_v5 }
 0x353   : > { %v2745_v44 = vsel %vm488_vm4, %v2737_v52, %v2635_v30 }
 0x354   : > { %v2753_v27 = vsel %vm497_vm5, %v2745_v44, %v2667_v15 }
 0x355   : > { %2264 = vrot.lane.b32.xlu2 %v3423_v54, %s3722_s9  ;;  %v3501_v54 = vld [vmem:[%s3807_s5 + $0x152] sm:$0xff] }
 0x356   : > { %2232 = vrot.lane.b32.xlu1 %v3415_v45, %s3721_s8 }
 0x357   : > { %2706 = vrot.lane.b32.xlu0 %v3507_v28, %s3724_s11  ;;  %v2227_v38 = vpop.permute.xlu2 %2226  ;;  %v3485_v28 = vld [vmem:[%s3807_s5 + $0x151] sm:$0xff] }
 0x358   : > { %v2225_v46 = vpop.permute.xlu1 %2224  ;;  %v2360_v49 = vsel %vm479_vm3, %v5806_v4, %v2227_v38  ;;  %v3493_v4 = vld [vmem:[%s3807_s5 + $0xa2] sm:$0xff] }
 0x359   : > { %v2699_v50 = vpop.permute.xlu0 %2698  ;;  %v2359_v39 = vsel %vm479_vm3, %v2351_v20, %v2225_v46 }
 0x35a   : > { %v2761_v35 = vsel %vm506_vm7, %v2753_v27, %v2699_v50  ;;  %v2367_v25 = vsel %vm488_vm4, %v2359_v39, %v2257_v6 }
 0x35b   : > { %3515 = vmatmul.msk.f32.gmra.mxu2 %vm820_vm6, %v2761_v35 }
 0x35d   : > { %2328 = vrot.lane.b32.xlu2 %v3439_v11, %s3724_s11  ;;  %v3417_v11 = vld [vmem:[%s3807_s5 + $0x2a1] sm:$0xff] }
 0x35e   : > { %2548 = vrot.lane.b32.xlu1 %v3468_v56, %s3719_s6  ;;  %v3509_v56 = vld [vmem:[%s3807_s5 + $0xa3] sm:$0xff] }
 0x35f   : > { %2296 = vrot.lane.b32.xlu0 %v3431_v10, %s3723_s10  ;;  %v2543_v15 = vpop.permute.xlu2 %2542  ;;  %v3409_v10 = vld [vmem:[%s3807_s5 + $0x1f1] sm:$0xff] }
 0x360   : > { %v2541_v22 = vpop.permute.xlu1 %2540  ;;  %v2723_v44 = vsel %vm461_vm1, %v5562_v0, %v2543_v15 }
 0x361   : > { %v2289_v34 = vpop.permute.xlu0 %2288  ;;  %v2722_v58 = vsel %vm461_vm1, %v5468_v14, %v2541_v22 }
 0x362   : > { %v2375_v55 = vsel %vm497_vm5, %v2367_v25, %v2289_v34  ;;  %v3433_v25 = vld [vmem:[%s3807_s5 + $0x2a2] sm:$0xff]  ;;  %v3441_v34 = vld [vmem:[%s3807_s5 + $0x1f3] sm:$0xff] }
 0x363   : > { %v2383_v31 = vsel %vm506_vm7, %v2375_v55, %v2321_v26  ;;  %v3425_v55 = vld [vmem:[%s3807_s5 + $0x1f2] sm:$0xff] }
 0x364   : > { %3447 = vmatmul.msk.f32.gmra.mxu1 %vm820_vm6, %v2383_v31 }
 0x365   : > { %2644 = vrot.lane.b32.xlu2 %v6460_v8, %s3722_s9 }
 0x366   : > { %2612 = vrot.lane.b32.xlu1 %v6459_v59, %s3721_s8 }
 0x367   : > { %2580 = vrot.lane.b32.xlu0 %v3476_v13, %s3720_s7  ;;  %v2607_v32 = vpop.permute.xlu2 %2606 }
 0x368   : > { %v2605_v42 = vpop.permute.xlu1 %2604 }
 0x369   : > { %v2573_v6 = vpop.permute.xlu0 %2572 }
 0x36a   : > { %v2730_v33 = vsel %vm470_vm2, %v2722_v58, %v2573_v6 }
 0x36b   : > { %v2738_v23 = vsel %vm479_vm3, %v2730_v33, %v2605_v42 }
 0x36c   : > { %v2746_v14 = vsel %vm488_vm4, %v2738_v23, %v2637_v62 }
 0x36d   : > { %2708 = vrot.lane.b32.xlu2 %v5445_v21, %s3724_s11  ;;  %v3416_v21 = vld [vmem:[%s3807_s5 + $0x291] sm:$0xff] }
 0x36e   : > { %2202 = vrot.lane.b32.xlu1 %v3408_v1, %s3720_s7 }
 0x36f   : > { %2676 = vrot.lane.b32.xlu0 %v5382_v43, %s3723_s10  ;;  %v2703_v63 = vpop.permute.xlu2 %2702 }
 0x370   : > { %v2701_v16 = vpop.permute.xlu1 %2700 }
 0x371   : > { %v2669_v37 = vpop.permute.xlu0 %2668 }
 0x372   : > { %v2754_v3 = vsel %vm497_vm5, %v2746_v14, %v2669_v37 }
 0x373   : > { %v2762_v26 = vsel %vm506_vm7, %v2754_v3, %v2701_v16 }
 0x374   : > { %3516 = vmatmul.msk.f32.gmra.mxu2 %vm820_vm6, %v2762_v26 }
 0x375   : > { %2298 = vrot.lane.b32.xlu2 %v3432_v9, %s3723_s10 }
 0x376   : > { %2266 = vrot.lane.b32.xlu1 %v3424_v61, %s3722_s9  ;;  %v3390_v61 = vld [vmem:[%s3807_s5 + $0x1c0] sm:$0xff] }
 0x377   : > { %2234 = vrot.lane.b32.xlu0 %v3416_v21, %s3721_s8  ;;  %v2293_v43 = vpop.permute.xlu2 %2292 }
 0x378   : > { %v2291_v36 = vpop.permute.xlu1 %2290 }
 0x379   : > { %v2259_v2 = vpop.permute.xlu0 %2258 }
 0x37a   : > { %v2368_v62 = vsel %vm488_vm4, %v2360_v49, %v2259_v2 }
 0x37b   : > { %v2376_v52 = vsel %vm497_vm5, %v2368_v62, %v2291_v36  ;;  %v5983_v62 = vpop.f32.mrf.mxu3 }
 0x37d   : > { %2582 = vrot.lane.b32.xlu2 %v3477_v18, %s3720_s7 }
 0x37e   : > { %2330 = vrot.lane.b32.xlu1 %v3440_v48, %s3724_s11 }
 0x37f   : > { %2550 = vrot.lane.b32.xlu0 %v3469_v41, %s3719_s6  ;;  %v2577_v30 = vpop.permute.xlu2 %2576  ;;  %s6001_s6 = sand.u32 1, %s3709_s16  }
 0x380   : > { %v2575_v5 = vpop.permute.xlu1 %2574  ;;  %s2911_s30 = scalar_lea.sflag [#allocation3], %s6001_s6 }
 0x381   : > { %v2323_v40 = vpop.permute.xlu0 %2322  ;;  %v2731_v38 = vsel %vm470_vm2, %v2723_v44, %v2575_v5  ;;  %v5995_v44 = vpop.f32.mrf.mxu2 }
 0x382   : > { %v2384_v45 = vsel %vm506_vm7, %v2376_v52, %v2323_v40  ;;  %v2739_v50 = vsel %vm479_vm3, %v2731_v38, %v2607_v32  ;;  %v5987_v52 = vpop.f32.mrf.mxu0 }
 0x383   : > { %3448 = vmatmul.msk.f32.gmra.mxu1 %vm820_vm6, %v2384_v45  ;;  %v5991_v45 = vpop.f32.mrf.mxu1 }
 0x385   : > { %2678 = vrot.lane.b32.xlu2 %v3501_v54, %s3723_s10  ;;  %v6462_v54 = vld [vmem:[#allocation26_spill] sm:$0xff] }
 0x386   : > { %2646 = vrot.lane.b32.xlu1 %v3493_v4, %s3722_s9  ;;  %v6461_v4 = vld [vmem:[#allocation25_spill] sm:$0xff] }
 0x387   : > { %2614 = vrot.lane.b32.xlu0 %v3485_v28, %s3721_s8  ;;  %v2673_v46 = vpop.permute.xlu2 %2672  ;;  %v935_v28 = vadd.f32 %v6462_v54, %v6461_v4 }
 0x388   : > { %v2671_v17 = vpop.permute.xlu1 %2670 }
 0x389   : > { %v2639_v27 = vpop.permute.xlu0 %2638 }
 0x38a   : > { %v2747_v35 = vsel %vm488_vm4, %v2739_v50, %v2639_v27  ;;  %v6463_v27 = vld [vmem:[#allocation38_spill] sm:$0xff] }
 0x38b   : > { %v2755_v0 = vsel %vm497_vm5, %v2747_v35, %v2671_v17  ;;  %v1328_v35 = vadd.f32 %v6463_v27, %v935_v28 }
 0x38c   : > { %v2763_v7 = vsel %vm506_vm7, %v2755_v0, %v2703_v63 }
 0x38d   : > { %3517 = vmatmul.msk.f32.gmra.mxu2 %vm820_vm6, %v2763_v7  ;;  %2236 = vrot.lane.b32.xlu2 %v3417_v11, %s3721_s8  ;;  %v2060_v11 = vpop.f32.mrf.mxu0 }
 0x38e   : > { %2710 = vrot.lane.b32.xlu1 %v3509_v56, %s3724_s11 }
 0x38f   : > { %2204 = vrot.lane.b32.xlu0 %v3409_v10, %s3720_s7  ;;  %v2231_v15 = vpop.permute.xlu2 %2230  ;;  %s3079_s7 = sshll.u32 %s6001_s6, 6 }
 0x390   : > { %v2261_v20 = vpop.permute.xlu1 %2260  ;;  %s6012_s8 = scalar_lea.vmem [#allocation2], %s3079_s7 }
 0x391   : > { %v2229_v39 = vpop.permute.xlu0 %2228  ;;  %s2931_s28 = sshll.u32 %s6012_s8, 4  ;;  %s2932_s28 = int_to_ptr.vmem [resolvable:$true] %s2931_s28 }
 0x392   : > { %v2361_v22 = vsel %vm479_vm3, %v5771_v57, %v2229_v39  ;;  %v3458_v57 = vld [vmem:[%s3807_s5 + $0x70] sm:$0xff] }
 0x393   : > { %v2369_v31 = vsel %vm488_vm4, %v2361_v22, %v2261_v20 }
 0x394   : > { %v2377_v59 = vsel %vm497_vm5, %v2369_v31, %v2293_v43  ;;  %v2346_v43 = vsel %vm461_vm1, %v3390_v61, %v5755_v60  ;;  %v3459_v60 = vld [vmem:[%s3807_s5 + $0x80] sm:$0xff] }
 0x395   : > { %2332 = vrot.lane.b32.xlu2 %v3441_v34, %s3724_s11  ;;  %v3391_v34 = vld [vmem:[%s3807_s5 + $0x1d0] sm:$0xff] }
 0x396   : > { %2300 = vrot.lane.b32.xlu1 %v3433_v25, %s3723_s10 }
 0x397   : > { %2268 = vrot.lane.b32.xlu0 %v3425_v55, %s3722_s9  ;;  %v2547_v42 = vpop.permute.xlu2 %2546 }
 0x398   : > { %v2325_v13 = vpop.permute.xlu1 %2324  ;;  %v2725_v17 = vsel %vm461_vm1, %v3459_v60, %v2547_v42 }
 0x399   : > { %v2545_v8 = vpop.permute.xlu0 %2544  ;;  %v2385_v32 = vsel %vm506_vm7, %v2377_v59, %v2325_v13 }
 0x39a   : > { %3449 = vmatmul.msk.f32.gmra.mxu1 %vm820_vm6, %v2385_v32  ;;  %v2724_v6 = vsel %vm461_vm1, %v3458_v57, %v2545_v8  ;;  %v2347_v32 = vsel %vm461_vm1, %v3391_v34, %v5706_v53 }
 0x39b   : > { %v2732_v33 = vsel %vm470_vm2, %v2724_v6, %v2577_v30 }
 0x39f   : > { %v2611_v16 = vpop.permute.xlu2 %2610 }
 0x3a0   : > { %v2641_v58 = vpop.permute.xlu1 %2640 }
 0x3a1   : > { %v2609_v1 = vpop.permute.xlu0 %2608 }
 0x3a2   : > { %v2740_v23 = vsel %vm479_vm3, %v2732_v33, %v2609_v1 }
 0x3a3   : > { %v2748_v63 = vsel %vm488_vm4, %v2740_v23, %v2641_v58 }
 0x3a4   : > { %v2756_v37 = vsel %vm497_vm5, %v2748_v63, %v2673_v46  ;;  %v1682_v46 = vpop.f32.mrf.mxu3 }
 0x3a5   : > { %v1706_v7 = vadd.f32 %v1682_v46, %v1328_v35 }
 0x3a7   : > { %v2201_v9 = vpop.permute.xlu2 %2200  ;;  %v2084_v20 = vadd.f32 %v2060_v11, %v1706_v7  ;;  %v2348_v11 = vsel %vm461_vm1, %v5518_v51, %v5782_v47  ;;  %v3461_v47 = vld [vmem:[%s3807_s5 + $0xa0] sm:$0xff] }
 0x3a8   : > { %v2705_v14 = vpop.permute.xlu1 %2704  ;;  %v2355_v42 = vsel %vm470_vm2, %v2347_v32, %v2201_v9 }
 0x3a9   : > { %v2199_v3 = vpop.permute.xlu0 %2198  ;;  %v2764_v26 = vsel %vm506_vm7, %v2756_v37, %v2705_v14 }
 0x3aa   : > { %3518 = vmatmul.msk.f32.gmra.mxu2 %vm820_vm6, %v2764_v26  ;;  %v2354_v2 = vsel %vm470_vm2, %v2346_v43, %v2199_v3  ;;  %v6464_v3 = vld [vmem:[#allocation55_spill] sm:$0xff]  ;;  %v6465_v26 = vld [vmem:[#allocation42_spill] sm:$0xff] }
 0x3ab   : > { %v2362_v48 = vsel %vm479_vm3, %v2354_v2, %v2231_v15  ;;  %v938_v61 = vadd.f32 %v6465_v26, %v6464_v3 }
 0x3af   : > { %v2265_v49 = vpop.permute.xlu2 %2264 }
 0x3b0   : > { %v2295_v21 = vpop.permute.xlu1 %2294 }
 0x3b1   : > { %v2263_v36 = vpop.permute.xlu0 %2262 }
 0x3b2   : > { %v2370_v18 = vsel %vm488_vm4, %v2362_v48, %v2263_v36  ;;  %v6466_v36 = vld [vmem:[#allocation35_spill] sm:$0xff]  ;;  %v2063_v48 = vpop.f32.mrf.mxu0 }
 0x3b3   : > { %v2378_v5 = vsel %vm497_vm5, %v2370_v18, %v2295_v21  ;;  %v1685_v21 = vpop.f32.mrf.mxu3  ;;  %v1329_v2 = vadd.f32 %v6466_v36, %v938_v61 }
 0x3b5   : > { %v1707_v18 = vadd.f32 %v1685_v21, %v1329_v2  ;;  %v3393_v21 = vld [vmem:[%s3807_s5 + $0x1f0] sm:$0xff] }
 0x3b7   : > { %v2329_v56 = vpop.permute.xlu2 %2328 }
 0x3b8   : > { %v2579_v41 = vpop.permute.xlu1 %2578 }
 0x3b9   : > { %v2327_v30 = vpop.permute.xlu0 %2326  ;;  %v2733_v0 = vsel %vm470_vm2, %v2725_v17, %v2579_v41 }
 0x3ba   : > { %v2386_v40 = vsel %vm506_vm7, %v2378_v5, %v2327_v30  ;;  %v2741_v10 = vsel %vm479_vm3, %v2733_v0, %v2611_v16  ;;  %v3460_v16 = vld [vmem:[%s3807_s5 + $0x90] sm:$0xff]  ;;  %s3527_s5 = sshll.u32 %s3773_s19, 6 }
 0x3bb   : > { %3450 = vmatmul.msk.f32.gmra.mxu1 %vm820_vm6, %v2386_v40  ;;  %s2930_s11 = scalar_lea.hbm %s6187_s2, %s3527_s5 }
 0x3bc   : > { %s2933_s29 = sshll.u32 %s2930_s11, 4  ;;  %s2934_s29 = int_to_ptr.hbm [resolvable:$true] %s2933_s29 }
 0x3bd   : > { %s3609_s12 = sshra.s32 %s2934_s29, 4  ;;  %s3610_s12 = int_to_ptr.hbm [resolvable:$true] %s3609_s12 }
 0x3be   : > { %s3611_s13 = scalar_lea.hbm %s3610_s12, 64  ;;  %p3616_p0 = scmp.lt.s32.totalorder %s3610_s12, %s6187_s2 }
 0x3bf   : > { %v2645_v57 = vpop.permute.xlu2 %2644  ;;  %p3612_p11 = scmp.ne.s32.totalorder %s3610_s12, %s3611_s13  ;;  %p3617_p1 = scmp.lt.s32.totalorder %s3615_s23, %s3611_s13 }
 0x3c0   : > { %v2675_v38 = vpop.permute.xlu1 %2674  ;;  %v2816_v55 = vpop.f32.mrf.mxu2 }
 0x3c1   : > { %v2643_v50 = vpop.permute.xlu0 %2642  ;;  %p3613_p12 = pnand %p3612_p11, %p3792_p5  ;;  %p3618_p2 = por %p3617_p1, %p3616_p0 }
 0x3c2   : > { %v2749_v39 = vsel %vm488_vm4, %v2741_v10, %v2643_v50 }
 0x3c3   : > { %v2757_v13 = vsel %vm497_vm5, %v2749_v39, %v2675_v38  ;;  %p3614_p13 = pneg %p3613_p12 }
 0x3c5   : > { %p3619_p3 = pnand %p3618_p2, %p3614_p13 }
 0x3c7   : > { %v2438_v15 = vpop.f32.mrf.mxu1  ;;  %v2709_v53 = vpop.permute.xlu2 %2708 }
 0x3c8   : > { %v2462_v22 = vadd.f32 %v2438_v15, %v2084_v20  ;;  %v2233_v25 = vpop.permute.xlu1 %2232 }
 0x3c9   : > { %v2707_v31 = vpop.permute.xlu0 %2706  ;;  %v2363_v6 = vsel %vm479_vm3, %v2355_v42, %v2233_v25 }
 0x3ca   : > { %v2840_v59 = vadd.f32 %v2816_v55, %v2462_v22  ;;  %v2765_v8 = vsel %vm506_vm7, %v2757_v13, %v2707_v31  ;;  %v2371_v33 = vsel %vm488_vm4, %v2363_v6, %v2265_v49  ;;  %v2085_v49 = vadd.f32 %v2063_v48, %v1707_v18 }
 0x3cb   : > { %3519 = vmatmul.msk.f32.gmra.mxu2 %vm820_vm6, %v2765_v8 }
 0x3cc   : > { %2849 = vst.msk [vmem:[%s6012_s8] sm:$0xff] %vm2848_vm8, %v2840_v59  ;;  %v2880_v17 = vmul.f32 %v2840_v59, %v2840_v59  ;;  %v2857_v27 = vsel %vm2848_vm8, %v2840_v59, 0.0 }
 0x3ce   : > { %v2888_v7 = vsel %vm2848_vm8, %v2880_v17, 0.0 }
 0x3cf   : > { %v2299_v5 = vpop.permute.xlu2 %2298 }
 0x3d0   : > { %v2549_v58 = vpop.permute.xlu1 %2548 }
 0x3d1   : > { %v2297_v1 = vpop.permute.xlu0 %2296  ;;  %v2726_v9 = vsel %vm461_vm1, %v3460_v16, %v2549_v58  ;;  %v1688_v58 = vpop.f32.mrf.mxu3 }
 0x3d2   : > { %v2379_v23 = vsel %vm497_vm5, %v2371_v33, %v2297_v1  ;;  %v2066_v1 = vpop.f32.mrf.mxu0 }
 0x3d3   : > { %v2387_v63 = vsel %vm506_vm7, %v2379_v23, %v2329_v56  ;;  %v1708_v23 = vadd.f32 %v1688_v58, %v5420_v12  ;;  %v2349_v12 = vsel %vm461_vm1, %v3393_v21, %v5780_v29 }
 0x3d4   : > { %3451 = vmatmul.msk.f32.gmra.mxu1 %vm820_vm6, %v2387_v63 }
 0x3d7   : > { %v2583_v34 = vpop.permute.xlu2 %2582 }
 0x3d8   : > { %v2613_v14 = vpop.permute.xlu1 %2612 }
 0x3d9   : > { %v2581_v37 = vpop.permute.xlu0 %2580 }
 0x3da   : > { %v2734_v43 = vsel %vm470_vm2, %v2726_v9, %v2581_v37 }
 0x3db   : > { %v2742_v41 = vsel %vm479_vm3, %v2734_v43, %v2613_v14 }
 0x3dc   : > { %v2750_v40 = vsel %vm488_vm4, %v2742_v41, %v2645_v57 }
 0x3de   : > { %v2819_v38 = vpop.f32.mrf.mxu2 }
 0x3df   : > { %v2679_v8 = vpop.permute.xlu2 %2678 }
 0x3e0   : > { %v2203_v30 = vpop.permute.xlu1 %2202 }
 0x3e1   : > { %v2677_v60 = vpop.permute.xlu0 %2676  ;;  %v2441_v4 = vpop.f32.mrf.mxu1  ;;  %v2356_v39 = vsel %vm470_vm2, %v2348_v11, %v2203_v30 }
 0x3e2   : > { %v2758_v54 = vsel %vm497_vm5, %v2750_v40, %v2677_v60  ;;  %v2463_v28 = vadd.f32 %v2441_v4, %v2085_v49 }
 0x3e3   : > { %v2766_v46 = vsel %vm506_vm7, %v2758_v54, %v2709_v53  ;;  %v2086_v53 = vadd.f32 %v2066_v1, %v1708_v23 }
 0x3e4   : > { %v2841_v50 = vadd.f32 %v2819_v38, %v2463_v28  ;;  %3520 = vmatmul.msk.f32.gmra.mxu2 %vm820_vm6, %v2766_v46  ;;  %v1691_v38 = vpop.f32.mrf.mxu3  ;;  %v2069_v46 = vpop.f32.mrf.mxu0 }
 0x3e5   : > { %v1709_v17 = vadd.f32 %v1691_v38, %v5459_v24 }
 0x3e6   : > { %2850 = vst.msk [vmem:[%s6012_s8 + $0x8] sm:$0xff] %vm2848_vm8, %v2841_v50  ;;  %v2858_v35 = vsel %vm2848_vm8, %v2841_v50, 0.0  ;;  %v2881_v0 = vmul.f32 %v2841_v50, %v2841_v50 }
 0x3e7   : > { %v2859_v56 = vadd.f32 %v2858_v35, %v2857_v27  ;;  %v2237_v16 = vpop.permute.xlu2 %2236  ;;  %v2087_v50 = vadd.f32 %v2069_v46, %v1709_v17 }
 0x3e8   : > { %v2889_v10 = vsel %vm2848_vm8, %v2881_v0, 0.0  ;;  %v2267_v20 = vpop.permute.xlu1 %2266 }
 0x3e9   : > { %v2890_v15 = vadd.f32 %v2889_v10, %v2888_v7  ;;  %v2235_v22 = vpop.permute.xlu0 %2234 }
 0x3ea   : > { %v2364_v25 = vsel %vm479_vm3, %v2356_v39, %v2235_v22 }
 0x3eb   : > { %v2372_v55 = vsel %vm488_vm4, %v2364_v25, %v2267_v20 }
 0x3ec   : > { %v2380_v31 = vsel %vm497_vm5, %v2372_v55, %v2299_v5  ;;  %v2072_v22 = vpop.f32.mrf.mxu0 }
 0x3ef   : > { %v2333_v4 = vpop.permute.xlu2 %2332 }
 0x3f0   : > { %v2331_v13 = vpop.permute.xlu1 %2330 }
 0x3f1   : > { %v2551_v59 = vpop.permute.xlu0 %2550  ;;  %v2388_v51 = vsel %vm506_vm7, %v2380_v31, %v2331_v13 }
 0x3f2   : > { %3452 = vmatmul.msk.f32.gmra.mxu1 %vm820_vm6, %v2388_v51  ;;  %v2727_v32 = vsel %vm461_vm1, %v3461_v47, %v2551_v59 }
 0x3f3   : > { %v2735_v42 = vsel %vm470_vm2, %v2727_v32, %v2583_v34 }
 0x3f7   : > { %v2822_v43 = vpop.f32.mrf.mxu2 }
 0x3f8   : > { %v2647_v57 = vpop.permute.xlu1 %2646 }
 0x3f9   : > { %v2615_v6 = vpop.permute.xlu0 %2614 }
 0x3fa   : > { %v2743_v33 = vsel %vm479_vm3, %v2735_v42, %v2615_v6  ;;  %v2075_v6 = vpop.f32.mrf.mxu0 }
 0x3fb   : > { %v2751_v63 = vsel %vm488_vm4, %v2743_v33, %v2647_v57  ;;  %v950_v57 = vadd.f32 %v5991_v45, %v5987_v52 }
 0x3fc   : > { %v2759_v14 = vsel %vm497_vm5, %v2751_v63, %v2679_v8 }
 0x400   : > { %v2444_v37 = vpop.f32.mrf.mxu1  ;;  %v2711_v3 = vpop.permute.xlu1 %2710 }
 0x401   : > { %v2464_v26 = vadd.f32 %v2444_v37, %v2086_v53  ;;  %v2205_v61 = vpop.permute.xlu0 %2204  ;;  %v2767_v9 = vsel %vm506_vm7, %v2759_v14, %v2711_v3  ;;  %v6467_v37 = vld [vmem:[#allocation29_spill] sm:$0xff] }
 0x402   : > { %3521 = vmatmul.msk.f32.gmra.mxu2 %vm820_vm6, %v2767_v9  ;;  %v2357_v41 = vsel %vm470_vm2, %v2349_v12, %v2205_v61  ;;  %v2078_v14 = vpop.f32.mrf.mxu0 }
 0x403   : > { %v2842_v36 = vadd.f32 %v2822_v43, %v2464_v26  ;;  %v2365_v40 = vsel %vm479_vm3, %v2357_v41, %v2237_v16 }
 0x405   : > { %2851 = vst.msk [vmem:[%s6012_s8 + $0x10] sm:$0xff] %vm2848_vm8, %v2842_v36  ;;  %v2860_v2 = vsel %vm2848_vm8, %v2842_v36, 0.0  ;;  %v2882_v48 = vmul.f32 %v2842_v36, %v2842_v36 }
 0x406   : > { %v2861_v18 = vadd.f32 %v2860_v2, %v2859_v56 }
 0x407   : > { %v2891_v49 = vsel %vm2848_vm8, %v2882_v48, 0.0 }
 0x408   : > { %v2892_v30 = vadd.f32 %v2891_v49, %v2890_v15  ;;  %v2301_v5 = vpop.permute.xlu1 %2300  ;;  %v1694_v15 = vpop.f32.mrf.mxu3 }
 0x409   : > { %v2269_v60 = vpop.permute.xlu0 %2268  ;;  %v1710_v25 = vadd.f32 %v1694_v15, %v5490_v19  ;;  %v1333_v19 = vadd.f32 %v5995_v44, %v950_v57 }
 0x40a   : > { %v2373_v54 = vsel %vm488_vm4, %v2365_v40, %v2269_v60 }
 0x40b   : > { %v2381_v29 = vsel %vm497_vm5, %v2373_v54, %v2301_v5  ;;  %v2088_v24 = vadd.f32 %v2072_v22, %v1710_v25  ;;  %v6469_v5 = vld [vmem:[#allocation59_spill] sm:$0xff]  ;;  %v2081_v54 = vpop.f32.mrf.mxu0 }
 0x40c   : > { %v2389_v28 = vsel %vm506_vm7, %v2381_v29, %v2333_v4 }
 0x40d   : > { %3453 = vmatmul.msk.f32.gmra.mxu1 %vm820_vm6, %v2389_v28 }
 0x410   : > { %v2825_v0 = vpop.f32.mrf.mxu2  ;;  %v1697_v42 = vpop.f32.mrf.mxu3 }
 0x411   : > { %v1711_v58 = vadd.f32 %v1697_v42, %v1333_v19 }
 0x413   : > { %v2089_v33 = vadd.f32 %v2075_v6, %v1711_v58 }
 0x417   : > { %v2447_v27 = vpop.f32.mrf.mxu1 }
 0x418   : > { %v2465_v35 = vadd.f32 %v2447_v27, %v2087_v50  ;;  %v1700_v16 = vpop.f32.mrf.mxu3 }
 0x419   : > { %v1712_v3 = vadd.f32 %v1700_v16, %v6467_v37 }
 0x41a   : > { %v2843_v56 = vadd.f32 %v2825_v0, %v2465_v35 }
 0x41b   : > { %v2090_v26 = vadd.f32 %v2078_v14, %v1712_v3 }
 0x41c   : > { %2852 = vst.msk [vmem:[%s6012_s8 + $0x18] sm:$0xff] %vm2848_vm8, %v2843_v56  ;;  %v2862_v11 = vsel %vm2848_vm8, %v2843_v56, 0.0  ;;  %v2883_v7 = vmul.f32 %v2843_v56, %v2843_v56 }
 0x41d   : > { %v2863_v10 = vadd.f32 %v2862_v11, %v2861_v18 }
 0x41e   : > { %v2893_v20 = vsel %vm2848_vm8, %v2883_v7, 0.0 }
 0x41f   : > { %v2894_v39 = vadd.f32 %v2893_v20, %v2892_v30  ;;  %v6468_v30 = vld [vmem:[#allocation15_spill] sm:$0xff] }
 0x420   : > { %v956_v40 = vadd.f32 %v6469_v5, %v6468_v30  ;;  %v1703_v60 = vpop.f32.mrf.mxu3 }
 0x422   : > { %v1335_v4 = vadd.f32 %v5983_v62, %v956_v40 }
 0x424   : > { %v1713_v29 = vadd.f32 %v1703_v60, %v1335_v4 }
 0x426   : > { %v2091_v28 = vadd.f32 %v2081_v54, %v1713_v29 }
 0x42d   : > { %v2828_v31 = vpop.f32.mrf.mxu2 }
 0x438   : > { %v2450_v34 = vpop.f32.mrf.mxu1 }
 0x439   : > { %v2466_v55 = vadd.f32 %v2450_v34, %v2088_v24 }
 0x43b   : > { %v2844_v13 = vadd.f32 %v2828_v31, %v2466_v55 }
 0x43d   : > { %2853 = vst.msk [vmem:[%s6012_s8 + $0x20] sm:$0xff] %vm2848_vm8, %v2844_v13  ;;  %v2864_v59 = vsel %vm2848_vm8, %v2844_v13, 0.0  ;;  %v2884_v51 = vmul.f32 %v2844_v13, %v2844_v13 }
 0x43e   : > { %v2865_v47 = vadd.f32 %v2864_v59, %v2863_v10 }
 0x43f   : > { %v2895_v8 = vsel %vm2848_vm8, %v2884_v51, 0.0 }
 0x440   : > { %v2896_v32 = vadd.f32 %v2895_v8, %v2894_v39 }
 0x44e   : > { %v2831_v63 = vpop.f32.mrf.mxu2 }
 0x451   : > { %v2453_v1 = vpop.f32.mrf.mxu1 }
 0x452   : > { %v2467_v23 = vadd.f32 %v2453_v1, %v2089_v33 }
 0x454   : > { %v2845_v53 = vadd.f32 %v2831_v63, %v2467_v23 }
 0x456   : > { %2854 = vst.msk [vmem:[%s6012_s8 + $0x28] sm:$0xff] %vm2848_vm8, %v2845_v53  ;;  %v2885_v61 = vmul.f32 %v2845_v53, %v2845_v53  ;;  %v2866_v45 = vsel %vm2848_vm8, %v2845_v53, 0.0 }
 0x457   : > { %v2867_v36 = vadd.f32 %v2866_v45, %v2865_v47 }
 0x458   : > { %v2897_v21 = vsel %vm2848_vm8, %v2885_v61, 0.0 }
 0x459   : > { %v2898_v48 = vadd.f32 %v2897_v21, %v2896_v32 }
 0x467   : > { %v2834_v9 = vpop.f32.mrf.mxu2 }
 0x46f   : > { %v2456_v52 = vpop.f32.mrf.mxu1 }
 0x470   : > { %v2468_v44 = vadd.f32 %v2456_v52, %v2090_v26 }
 0x472   : > { %v2846_v43 = vadd.f32 %v2834_v9, %v2468_v44 }
 0x474   : > { %2855 = vst.msk [vmem:[%s6012_s8 + $0x30] sm:$0xff] %vm2848_vm8, %v2846_v43  ;;  %v2868_v12 = vsel %vm2848_vm8, %v2846_v43, 0.0  ;;  %v2886_v2 = vmul.f32 %v2846_v43, %v2846_v43 }
 0x475   : > { %v2869_v18 = vadd.f32 %v2868_v12, %v2867_v36 }
 0x476   : > { %v2899_v41 = vsel %vm2848_vm8, %v2886_v2, 0.0 }
 0x477   : > { %v2900_v49 = vadd.f32 %v2899_v41, %v2898_v48 }
 0x485   : > { %v2837_v17 = vpop.f32.mrf.mxu2 }
 0x48a   : > { %v2459_v38 = vpop.f32.mrf.mxu1 }
 0x48b   : > { %v2469_v46 = vadd.f32 %v2459_v38, %v2091_v28 }
 0x48d   : > { %v2847_v50 = vadd.f32 %v2837_v17, %v2469_v46 }
 0x48f   : > { %2856 = vst.msk [vmem:[%s6012_s8 + $0x38] sm:$0xff] %vm2848_vm8, %v2847_v50  ;;  %v2870_v62 = vsel %vm2848_vm8, %v2847_v50, 0.0  ;;  %v2887_v27 = vmul.f32 %v2847_v50, %v2847_v50 }
 0x490   : > { %v2871_v35 = vadd.f32 %v2870_v62, %v2869_v18 }
 0x491   : > { %3622 = shalt.err (!%p3619_p3)
}
 0x492   : > { %s3725_s8 = smov 128   ;;  %s3726_s5 = smov 8   ;;  %v2901_v0 = vsel %vm2848_vm8, %v2887_v27, 0.0  ;;  %v2872_v56 = vrot.slane %v2871_v35, 4  ;;  %vm2878_vm9 = vcmask 516096  }
 0x493   : > { %3538 = dma.vmem_to_hbm [thread:$0]  (%p3792_p5), %s2932_s28, 1024, %s2934_s29, %s2911_s30, %s3725_s8, %s3725_s8, %s3726_s5   ;;  %v2902_v11 = vadd.f32 %v2901_v0, %v2900_v49 }
 0x494   : > { %v2873_v7 = vadd.f32 %v2872_v56, %v2871_v35  ;;  %s2945_s11 = scalar_lea.hbm %s6188_s3, %s3773_s19  ;;  %s2915_s12 = sand.u32 1, %s3773_s19  }
 0x495   : > { %v2903_v10 = vrot.slane %v2902_v11, 4  ;;  %s2958_s28 = scalar_lea.hbm %s6189_s4, %s3773_s19  ;;  %s200_s29 = scalar_lea.vmem [#allocation4], %s6001_s6 }
 0x496   : > { %v2874_v39 = vrot.slane %v2873_v7, 2  ;;  %s6125_s30 = sshll.u32 %s200_s29, 4  ;;  %s6127_s22 = sshll.u32 %s2945_s11, 4  ;;  %s2948_s30 = int_to_ptr.vmem [resolvable:$true] %s6125_s30  ;;  %s2950_s22 = int_to_ptr.hbm [resolvable:$true] %s6127_s22 }
 0x497   : > { %v2904_v20 = vadd.f32 %v2903_v10, %v2902_v11  ;;  %s206_s23 = scalar_lea.vmem [#allocation6], %s6001_s6  ;;  %s6132_s7 = sshll.u32 %s2958_s28, 4  ;;  %s2963_s7 = int_to_ptr.hbm [resolvable:$true] %s6132_s7 }
 0x498   : > { %v2875_v22 = vadd.f32 %v2874_v39, %v2873_v7  ;;  %s6130_s27 = sshll.u32 %s206_s23, 4  ;;  %s2916_s19 = scalar_lea.sflag [#allocation5], %s2915_s12  ;;  %s2961_s27 = int_to_ptr.vmem [resolvable:$true] %s6130_s27 }
 0x499   : > { %v2905_v15 = vrot.slane %v2904_v20, 2  ;;  %s3637_s8 = sshra.s32 %s2950_s22, 4  ;;  %s3643_s10 = scalar_lea.hbm %s6188_s3, 2  ;;  %s3638_s8 = int_to_ptr.hbm [resolvable:$true] %s3637_s8 }
 0x49a   : > { %v2876_v25 = vrot.slane %v2875_v22, 1  ;;  %s3639_s6 = scalar_lea.hbm %s3638_s8, 1  ;;  %p3644_p9 = scmp.lt.s32.totalorder %s3638_s8, %s6188_s3 }
 0x49b   : > { %v2906_v24 = vadd.f32 %v2905_v15, %v2904_v20  ;;  %p3640_p4 = scmp.ne.s32.totalorder %s3638_s8, %s3639_s6  ;;  %p3645_p10 = scmp.lt.s32.totalorder %s3643_s10, %s3639_s6 }
 0x49c   : > { %v2877_v34 = vadd.f32 %v2876_v25, %v2875_v22 }
 0x49d   : > { %v2907_v55 = vrot.slane %v2906_v24, 1  ;;  %p3641_p7 = pnand %p3640_p4, %p3792_p5  ;;  %p3646_p11 = por %p3645_p10, %p3644_p9 }
 0x49e   : > { %2879 = vst.msk [vmem:[%s200_s29] sm:$0x1] %vm2878_vm9, %v2877_v34 }
 0x49f   : > { %v2908_v31 = vadd.f32 %v2907_v55, %v2906_v24  ;;  %p3642_p8 = pneg %p3641_p7 }
 0x4a1   : > { %p3647_p12 = pnand %p3646_p11, %p3642_p8 }
 0x4a3   : > { %3650 = shalt.err (!%p3647_p12)
}
 0x4a4   : > { %3539 = dma.vmem_to_hbm [thread:$0]  (%p3792_p5), %s2948_s30, 16, %s2950_s22, %s2916_s19   ;;  %2909 = vst.msk [vmem:[%s206_s23] sm:$0x1] %vm2878_vm9, %v2908_v31 }
 0x4a5   : > { %s3665_s12 = sshra.s32 %s2963_s7, 4  ;;  %s3671_s8 = scalar_lea.hbm %s6189_s4, 2  ;;  %s3666_s12 = int_to_ptr.hbm [resolvable:$true] %s3665_s12 }
 0x4a6   : > { %s3667_s14 = scalar_lea.hbm %s3666_s12, 1  ;;  %p3672_p2 = scmp.lt.s32.totalorder %s3666_s12, %s6189_s4 }
 0x4a7   : > { %p3668_p13 = scmp.ne.s32.totalorder %s3666_s12, %s3667_s14  ;;  %p3673_p3 = scmp.lt.s32.totalorder %s3671_s8, %s3667_s14 }
 0x4a9   : > { %p3669_p0 = pnand %p3668_p13, %p3792_p5  ;;  %p3674_p4 = por %p3673_p3, %p3672_p2 }
 0x4ab   : > { %p3670_p1 = pneg %p3669_p0 }
 0x4ad   : > { %p3675_p7 = pnand %p3674_p4, %p3670_p1 }
 0x4af   : > { %3678 = shalt.err (!%p3675_p7)
}
 0x4b0   : > { %3540 = dma.vmem_to_hbm [thread:$0]  (%p3792_p5), %s2961_s27, 16, %s2963_s7, %s2916_s19  }
 0x4b1 PF: > { %p3554_p8 = scmp.ge.s32.totalorder %s3717_s18, 2  ;;  %s2974_s30 = sand.u32 1, %s3705_s15  }
 0x4b2   : > { %s2975_s22 = scalar_lea.sflag [#allocation3], %s2974_s30 }
 0x4b3   : > { %p3545_p9 = pnand %p3554_p8, %p3796_p6 }
 0x4b5   : > { %p3546_p10 = pneg %p3545_p9 }
 0x4b7   : > { %3696 = dma.done.wait (%p3546_p10), %s2975_s22, 1024  }
 0x4b8   : > { %3698 = vsyncadd (%p3546_p10), %s2975_s22, 4294966272  ;;  %s2984_s25 = sand.u32 1, %s3075_s20  }
 0x4b9   : > { %s2985_s23 = scalar_lea.sflag [#allocation5], %s2984_s25 }
 0x4ba   : > { %3700 = dma.done.wait (%p3546_p10), %s2985_s23, 32  }
 0x4bb   : > { %3702 = vsyncadd (%p3546_p10), %s2985_s23, 4294967264  ;;  %p18_p5 = scmp.ge.s32.totalorder %s3777_s21, 4   ;;  %s6470_s15 = smov %s3709_s16 }
 0x4bc   : > { %s6471_s16 = smov %s3713_s17  ;;  %s6472_s17 = smov %s3790_s24 }
 0x4bd   : > { %s6473_s18 = smov %s3777_s21  ;;  %20 = sbr.rel (!%p18_p5) target bundleno = 5 (0x5), region = 114 }
 0x4c2   :  { %2999 = vsyncpa [#allocation3], 1 }
 0x4c3   :  { %3001 = vsyncpa [#allocation3 + $0x1], 1 }
 0x4c4   :  { %3002 = vsyncpa [#allocation5], 1 }
 0x4c5   :  { %3004 = vsyncpa [#allocation5 + $0x1], 1 }

</bundles_post_ra>
